<compile_context>
chip_gen: v5e
topology: v5e:2x2
jax: 0.10.0
libtpu: 0.0.40
codegen_flags: <defaults>
</compile_context>

<pallas_src>
import jax
import jax.numpy as jnp
import numpy as np
from jax.experimental import pallas as pl
from jax.experimental.pallas import tpu as pltpu

# ----- sizes (small, consistent with the module) -----
B = 2       # batch
N = 16      # nodes
E = 32      # edges
F_IN = 8    # in_channels
H = 32      # out_channels
T = 4       # periods

BN = B * N          # 32
BE = B * E          # 64
TB = T * B          # 8   (number of (t, b) blocks)
TBN = T * BN        # 128 (time folded into rows, period-major)
TBE = T * BE        # 256


# ----------------------------------------------------------------------------
# Pallas kernel: ONE invocation computes all T periods + the attention reduction.
# ----------------------------------------------------------------------------
def a3tgcn_kernel(x_ref, ef_ref, ohcat_ref, amean_ref, pn_ref, pe_ref,
                  w1_ref, b1_ref, w2_ref, b2_ref, wn_ref, bn_ref, we_ref, be_ref,
                  out_node_ref, out_edge_ref):
    x = x_ref[...]            # (TBN, F)   period-major node features
    ef = ef_ref[...]          # (TBE, F)   period-major edge features
    ohcat = ohcat_ref[...]    # (2E, N)    rows = [one_hot(dst); one_hot(src)]
    amean = amean_ref[...]    # (N, E)     adjacency / degree (mean scatter)

    # --- gather node features at edge endpoints: one tiny matmul per (t,b) block ---
    xi_blocks, xj_blocks = [], []
    for p in range(TB):                                           # unrolled, static slices
        g = jnp.dot(ohcat, x[p * N:(p + 1) * N, :],
                    preferred_element_type=jnp.float32)           # (2E, F)
        xi_blocks.append(g[:E, :])                                # target-node feats (dst)
        xj_blocks.append(g[E:, :])                                # source-node feats (src)
    x_i = jnp.concatenate(xi_blocks, axis=0)                      # (TBE, F)
    x_j = jnp.concatenate(xj_blocks, axis=0)                      # (TBE, F)

    # --- message MLP for BOTH live gates in one lane-dense matmul: (TBE,24)@(24,192) ---
    trip = jnp.concatenate([x_i, ef, x_j], axis=1)                # (TBE, 3F)
    h1 = jnp.dot(trip, w1_ref[...], preferred_element_type=jnp.float32) + b1_ref[...]
    h1 = jnp.maximum(h1, 0.0)                                     # (TBE, 6H)
    # packed column layout: [msg_i_z|msg_i_h | msg_j_z|msg_j_h | new_e_z|new_e_h]
    msg = h1[:, :2 * H] + h1[:, 2 * H:4 * H]                      # (TBE, 2H)  [msg_z | msg_h]
    edge_g = h1[:, 4 * H:]                                        # (TBE, 2H)  [new_e_z | new_e_h]

    # --- mean scatter to target nodes: one tiny matmul per (t,b) block, both gates in lanes ---
    agg_blocks = []
    for p in range(TB):
        agg_blocks.append(jnp.dot(amean, msg[p * E:(p + 1) * E, :],
                                  preferred_element_type=jnp.float32))   # (N, 2H)
    agg = jnp.concatenate(agg_blocks, axis=0)                     # (TBN, 2H)

    # --- node update MLP (both gates at once via block-diagonal weights) ---
    node_g = jnp.maximum(
        jnp.dot(agg, w2_ref[...], preferred_element_type=jnp.float32) + b2_ref[...], 0.0)  # (TBN, 2H)

    # --- GRU gate linears (gcn half only: hidden state is identically zero) ---
    node_pre = jnp.dot(node_g, wn_ref[...], preferred_element_type=jnp.float32) + bn_ref[...]  # (TBN, 2H)
    edge_pre = jnp.dot(edge_g, we_ref[...], preferred_element_type=jnp.float32) + be_ref[...]  # (TBE, 2H)

    # H = Z*0 + (1-Z)*H_tilde  (hidden state re-zeroed every call)
    Hn = (1.0 - jax.nn.sigmoid(node_pre[:, :H])) * jnp.tanh(node_pre[:, H:])   # (TBN, H)
    He = (1.0 - jax.nn.sigmoid(edge_pre[:, :H])) * jnp.tanh(edge_pre[:, H:])   # (TBE, H)

    # --- attention-weighted reduction over the T periods on the VPU ---
    wHn = Hn * pn_ref[...]      # row-broadcast probs (TBN,1)
    wHe = He * pe_ref[...]      # row-broadcast probs (TBE,1)
    accn = wHn[:BN, :]
    acce = wHe[:BE, :]
    for t in range(1, T):
        accn = accn + wHn[t * BN:(t + 1) * BN, :]
        acce = acce + wHe[t * BE:(t + 1) * BE, :]
    out_node_ref[...] = accn    # (BN, H)
    out_edge_ref[...] = acce    # (BE, H)


# ----------------------------------------------------------------------------
# One-time packing of structural constants + live-gate weights (hoisted out of the hot path).
# ----------------------------------------------------------------------------
def pack_constants(edge_index, params):
    src, dst = edge_index[0], edge_index[1]
    oh_src = jax.nn.one_hot(src, N, dtype=jnp.float32)            # (E, N)
    oh_dst = jax.nn.one_hot(dst, N, dtype=jnp.float32)            # (E, N)
    oh_cat = jnp.concatenate([oh_dst, oh_src], axis=0)            # (2E, N) rows=[dst-gather; src-gather]
    adj = oh_dst.T                                                # (N, E)
    deg = adj.sum(axis=1, keepdims=True)
    a_mean = adj / jnp.maximum(deg, 1.0)                          # (N, E) mean scatter

    # Live gates only: update (z, g=0) and candidate (h, g=2); the reset gate (g=1) and the
    # hidden-state halves of the 2H->H gate linears are dead (hidden state is always zero).
    w1, b1 = params["w1"], params["b1"]

    def head_cols(o):  # head o for both live gates, rows blocked by input chunk [x_i; ef; x_j]
        return jnp.concatenate(
            [jnp.concatenate([w1[0, c, o], w1[2, c, o]], axis=1) for c in range(3)], axis=0)  # (3F, 2H)

    # column order: [msg_i(z,h) | msg_j(z,h) | new_edge(z,h)]
    w1_p = jnp.concatenate([head_cols(0), head_cols(2), head_cols(1)], axis=1)        # (3F, 6H)
    b1_p = jnp.concatenate([b1[0, 0], b1[2, 0], b1[0, 2], b1[2, 2], b1[0, 1], b1[2, 1]],
                           axis=1)                                                    # (1, 6H)

    def blkdiag(a, b):
        z = jnp.zeros((H, H), jnp.float32)
        return jnp.concatenate([jnp.concatenate([a, z], axis=1),
                                jnp.concatenate([z, b], axis=1)], axis=0)             # (2H, 2H)

    return {
        "oh_cat": oh_cat,
        "a_mean": a_mean,
        "w1": w1_p,
        "b1": b1_p,
        "w2": blkdiag(params["w2"][0], params["w2"][2]),
        "b2": jnp.concatenate([params["b2"][0], params["b2"][2]], axis=1),
        "wn": blkdiag(params["wn"][0, 0], params["wn"][2, 0]),     # gcn half only
        "bn": jnp.concatenate([params["bn"][0], params["bn"][2]], axis=1),
        "we": blkdiag(params["we"][0, 0], params["we"][2, 0]),     # gcn half only
        "be": jnp.concatenate([params["be"][0], params["be"][2]], axis=1),
    }


# ----------------------------------------------------------------------------
# Jitted forward: layout + softmax + single pallas_call.
# ----------------------------------------------------------------------------
@jax.jit
def a3tgcn2_forward(X, edge_feature, attention, consts):
    probs = jax.nn.softmax(attention)                                        # (T,)

    # period-major, batch-flattened, time folded into rows
    x_all = jnp.transpose(X, (3, 0, 1, 2)).reshape(TBN, F_IN)                # (T*B*N, F)
    e_all = jnp.transpose(edge_feature, (3, 0, 1, 2)).reshape(TBE, F_IN)     # (T*B*E, F)

    # attention probs as per-row column vectors (period-major), consumed on the VPU
    pn_w = jnp.repeat(probs, BN).reshape(TBN, 1)
    pe_w = jnp.repeat(probs, BE).reshape(TBE, 1)

    grid_spec = pltpu.PrefetchScalarGridSpec(
        num_scalar_prefetch=0,
        grid=(1,),
        in_specs=[
            pl.BlockSpec((TBN, F_IN), lambda i: (0, 0)),              # x_all
            pl.BlockSpec((TBE, F_IN), lambda i: (0, 0)),              # e_all
            pl.BlockSpec((2 * E, N), lambda i: (0, 0)),               # oh_cat
            pl.BlockSpec((N, E), lambda i: (0, 0)),                   # a_mean
            pl.BlockSpec((TBN, 1), lambda i: (0, 0)),                 # pn_w
            pl.BlockSpec((TBE, 1), lambda i: (0, 0)),                 # pe_w
            pl.BlockSpec((3 * F_IN, 6 * H), lambda i: (0, 0)),        # w1 packed
            pl.BlockSpec((1, 6 * H), lambda i: (0, 0)),               # b1 packed
            pl.BlockSpec((2 * H, 2 * H), lambda i: (0, 0)),           # w2 block-diag
            pl.BlockSpec((1, 2 * H), lambda i: (0, 0)),               # b2
            pl.BlockSpec((2 * H, 2 * H), lambda i: (0, 0)),           # wn block-diag (gcn half)
            pl.BlockSpec((1, 2 * H), lambda i: (0, 0)),               # bn
            pl.BlockSpec((2 * H, 2 * H), lambda i: (0, 0)),           # we block-diag (gcn half)
            pl.BlockSpec((1, 2 * H), lambda i: (0, 0)),               # be
        ],
        out_specs=[
            pl.BlockSpec((BN, H), lambda i: (0, 0)),
            pl.BlockSpec((BE, H), lambda i: (0, 0)),
        ],
    )

    out_node, out_edge = pl.pallas_call(
        a3tgcn_kernel,
        grid_spec=grid_spec,
        out_shape=(jax.ShapeDtypeStruct((BN, H), jnp.float32),
                   jax.ShapeDtypeStruct((BE, H), jnp.float32)),
        compiler_params=pltpu.CompilerParams(dimension_semantics=("arbitrary",)),
    )(x_all, e_all, consts["oh_cat"], consts["a_mean"], pn_w, pe_w,
      consts["w1"], consts["b1"], consts["w2"], consts["b2"],
      consts["wn"], consts["bn"], consts["we"], consts["be"])

    return out_node.reshape(B, N, H), out_edge.reshape(B, E, H)


# ----------------------------------------------------------------------------
# Deterministic synthetic parameter init (shapes implied by the module)
# ----------------------------------------------------------------------------
def init_params(key):
    ks = jax.random.split(key, 9)
    s = 0.2
    return {
        "attention": jax.random.uniform(ks[0], (T,), jnp.float32),          # nn.Parameter(periods)
        # TripletGCN message MLP, per (gate, input-chunk, output-head): equals Linear(3F -> 3H)
        "w1": s * jax.random.normal(ks[1], (3, 3, 3, F_IN, H), jnp.float32),
        "b1": s * jax.random.normal(ks[2], (3, 3, 1, H), jnp.float32),
        # TripletGCN node update: Linear(H -> H)
        "w2": s * jax.random.normal(ks[3], (3, H, H), jnp.float32),
        "b2": s * jax.random.normal(ks[4], (3, 1, H), jnp.float32),
        # linear_{z,r,h}_node : Linear(2H -> H), split into [top; bottom] halves of the concat
        "wn": s * jax.random.normal(ks[5], (3, 2, H, H), jnp.float32),
        "bn": s * jax.random.normal(ks[6], (3, 1, H), jnp.float32),
        # linear_{z,r,h}_edge : Linear(2H -> H)
        "we": s * jax.random.normal(ks[7], (3, 2, H, H), jnp.float32),
        "be": s * jax.random.normal(ks[8], (3, 1, H), jnp.float32),
    }


# ----------------------------------------------------------------------------
# Pure-JAX reference (mirrors the PyTorch concat/linear formulation, INCLUDING the
# reset gate and the zero hidden state — validates the kernel's dead-code elimination).
# ----------------------------------------------------------------------------
def reference_forward(X, edge_index, edge_feature, params):
    probs = jax.nn.softmax(params["attention"])
    src, dst = edge_index[0], edge_index[1]

    w1, b1 = params["w1"], params["b1"]
    W1_full, B1_full = [], []
    for g in range(3):
        W1_full.append(jnp.concatenate(
            [jnp.concatenate([w1[g, c, o] for o in range(3)], axis=1) for c in range(3)], axis=0))
        B1_full.append(jnp.concatenate([b1[g, o, 0] for o in range(3)], axis=0))
    Wn_full = [jnp.concatenate([params["wn"][g, 0], params["wn"][g, 1]], axis=0) for g in range(3)]
    We_full = [jnp.concatenate([params["we"][g, 0], params["we"][g, 1]], axis=0) for g in range(3)]

    def triplet_gcn(x, ef, g):
        x_i = x[:, dst, :]
        x_j = x[:, src, :]
        trip = jnp.concatenate([x_i, ef, x_j], axis=-1)                   # (B, E, 3F)
        h1 = jax.nn.relu(jnp.einsum("bef,fk->bek", trip, W1_full[g]) + B1_full[g])
        msg = h1[..., :H] + h1[..., 2 * H:]
        new_e = h1[..., H:2 * H]
        seg = jnp.zeros((B, N, H), jnp.float32).at[:, dst, :].add(msg)
        deg = jnp.zeros((N,), jnp.float32).at[dst].add(1.0)
        agg = seg / jnp.maximum(deg, 1.0)[None, :, None]
        node = jax.nn.relu(jnp.einsum("bnh,hk->bnk", agg, params["w2"][g]) + params["b2"][g, 0])
        return node, new_e

    def tgcn2(x, ef):
        Hn0 = jnp.zeros((B, N, H), jnp.float32)
        He0 = jnp.zeros((B, E, H), jnp.float32)
        gn, ge = triplet_gcn(x, ef, 0)
        Zn = jax.nn.sigmoid(jnp.concatenate([gn, Hn0], -1) @ Wn_full[0] + params["bn"][0, 0])
        Ze = jax.nn.sigmoid(jnp.concatenate([ge, He0], -1) @ We_full[0] + params["be"][0, 0])
        gn, ge = triplet_gcn(x, ef, 1)
        Rn = jax.nn.sigmoid(jnp.concatenate([gn, Hn0], -1) @ Wn_full[1] + params["bn"][1, 0])
        Re = jax.nn.sigmoid(jnp.concatenate([ge, He0], -1) @ We_full[1] + params["be"][1, 0])
        gn, ge = triplet_gcn(x, ef, 2)
        Htn = jnp.tanh(jnp.concatenate([gn, Hn0 * Rn], -1) @ Wn_full[2] + params["bn"][2, 0])
        Hte = jnp.tanh(jnp.concatenate([ge, He0 * Re], -1) @ We_full[2] + params["be"][2, 0])
        return Zn * Hn0 + (1 - Zn) * Htn, Ze * He0 + (1 - Ze) * Hte

    Hn_acc, He_acc = 0.0, 0.0
    for t in range(T):
        hn, he = tgcn2(X[:, :, :, t], edge_feature[:, :, :, t])
        Hn_acc = Hn_acc + probs[t] * hn
        He_acc = He_acc + probs[t] * he
    return Hn_acc, He_acc


if __name__ == "__main__":
    key = jax.random.PRNGKey(0)
    kx, ke, ki, kp = jax.random.split(key, 4)
    X = jax.random.normal(kx, (B, N, F_IN, T), jnp.float32)
    edge_feature = jax.random.normal(ke, (B, E, F_IN, T), jnp.float32)
    edge_index = jax.random.randint(ki, (2, E), 0, N, dtype=jnp.int32)
    params = init_params(kp)

    # Structural constants + weight packing are computed ONCE (hoisted out of the hot path).
    consts = pack_constants(edge_index, params)

    out_node, out_edge = a3tgcn2_forward(X, edge_feature, params["attention"], consts)
    jax.block_until_ready((out_node, out_edge))

    # Reference at highest precision; kernel runs at default MXU precision (f32 accumulate).
    with jax.default_matmul_precision("highest"):
        ref_node, ref_edge = reference_forward(X, edge_index, edge_feature, params)
    np.testing.assert_allclose(np.asarray(out_node), np.asarray(ref_node), rtol=2e-2, atol=2e-2)
    np.testing.assert_allclose(np.asarray(out_edge), np.asarray(ref_edge), rtol=2e-2, atol=2e-2)

    print("KERNEL_OK")
</pallas_src>

<mosaic_0001>
module attributes {stable_mosaic.version = 11 : i64} {
  func.func @a3tgcn_kernel(%arg0: i32, %arg1: memref<128x8xf32, #tpu.memory_space<vmem>>, %arg2: memref<256x8xf32, #tpu.memory_space<vmem>>, %arg3: memref<64x16xf32, #tpu.memory_space<vmem>>, %arg4: memref<16x32xf32, #tpu.memory_space<vmem>>, %arg5: memref<128x1xf32, #tpu.memory_space<vmem>>, %arg6: memref<256x1xf32, #tpu.memory_space<vmem>>, %arg7: memref<24x192xf32, #tpu.memory_space<vmem>>, %arg8: memref<1x192xf32, #tpu.memory_space<vmem>>, %arg9: memref<64x64xf32, #tpu.memory_space<vmem>>, %arg10: memref<1x64xf32, #tpu.memory_space<vmem>>, %arg11: memref<64x64xf32, #tpu.memory_space<vmem>>, %arg12: memref<1x64xf32, #tpu.memory_space<vmem>>, %arg13: memref<64x64xf32, #tpu.memory_space<vmem>>, %arg14: memref<1x64xf32, #tpu.memory_space<vmem>>, %arg15: memref<32x32xf32, #tpu.memory_space<vmem>>, %arg16: memref<64x32xf32, #tpu.memory_space<vmem>>) attributes {dimension_semantics = [#tpu.dimension_semantics<arbitrary>], iteration_bounds = array<i64: 1>, scalar_prefetch = 0 : i64, scratch_operands = 0 : i64, tpu.core_type = #tpu.core_type<tc>, window_params = [{pipeline_mode = #tpu.pipeline_mode<synchronous>, transform_indices = @transform_0, window_bounds = array<i64: 128, 8>}, {pipeline_mode = #tpu.pipeline_mode<synchronous>, transform_indices = @transform_1, window_bounds = array<i64: 256, 8>}, {pipeline_mode = #tpu.pipeline_mode<synchronous>, transform_indices = @transform_2, window_bounds = array<i64: 64, 16>}, {pipeline_mode = #tpu.pipeline_mode<synchronous>, transform_indices = @transform_3, window_bounds = array<i64: 16, 32>}, {pipeline_mode = #tpu.pipeline_mode<synchronous>, transform_indices = @transform_4, window_bounds = array<i64: 128, 1>}, {pipeline_mode = #tpu.pipeline_mode<synchronous>, transform_indices = @transform_5, window_bounds = array<i64: 256, 1>}, {pipeline_mode = #tpu.pipeline_mode<synchronous>, transform_indices = @transform_6, window_bounds = array<i64: 24, 192>}, {pipeline_mode = #tpu.pipeline_mode<synchronous>, transform_indices = @transform_7, window_bounds = array<i64: 1, 192>}, {pipeline_mode = #tpu.pipeline_mode<synchronous>, transform_indices = @transform_8, window_bounds = array<i64: 64, 64>}, {pipeline_mode = #tpu.pipeline_mode<synchronous>, transform_indices = @transform_9, window_bounds = array<i64: 1, 64>}, {pipeline_mode = #tpu.pipeline_mode<synchronous>, transform_indices = @transform_10, window_bounds = array<i64: 64, 64>}, {pipeline_mode = #tpu.pipeline_mode<synchronous>, transform_indices = @transform_11, window_bounds = array<i64: 1, 64>}, {pipeline_mode = #tpu.pipeline_mode<synchronous>, transform_indices = @transform_12, window_bounds = array<i64: 64, 64>}, {pipeline_mode = #tpu.pipeline_mode<synchronous>, transform_indices = @transform_13, window_bounds = array<i64: 1, 64>}, {pipeline_mode = #tpu.pipeline_mode<synchronous>, transform_indices = @transform_14, window_bounds = array<i64: 32, 32>}, {pipeline_mode = #tpu.pipeline_mode<synchronous>, transform_indices = @transform_15, window_bounds = array<i64: 64, 32>}]} {
    %c0 = arith.constant 0 : index
    %c0_0 = arith.constant 0 : index
    %0 = vector.load %arg1[%c0, %c0_0] : memref<128x8xf32, #tpu.memory_space<vmem>>, vector<128x8xf32>
    %c0_1 = arith.constant 0 : index
    %c0_2 = arith.constant 0 : index
    %1 = vector.load %arg2[%c0_1, %c0_2] : memref<256x8xf32, #tpu.memory_space<vmem>>, vector<256x8xf32>
    %c0_3 = arith.constant 0 : index
    %c0_4 = arith.constant 0 : index
    %2 = vector.load %arg3[%c0_3, %c0_4] : memref<64x16xf32, #tpu.memory_space<vmem>>, vector<64x16xf32>
    %c0_5 = arith.constant 0 : index
    %c0_6 = arith.constant 0 : index
    %3 = vector.load %arg4[%c0_5, %c0_6] : memref<16x32xf32, #tpu.memory_space<vmem>>, vector<16x32xf32>
    %4 = vector.extract_strided_slice %0 {offsets = [0, 0], sizes = [16, 8], strides = [1, 1]} : vector<128x8xf32> to vector<16x8xf32>
    %cst = arith.constant dense<0.000000e+00> : vector<64x8xf32>
    %5 = tpu.matmul %2, %4, %cst {dimension_numbers = #tpu.dot_dimension_numbers<[1], [0], [0], [1], [0, 0, 1, 1], [], []>} : vector<64x16xf32>, vector<16x8xf32>, vector<64x8xf32> -> vector<64x8xf32>
    %6 = vector.extract_strided_slice %5 {offsets = [0, 0], sizes = [32, 8], strides = [1, 1]} : vector<64x8xf32> to vector<32x8xf32>
    %7 = vector.extract_strided_slice %5 {offsets = [32, 0], sizes = [32, 8], strides = [1, 1]} : vector<64x8xf32> to vector<32x8xf32>
    %8 = vector.extract_strided_slice %0 {offsets = [16, 0], sizes = [16, 8], strides = [1, 1]} : vector<128x8xf32> to vector<16x8xf32>
    %cst_7 = arith.constant dense<0.000000e+00> : vector<64x8xf32>
    %9 = tpu.matmul %2, %8, %cst_7 {dimension_numbers = #tpu.dot_dimension_numbers<[1], [0], [0], [1], [0, 0, 1, 1], [], []>} : vector<64x16xf32>, vector<16x8xf32>, vector<64x8xf32> -> vector<64x8xf32>
    %10 = vector.extract_strided_slice %9 {offsets = [0, 0], sizes = [32, 8], strides = [1, 1]} : vector<64x8xf32> to vector<32x8xf32>
    %11 = vector.extract_strided_slice %9 {offsets = [32, 0], sizes = [32, 8], strides = [1, 1]} : vector<64x8xf32> to vector<32x8xf32>
    %12 = vector.extract_strided_slice %0 {offsets = [32, 0], sizes = [16, 8], strides = [1, 1]} : vector<128x8xf32> to vector<16x8xf32>
    %cst_8 = arith.constant dense<0.000000e+00> : vector<64x8xf32>
    %13 = tpu.matmul %2, %12, %cst_8 {dimension_numbers = #tpu.dot_dimension_numbers<[1], [0], [0], [1], [0, 0, 1, 1], [], []>} : vector<64x16xf32>, vector<16x8xf32>, vector<64x8xf32> -> vector<64x8xf32>
    %14 = vector.extract_strided_slice %13 {offsets = [0, 0], sizes = [32, 8], strides = [1, 1]} : vector<64x8xf32> to vector<32x8xf32>
    %15 = vector.extract_strided_slice %13 {offsets = [32, 0], sizes = [32, 8], strides = [1, 1]} : vector<64x8xf32> to vector<32x8xf32>
    %16 = vector.extract_strided_slice %0 {offsets = [48, 0], sizes = [16, 8], strides = [1, 1]} : vector<128x8xf32> to vector<16x8xf32>
    %cst_9 = arith.constant dense<0.000000e+00> : vector<64x8xf32>
    %17 = tpu.matmul %2, %16, %cst_9 {dimension_numbers = #tpu.dot_dimension_numbers<[1], [0], [0], [1], [0, 0, 1, 1], [], []>} : vector<64x16xf32>, vector<16x8xf32>, vector<64x8xf32> -> vector<64x8xf32>
    %18 = vector.extract_strided_slice %17 {offsets = [0, 0], sizes = [32, 8], strides = [1, 1]} : vector<64x8xf32> to vector<32x8xf32>
    %19 = vector.extract_strided_slice %17 {offsets = [32, 0], sizes = [32, 8], strides = [1, 1]} : vector<64x8xf32> to vector<32x8xf32>
    %20 = vector.extract_strided_slice %0 {offsets = [64, 0], sizes = [16, 8], strides = [1, 1]} : vector<128x8xf32> to vector<16x8xf32>
    %cst_10 = arith.constant dense<0.000000e+00> : vector<64x8xf32>
    %21 = tpu.matmul %2, %20, %cst_10 {dimension_numbers = #tpu.dot_dimension_numbers<[1], [0], [0], [1], [0, 0, 1, 1], [], []>} : vector<64x16xf32>, vector<16x8xf32>, vector<64x8xf32> -> vector<64x8xf32>
    %22 = vector.extract_strided_slice %21 {offsets = [0, 0], sizes = [32, 8], strides = [1, 1]} : vector<64x8xf32> to vector<32x8xf32>
    %23 = vector.extract_strided_slice %21 {offsets = [32, 0], sizes = [32, 8], strides = [1, 1]} : vector<64x8xf32> to vector<32x8xf32>
    %24 = vector.extract_strided_slice %0 {offsets = [80, 0], sizes = [16, 8], strides = [1, 1]} : vector<128x8xf32> to vector<16x8xf32>
    %cst_11 = arith.constant dense<0.000000e+00> : vector<64x8xf32>
    %25 = tpu.matmul %2, %24, %cst_11 {dimension_numbers = #tpu.dot_dimension_numbers<[1], [0], [0], [1], [0, 0, 1, 1], [], []>} : vector<64x16xf32>, vector<16x8xf32>, vector<64x8xf32> -> vector<64x8xf32>
    %26 = vector.extract_strided_slice %25 {offsets = [0, 0], sizes = [32, 8], strides = [1, 1]} : vector<64x8xf32> to vector<32x8xf32>
    %27 = vector.extract_strided_slice %25 {offsets = [32, 0], sizes = [32, 8], strides = [1, 1]} : vector<64x8xf32> to vector<32x8xf32>
    %28 = vector.extract_strided_slice %0 {offsets = [96, 0], sizes = [16, 8], strides = [1, 1]} : vector<128x8xf32> to vector<16x8xf32>
    %cst_12 = arith.constant dense<0.000000e+00> : vector<64x8xf32>
    %29 = tpu.matmul %2, %28, %cst_12 {dimension_numbers = #tpu.dot_dimension_numbers<[1], [0], [0], [1], [0, 0, 1, 1], [], []>} : vector<64x16xf32>, vector<16x8xf32>, vector<64x8xf32> -> vector<64x8xf32>
    %30 = vector.extract_strided_slice %29 {offsets = [0, 0], sizes = [32, 8], strides = [1, 1]} : vector<64x8xf32> to vector<32x8xf32>
    %31 = vector.extract_strided_slice %29 {offsets = [32, 0], sizes = [32, 8], strides = [1, 1]} : vector<64x8xf32> to vector<32x8xf32>
    %32 = vector.extract_strided_slice %0 {offsets = [112, 0], sizes = [16, 8], strides = [1, 1]} : vector<128x8xf32> to vector<16x8xf32>
    %cst_13 = arith.constant dense<0.000000e+00> : vector<64x8xf32>
    %33 = tpu.matmul %2, %32, %cst_13 {dimension_numbers = #tpu.dot_dimension_numbers<[1], [0], [0], [1], [0, 0, 1, 1], [], []>} : vector<64x16xf32>, vector<16x8xf32>, vector<64x8xf32> -> vector<64x8xf32>
    %34 = vector.extract_strided_slice %33 {offsets = [0, 0], sizes = [32, 8], strides = [1, 1]} : vector<64x8xf32> to vector<32x8xf32>
    %35 = vector.extract_strided_slice %33 {offsets = [32, 0], sizes = [32, 8], strides = [1, 1]} : vector<64x8xf32> to vector<32x8xf32>
    %36 = tpu.concatenate %6, %10, %14, %18, %22, %26, %30, %34 in 0 : vector<32x8xf32>, vector<32x8xf32>, vector<32x8xf32>, vector<32x8xf32>, vector<32x8xf32>, vector<32x8xf32>, vector<32x8xf32>, vector<32x8xf32> -> vector<256x8xf32>
    %37 = tpu.concatenate %7, %11, %15, %19, %23, %27, %31, %35 in 0 : vector<32x8xf32>, vector<32x8xf32>, vector<32x8xf32>, vector<32x8xf32>, vector<32x8xf32>, vector<32x8xf32>, vector<32x8xf32>, vector<32x8xf32> -> vector<256x8xf32>
    %38 = tpu.concatenate %36, %1, %37 in 1 : vector<256x8xf32>, vector<256x8xf32>, vector<256x8xf32> -> vector<256x24xf32>
    %c0_14 = arith.constant 0 : index
    %c0_15 = arith.constant 0 : index
    %39 = vector.load %arg7[%c0_14, %c0_15] : memref<24x192xf32, #tpu.memory_space<vmem>>, vector<24x192xf32>
    %cst_16 = arith.constant dense<0.000000e+00> : vector<256x192xf32>
    %40 = tpu.matmul %38, %39, %cst_16 {dimension_numbers = #tpu.dot_dimension_numbers<[1], [0], [0], [1], [0, 0, 1, 1], [], []>} : vector<256x24xf32>, vector<24x192xf32>, vector<256x192xf32> -> vector<256x192xf32>
    %c0_17 = arith.constant 0 : index
    %c0_18 = arith.constant 0 : index
    %41 = vector.load %arg8[%c0_17, %c0_18] : memref<1x192xf32, #tpu.memory_space<vmem>>, vector<1x192xf32>
    %42 = vector.broadcast %41 : vector<1x192xf32> to vector<256x192xf32>
    %43 = arith.addf %40, %42 : vector<256x192xf32>
    %cst_19 = arith.constant 0.000000e+00 : f32
    %44 = vector.broadcast %cst_19 : f32 to vector<256x192xf32>
    %45 = arith.maximumf %43, %44 : vector<256x192xf32>
    %46 = vector.extract_strided_slice %45 {offsets = [0, 0], sizes = [256, 64], strides = [1, 1]} : vector<256x192xf32> to vector<256x64xf32>
    %47 = vector.extract_strided_slice %45 {offsets = [0, 64], sizes = [256, 64], strides = [1, 1]} : vector<256x192xf32> to vector<256x64xf32>
    %48 = arith.addf %46, %47 : vector<256x64xf32>
    %49 = vector.extract_strided_slice %45 {offsets = [0, 128], sizes = [256, 64], strides = [1, 1]} : vector<256x192xf32> to vector<256x64xf32>
    %50 = vector.extract_strided_slice %48 {offsets = [0, 0], sizes = [32, 64], strides = [1, 1]} : vector<256x64xf32> to vector<32x64xf32>
    %cst_20 = arith.constant dense<0.000000e+00> : vector<16x64xf32>
    %51 = tpu.matmul %3, %50, %cst_20 {dimension_numbers = #tpu.dot_dimension_numbers<[1], [0], [0], [1], [0, 0, 1, 1], [], []>} : vector<16x32xf32>, vector<32x64xf32>, vector<16x64xf32> -> vector<16x64xf32>
    %52 = vector.extract_strided_slice %48 {offsets = [32, 0], sizes = [32, 64], strides = [1, 1]} : vector<256x64xf32> to vector<32x64xf32>
    %cst_21 = arith.constant dense<0.000000e+00> : vector<16x64xf32>
    %53 = tpu.matmul %3, %52, %cst_21 {dimension_numbers = #tpu.dot_dimension_numbers<[1], [0], [0], [1], [0, 0, 1, 1], [], []>} : vector<16x32xf32>, vector<32x64xf32>, vector<16x64xf32> -> vector<16x64xf32>
    %54 = vector.extract_strided_slice %48 {offsets = [64, 0], sizes = [32, 64], strides = [1, 1]} : vector<256x64xf32> to vector<32x64xf32>
    %cst_22 = arith.constant dense<0.000000e+00> : vector<16x64xf32>
    %55 = tpu.matmul %3, %54, %cst_22 {dimension_numbers = #tpu.dot_dimension_numbers<[1], [0], [0], [1], [0, 0, 1, 1], [], []>} : vector<16x32xf32>, vector<32x64xf32>, vector<16x64xf32> -> vector<16x64xf32>
    %56 = vector.extract_strided_slice %48 {offsets = [96, 0], sizes = [32, 64], strides = [1, 1]} : vector<256x64xf32> to vector<32x64xf32>
    %cst_23 = arith.constant dense<0.000000e+00> : vector<16x64xf32>
    %57 = tpu.matmul %3, %56, %cst_23 {dimension_numbers = #tpu.dot_dimension_numbers<[1], [0], [0], [1], [0, 0, 1, 1], [], []>} : vector<16x32xf32>, vector<32x64xf32>, vector<16x64xf32> -> vector<16x64xf32>
    %58 = vector.extract_strided_slice %48 {offsets = [128, 0], sizes = [32, 64], strides = [1, 1]} : vector<256x64xf32> to vector<32x64xf32>
    %cst_24 = arith.constant dense<0.000000e+00> : vector<16x64xf32>
    %59 = tpu.matmul %3, %58, %cst_24 {dimension_numbers = #tpu.dot_dimension_numbers<[1], [0], [0], [1], [0, 0, 1, 1], [], []>} : vector<16x32xf32>, vector<32x64xf32>, vector<16x64xf32> -> vector<16x64xf32>
    %60 = vector.extract_strided_slice %48 {offsets = [160, 0], sizes = [32, 64], strides = [1, 1]} : vector<256x64xf32> to vector<32x64xf32>
    %cst_25 = arith.constant dense<0.000000e+00> : vector<16x64xf32>
    %61 = tpu.matmul %3, %60, %cst_25 {dimension_numbers = #tpu.dot_dimension_numbers<[1], [0], [0], [1], [0, 0, 1, 1], [], []>} : vector<16x32xf32>, vector<32x64xf32>, vector<16x64xf32> -> vector<16x64xf32>
    %62 = vector.extract_strided_slice %48 {offsets = [192, 0], sizes = [32, 64], strides = [1, 1]} : vector<256x64xf32> to vector<32x64xf32>
    %cst_26 = arith.constant dense<0.000000e+00> : vector<16x64xf32>
    %63 = tpu.matmul %3, %62, %cst_26 {dimension_numbers = #tpu.dot_dimension_numbers<[1], [0], [0], [1], [0, 0, 1, 1], [], []>} : vector<16x32xf32>, vector<32x64xf32>, vector<16x64xf32> -> vector<16x64xf32>
    %64 = vector.extract_strided_slice %48 {offsets = [224, 0], sizes = [32, 64], strides = [1, 1]} : vector<256x64xf32> to vector<32x64xf32>
    %cst_27 = arith.constant dense<0.000000e+00> : vector<16x64xf32>
    %65 = tpu.matmul %3, %64, %cst_27 {dimension_numbers = #tpu.dot_dimension_numbers<[1], [0], [0], [1], [0, 0, 1, 1], [], []>} : vector<16x32xf32>, vector<32x64xf32>, vector<16x64xf32> -> vector<16x64xf32>
    %66 = tpu.concatenate %51, %53, %55, %57, %59, %61, %63, %65 in 0 : vector<16x64xf32>, vector<16x64xf32>, vector<16x64xf32>, vector<16x64xf32>, vector<16x64xf32>, vector<16x64xf32>, vector<16x64xf32>, vector<16x64xf32> -> vector<128x64xf32>
    %c0_28 = arith.constant 0 : index
    %c0_29 = arith.constant 0 : index
    %67 = vector.load %arg9[%c0_28, %c0_29] : memref<64x64xf32, #tpu.memory_space<vmem>>, vector<64x64xf32>
    %cst_30 = arith.constant dense<0.000000e+00> : vector<128x64xf32>
    %68 = tpu.matmul %66, %67, %cst_30 {dimension_numbers = #tpu.dot_dimension_numbers<[1], [0], [0], [1], [0, 0, 1, 1], [], []>} : vector<128x64xf32>, vector<64x64xf32>, vector<128x64xf32> -> vector<128x64xf32>
    %c0_31 = arith.constant 0 : index
    %c0_32 = arith.constant 0 : index
    %69 = vector.load %arg10[%c0_31, %c0_32] : memref<1x64xf32, #tpu.memory_space<vmem>>, vector<1x64xf32>
    %70 = vector.broadcast %69 : vector<1x64xf32> to vector<128x64xf32>
    %71 = arith.addf %68, %70 : vector<128x64xf32>
    %cst_33 = arith.constant 0.000000e+00 : f32
    %72 = vector.broadcast %cst_33 : f32 to vector<128x64xf32>
    %73 = arith.maximumf %71, %72 : vector<128x64xf32>
    %c0_34 = arith.constant 0 : index
    %c0_35 = arith.constant 0 : index
    %74 = vector.load %arg11[%c0_34, %c0_35] : memref<64x64xf32, #tpu.memory_space<vmem>>, vector<64x64xf32>
    %cst_36 = arith.constant dense<0.000000e+00> : vector<128x64xf32>
    %75 = tpu.matmul %73, %74, %cst_36 {dimension_numbers = #tpu.dot_dimension_numbers<[1], [0], [0], [1], [0, 0, 1, 1], [], []>} : vector<128x64xf32>, vector<64x64xf32>, vector<128x64xf32> -> vector<128x64xf32>
    %c0_37 = arith.constant 0 : index
    %c0_38 = arith.constant 0 : index
    %76 = vector.load %arg12[%c0_37, %c0_38] : memref<1x64xf32, #tpu.memory_space<vmem>>, vector<1x64xf32>
    %77 = vector.broadcast %76 : vector<1x64xf32> to vector<128x64xf32>
    %78 = arith.addf %75, %77 : vector<128x64xf32>
    %c0_39 = arith.constant 0 : index
    %c0_40 = arith.constant 0 : index
    %79 = vector.load %arg13[%c0_39, %c0_40] : memref<64x64xf32, #tpu.memory_space<vmem>>, vector<64x64xf32>
    %cst_41 = arith.constant dense<0.000000e+00> : vector<256x64xf32>
    %80 = tpu.matmul %49, %79, %cst_41 {dimension_numbers = #tpu.dot_dimension_numbers<[1], [0], [0], [1], [0, 0, 1, 1], [], []>} : vector<256x64xf32>, vector<64x64xf32>, vector<256x64xf32> -> vector<256x64xf32>
    %c0_42 = arith.constant 0 : index
    %c0_43 = arith.constant 0 : index
    %81 = vector.load %arg14[%c0_42, %c0_43] : memref<1x64xf32, #tpu.memory_space<vmem>>, vector<1x64xf32>
    %82 = vector.broadcast %81 : vector<1x64xf32> to vector<256x64xf32>
    %83 = arith.addf %80, %82 : vector<256x64xf32>
    %84 = vector.extract_strided_slice %78 {offsets = [0, 0], sizes = [128, 32], strides = [1, 1]} : vector<128x64xf32> to vector<128x32xf32>
    %85 = arith.negf %84 : vector<128x32xf32>
    %86 = math.exp %85 : vector<128x32xf32>
    %cst_44 = arith.constant 1.000000e+00 : f32
    %87 = vector.broadcast %cst_44 : f32 to vector<128x32xf32>
    %88 = arith.addf %87, %86 : vector<128x32xf32>
    %89 = arith.divf %87, %88 : vector<128x32xf32>
    %cst_45 = arith.constant 1.000000e+00 : f32
    %90 = vector.broadcast %cst_45 : f32 to vector<128x32xf32>
    %91 = arith.subf %90, %89 : vector<128x32xf32>
    %92 = vector.extract_strided_slice %78 {offsets = [0, 32], sizes = [128, 32], strides = [1, 1]} : vector<128x64xf32> to vector<128x32xf32>
    %93 = math.tanh %92 : vector<128x32xf32>
    %94 = arith.mulf %91, %93 : vector<128x32xf32>
    %95 = vector.extract_strided_slice %83 {offsets = [0, 0], sizes = [256, 32], strides = [1, 1]} : vector<256x64xf32> to vector<256x32xf32>
    %96 = arith.negf %95 : vector<256x32xf32>
    %97 = math.exp %96 : vector<256x32xf32>
    %cst_46 = arith.constant 1.000000e+00 : f32
    %98 = vector.broadcast %cst_46 : f32 to vector<256x32xf32>
    %99 = arith.addf %98, %97 : vector<256x32xf32>
    %100 = arith.divf %98, %99 : vector<256x32xf32>
    %cst_47 = arith.constant 1.000000e+00 : f32
    %101 = vector.broadcast %cst_47 : f32 to vector<256x32xf32>
    %102 = arith.subf %101, %100 : vector<256x32xf32>
    %103 = vector.extract_strided_slice %83 {offsets = [0, 32], sizes = [256, 32], strides = [1, 1]} : vector<256x64xf32> to vector<256x32xf32>
    %104 = math.tanh %103 : vector<256x32xf32>
    %105 = arith.mulf %102, %104 : vector<256x32xf32>
    %c0_48 = arith.constant 0 : index
    %c0_49 = arith.constant 0 : index
    %106 = vector.load %arg5[%c0_48, %c0_49] : memref<128x1xf32, #tpu.memory_space<vmem>>, vector<128x1xf32>
    %107 = vector.broadcast %106 : vector<128x1xf32> to vector<128x32xf32>
    %108 = arith.mulf %94, %107 : vector<128x32xf32>
    %c0_50 = arith.constant 0 : index
    %c0_51 = arith.constant 0 : index
    %109 = vector.load %arg6[%c0_50, %c0_51] : memref<256x1xf32, #tpu.memory_space<vmem>>, vector<256x1xf32>
    %110 = vector.broadcast %109 : vector<256x1xf32> to vector<256x32xf32>
    %111 = arith.mulf %105, %110 : vector<256x32xf32>
    %112 = vector.extract_strided_slice %108 {offsets = [0, 0], sizes = [32, 32], strides = [1, 1]} : vector<128x32xf32> to vector<32x32xf32>
    %113 = vector.extract_strided_slice %111 {offsets = [0, 0], sizes = [64, 32], strides = [1, 1]} : vector<256x32xf32> to vector<64x32xf32>
    %114 = vector.extract_strided_slice %108 {offsets = [32, 0], sizes = [32, 32], strides = [1, 1]} : vector<128x32xf32> to vector<32x32xf32>
    %115 = arith.addf %112, %114 : vector<32x32xf32>
    %116 = vector.extract_strided_slice %111 {offsets = [64, 0], sizes = [64, 32], strides = [1, 1]} : vector<256x32xf32> to vector<64x32xf32>
    %117 = arith.addf %113, %116 : vector<64x32xf32>
    %118 = vector.extract_strided_slice %108 {offsets = [64, 0], sizes = [32, 32], strides = [1, 1]} : vector<128x32xf32> to vector<32x32xf32>
    %119 = arith.addf %115, %118 : vector<32x32xf32>
    %120 = vector.extract_strided_slice %111 {offsets = [128, 0], sizes = [64, 32], strides = [1, 1]} : vector<256x32xf32> to vector<64x32xf32>
    %121 = arith.addf %117, %120 : vector<64x32xf32>
    %122 = vector.extract_strided_slice %108 {offsets = [96, 0], sizes = [32, 32], strides = [1, 1]} : vector<128x32xf32> to vector<32x32xf32>
    %123 = arith.addf %119, %122 : vector<32x32xf32>
    %124 = vector.extract_strided_slice %111 {offsets = [192, 0], sizes = [64, 32], strides = [1, 1]} : vector<256x32xf32> to vector<64x32xf32>
    %125 = arith.addf %121, %124 : vector<64x32xf32>
    %c0_52 = arith.constant 0 : index
    %c0_53 = arith.constant 0 : index
    %126 = vector.load %arg15[%c0_52, %c0_53] : memref<32x32xf32, #tpu.memory_space<vmem>>, vector<32x32xf32>
    tpu.vector_store %arg15[%c0_52, %c0_53], %123 {strides = array<i32>} : memref<32x32xf32, #tpu.memory_space<vmem>>, vector<32x32xf32>,
    %c0_54 = arith.constant 0 : index
    %c0_55 = arith.constant 0 : index
    %127 = vector.load %arg16[%c0_54, %c0_55] : memref<64x32xf32, #tpu.memory_space<vmem>>, vector<64x32xf32>
    tpu.vector_store %arg16[%c0_54, %c0_55], %125 {strides = array<i32>} : memref<64x32xf32, #tpu.memory_space<vmem>>, vector<64x32xf32>,
    return
  }
  func.func @transform_0(%arg0: i32) -> (i32, i32) {
    %c0_i32 = arith.constant 0 : i32
    %c0_i32_0 = arith.constant 0 : i32
    %c0_i32_1 = arith.constant 0 : i32
    return %c0_i32, %c0_i32_0 : i32, i32
  }
  func.func @transform_1(%arg0: i32) -> (i32, i32) {
    %c0_i32 = arith.constant 0 : i32
    %c0_i32_0 = arith.constant 0 : i32
    %c0_i32_1 = arith.constant 0 : i32
    return %c0_i32, %c0_i32_0 : i32, i32
  }
  func.func @transform_2(%arg0: i32) -> (i32, i32) {
    %c0_i32 = arith.constant 0 : i32
    %c0_i32_0 = arith.constant 0 : i32
    %c0_i32_1 = arith.constant 0 : i32
    return %c0_i32, %c0_i32_0 : i32, i32
  }
  func.func @transform_3(%arg0: i32) -> (i32, i32) {
    %c0_i32 = arith.constant 0 : i32
    %c0_i32_0 = arith.constant 0 : i32
    %c0_i32_1 = arith.constant 0 : i32
    return %c0_i32, %c0_i32_0 : i32, i32
  }
  func.func @transform_4(%arg0: i32) -> (i32, i32) {
    %c0_i32 = arith.constant 0 : i32
    %c0_i32_0 = arith.constant 0 : i32
    %c0_i32_1 = arith.constant 0 : i32
    return %c0_i32, %c0_i32_0 : i32, i32
  }
  func.func @transform_5(%arg0: i32) -> (i32, i32) {
    %c0_i32 = arith.constant 0 : i32
    %c0_i32_0 = arith.constant 0 : i32
    %c0_i32_1 = arith.constant 0 : i32
    return %c0_i32, %c0_i32_0 : i32, i32
  }
  func.func @transform_6(%arg0: i32) -> (i32, i32) {
    %c0_i32 = arith.constant 0 : i32
    %c0_i32_0 = arith.constant 0 : i32
    %c0_i32_1 = arith.constant 0 : i32
    return %c0_i32, %c0_i32_0 : i32, i32
  }
  func.func @transform_7(%arg0: i32) -> (i32, i32) {
    %c0_i32 = arith.constant 0 : i32
    %c0_i32_0 = arith.constant 0 : i32
    %c0_i32_1 = arith.constant 0 : i32
    return %c0_i32, %c0_i32_0 : i32, i32
  }
  func.func @transform_8(%arg0: i32) -> (i32, i32) {
    %c0_i32 = arith.constant 0 : i32
    %c0_i32_0 = arith.constant 0 : i32
    %c0_i32_1 = arith.constant 0 : i32
    return %c0_i32, %c0_i32_0 : i32, i32
  }
  func.func @transform_9(%arg0: i32) -> (i32, i32) {
    %c0_i32 = arith.constant 0 : i32
    %c0_i32_0 = arith.constant 0 : i32
    %c0_i32_1 = arith.constant 0 : i32
    return %c0_i32, %c0_i32_0 : i32, i32
  }
  func.func @transform_10(%arg0: i32) -> (i32, i32) {
    %c0_i32 = arith.constant 0 : i32
    %c0_i32_0 = arith.constant 0 : i32
    %c0_i32_1 = arith.constant 0 : i32
    return %c0_i32, %c0_i32_0 : i32, i32
  }
  func.func @transform_11(%arg0: i32) -> (i32, i32) {
    %c0_i32 = arith.constant 0 : i32
    %c0_i32_0 = arith.constant 0 : i32
    %c0_i32_1 = arith.constant 0 : i32
    return %c0_i32, %c0_i32_0 : i32, i32
  }
  func.func @transform_12(%arg0: i32) -> (i32, i32) {
    %c0_i32 = arith.constant 0 : i32
    %c0_i32_0 = arith.constant 0 : i32
    %c0_i32_1 = arith.constant 0 : i32
    return %c0_i32, %c0_i32_0 : i32, i32
  }
  func.func @transform_13(%arg0: i32) -> (i32, i32) {
    %c0_i32 = arith.constant 0 : i32
    %c0_i32_0 = arith.constant 0 : i32
    %c0_i32_1 = arith.constant 0 : i32
    return %c0_i32, %c0_i32_0 : i32, i32
  }
  func.func @transform_14(%arg0: i32) -> (i32, i32) {
    %c0_i32 = arith.constant 0 : i32
    %c0_i32_0 = arith.constant 0 : i32
    %c0_i32_1 = arith.constant 0 : i32
    return %c0_i32, %c0_i32_0 : i32, i32
  }
  func.func @transform_15(%arg0: i32) -> (i32, i32) {
    %c0_i32 = arith.constant 0 : i32
    %c0_i32_0 = arith.constant 0 : i32
    %c0_i32_1 = arith.constant 0 : i32
    return %c0_i32, %c0_i32_0 : i32, i32
  }
}

</mosaic_0001>

<bundles_post_ra>
// kernel: a3tgcn2_forward.1
= control target key start
LH: loop header
LB: loop body
LE: loop exit
PB: predicated region body
PF: predicated region fallthrough
CT: control target
= control target key end

     0   :  { %21 = vsyncpa [#allocation3], 0  ;;  %vm109_vm0 = vcmask 130048   ;;  %s4305_s17 = smov 8   ;;  %s7377_s0 = inlined_call_operand.vmem [shape: f32[128,8], index: 0, kind: input, shape index: {}]   ;;  %s7378_s1 = inlined_call_operand.vmem [shape: f32[256,8], index: 1, kind: input, shape index: {}]   ;;  %s7379_s2 = inlined_call_operand.vmem [shape: f32[64,16], index: 2, kind: input, shape index: {}]   ;;  %s7380_s3 = inlined_call_operand.vmem [shape: f32[16,32], index: 3, kind: input, shape index: {}]   ;;  %s7381_s4 = inlined_call_operand.vmem [shape: f32[128,1], index: 4, kind: input, shape index: {}]   ;;  %s7382_s5 = inlined_call_operand.vmem [shape: f32[256,1], index: 5, kind: input, shape index: {}]   ;;  %s7383_s6 = inlined_call_operand.vmem [shape: f32[24,192], index: 6, kind: input, shape index: {}]   ;;  %s7384_s7 = inlined_call_operand.vmem [shape: f32[1,192], index: 7, kind: input, shape index: {}]   ;;  %s7385_s8 = inlined_call_operand.vmem [shape: f32[64,64], index: 8, kind: input, shape index: {}]   ;;  %s7386_s9 = inlined_call_operand.vmem [shape: f32[1,64], index: 9, kind: input, shape index: {}]   ;;  %s7387_s10 = inlined_call_operand.vmem [shape: f32[64,64], index: 10, kind: input, shape index: {}]   ;;  %s7388_s11 = inlined_call_operand.vmem [shape: f32[1,64], index: 11, kind: input, shape index: {}]   ;;  %s7389_s12 = inlined_call_operand.vmem [shape: f32[64,64], index: 12, kind: input, shape index: {}]   ;;  %s7390_s13 = inlined_call_operand.vmem [shape: f32[1,64], index: 13, kind: input, shape index: {}]   ;;  %s7391_s14 = inlined_call_operand.hbm [shape: f32[32,32], index: 14, kind: output, shape index: {0}]   ;;  %s7392_s15 = inlined_call_operand.hbm [shape: f32[64,32], index: 15, kind: output, shape index: {1}]  }
   0x1   :  { %v52_v0 = vld [vmem:[%s7377_s0 + $0x8] sm:$0xff]  ;;  %v51_v1 = vld [vmem:[%s7377_s0] sm:$0xff]  ;;  %v54_v3 = vld [vmem:[%s7377_s0 + $0x18] sm:$0xff] }
   0x2   :  { %148 = vmatpush.msra.mxu0 %v52_v0  ;;  %v4402_v2 = vld [vmem:[%s7379_s2] sm:$0xff]  ;;  %v53_v4 = vld [vmem:[%s7377_s0 + $0x10] sm:$0xff]  ;;  %189 = vmatpush.msra.mxu1 %v54_v3  ;;  %v68_v6 = vld [vmem:[%s7378_s1 + $0x8] sm:$0xff] }
   0x3   :  { %v67_v5 = vld [vmem:[%s7378_s1] sm:$0xff]  ;;  %v56_v7 = vld [vmem:[%s7377_s0 + $0x28] sm:$0xff]  ;;  %496 = vrot.lane.b32.xlu1 %v68_v6, %s4305_s17 }
   0x4   :  { %149 = vmatpush.msra.mxu0 %v51_v1  ;;  %494 = vrot.lane.b32.xlu0 %v67_v5, %s4305_s17 }
   0x5   :  { %3689 = vmatmul.msk.f32.vlgmr.msra.gmra.mxu0 %vm109_vm0, %v4402_v2  ;;  %190 = vmatpush.msra.mxu1 %v53_v4 }
   0x6   :  { %3697 = vmatmul.msk.f32.vlgmr.msra.gmra.mxu1 %vm109_vm0, %v4402_v2 }
   0x7   :  { %22 = vsyncpa [#allocation5], 0  ;;  %230 = vmatpush.msrb.mxu0 %v56_v7  ;;  %3945 = vmatpush.msra.mxu2 %v56_v7  ;;  %v4428_v8 = vld [vmem:[%s7379_s2 + $0x8] sm:$0xff]  ;;  %v4437_v9 = vld [vmem:[%s7379_s2 + $0x10] sm:$0xff]  ;;  %vm718_vm1 = vcmask 64512   ;;  %vm795_vm2 = vcmask 195584  }
   0x8   :  { %v69_v10 = vld [vmem:[%s7378_s1 + $0x10] sm:$0xff]  ;;  %v4450_v11 = vld [vmem:[%s7379_s2 + $0x18] sm:$0xff]  ;;  %v55_v12 = vld [vmem:[%s7377_s0 + $0x20] sm:$0xff]  ;;  %vm1342_vm3 = vcmask 261120   ;;  %vm1545_vm4 = vcmask 523264   ;;  %s3659_s23 = sshll.u32 %s7391_s14, 4  ;;  %s3660_s23 = int_to_ptr.hbm [resolvable:$true] %s3659_s23 }
   0x9   :  { %498 = vrot.lane.b32.xlu2 %v69_v10, %s4305_s17  ;;  %v4460_v13 = vld [vmem:[%s7379_s2 + $0x20] sm:$0xff]  ;;  %3946 = vmatpush.msra.mxu2 %v55_v12  ;;  %v58_v14 = vld [vmem:[%s7377_s0 + $0x38] sm:$0xff]  ;;  %v4474_v15 = vld [vmem:[%s7379_s2 + $0x28] sm:$0xff]  ;;  %s4310_s24 = smov [#allocation2]   ;;  %s3672_s14 = sshll.u32 %s7392_s15, 4  ;;  %s3673_s14 = int_to_ptr.hbm [resolvable:$true] %s3672_s14 }
   0xa   :  { %3709 = vmatmul.msk.f32.vlgmr.msra.gmra.mxu2 %vm109_vm0, %v4460_v13  ;;  %231 = vmatpush.msrb.mxu0 %v55_v12  ;;  %v57_v16 = vld [vmem:[%s7377_s0 + $0x30] sm:$0xff]  ;;  %v4501_v18 = vld [vmem:[%s7379_s2 + $0x38] sm:$0xff]  ;;  %v60_v19 = vld [vmem:[%s7377_s0 + $0x48] sm:$0xff]  ;;  %s3657_s25 = sshll.u32 %s4310_s24, 4  ;;  %s4312_s27 = smov 128   ;;  %s3658_s25 = int_to_ptr.vmem [resolvable:$true] %s3657_s25 }
   0xb   :  { %3947 = vmatpush.msra.mxu3 %v58_v14  ;;  %271 = vmatpush.msrb.mxu1 %v58_v14  ;;  %v4488_v17 = vld [vmem:[%s7379_s2 + $0x30] sm:$0xff]  ;;  %v59_v20 = vld [vmem:[%s7377_s0 + $0x40] sm:$0xff]  ;;  %v62_v21 = vld [vmem:[%s7377_s0 + $0x58] sm:$0xff] }
   0xc   :  { %312 = vmatpush.msra.mxu0 %v60_v19  ;;  %v61_v22 = vld [vmem:[%s7377_s0 + $0x50] sm:$0xff]  ;;  %v64_v23 = vld [vmem:[%s7377_s0 + $0x68] sm:$0xff]  ;;  %v63_v24 = vld [vmem:[%s7377_s0 + $0x60] sm:$0xff] }
   0xd   :  { %3690 = vmatmul.msk.f32.gmra.mxu0 %vm109_vm0, %v4428_v8  ;;  %3948 = vmatpush.msra.mxu3 %v57_v16  ;;  %v66_v25 = vld [vmem:[%s7377_s0 + $0x78] sm:$0xff]  ;;  %v65_v26 = vld [vmem:[%s7377_s0 + $0x70] sm:$0xff]  ;;  %s4306_s0 = smov 16   ;;  %v71_v43 = vld [vmem:[%s7378_s1 + $0x20] sm:$0xff] }
   0xe   :  { %3698 = vmatmul.msk.f32.gmra.mxu1 %vm109_vm0, %v4428_v8  ;;  %3717 = vmatmul.msk.f32.vlgmr.msra.gmra.mxu3 %vm109_vm0, %v4460_v13  ;;  %v70_v37 = vld [vmem:[%s7378_s1 + $0x18] sm:$0xff]  ;;  %v73_v42 = vld [vmem:[%s7378_s1 + $0x30] sm:$0xff]  ;;  %v787_v47 = vld [vmem:[%s7383_s6 + $0x20] sm:$0xff] }
   0xf   :  { %272 = vmatpush.msrb.mxu1 %v57_v16  ;;  %313 = vmatpush.msra.mxu0 %v59_v20  ;;  %v72_v48 = vld [vmem:[%s7378_s1 + $0x28] sm:$0xff]  ;;  %v74_v53 = vld [vmem:[%s7378_s1 + $0x38] sm:$0xff]  ;;  %v75_v57 = vld [vmem:[%s7378_s1 + $0x40] sm:$0xff] }
  0x10   :  { %394 = vmatpush.msrb.mxu2 %v64_v23  ;;  %435 = vmatpush.msrb.mxu3 %v66_v25  ;;  %v76_v52 = vld [vmem:[%s7378_s1 + $0x48] sm:$0xff]  ;;  %v785_v60 = vld [vmem:[%s7383_s6 + $0x10] sm:$0xff]  ;;  %v79_v62 = vld [vmem:[%s7378_s1 + $0x60] sm:$0xff] }
  0x11   :  { %353 = vmatpush.msra.mxu1 %v62_v21  ;;  %v77_v63 = vld [vmem:[%s7378_s1 + $0x50] sm:$0xff]  ;;  %v78_v4 = vld [vmem:[%s7378_s1 + $0x58] sm:$0xff]  ;;  %v783_v7 = vld [vmem:[%s7383_s6] sm:$0xff] }
  0x12   :  { %3710 = vmatmul.msk.f32.gmra.mxu2 %vm109_vm0, %v4474_v15  ;;  %436 = vmatpush.msrb.mxu3 %v65_v26  ;;  %v786_v16 = vld [vmem:[%s7383_s6 + $0x18] sm:$0xff]  ;;  %v83_v19 = vld [vmem:[%s7378_s1 + $0x80] sm:$0xff] }
  0x13   :  { %354 = vmatpush.msra.mxu1 %v61_v22  ;;  %395 = vmatpush.msrb.mxu2 %v63_v24  ;;  %v84_v24 = vld [vmem:[%s7378_s1 + $0x88] sm:$0xff] }
  0x15   :  { %3691 = vmatmul.msk.f32.gmra.mxu0 %vm109_vm0, %v4437_v9 }
  0x16   :  { %3699 = vmatmul.msk.f32.gmra.mxu1 %vm109_vm0, %v4437_v9  ;;  %3718 = vmatmul.msk.f32.gmra.mxu3 %vm109_vm0, %v4474_v15 }
  0x1a   :  { %3711 = vmatmul.msk.f32.gmra.mxu2 %vm109_vm0, %v4488_v17 }
  0x1d   :  { %3692 = vmatmul.msk.f32.gmra.mxu0 %vm109_vm0, %v4450_v11 }
  0x1e   :  { %3700 = vmatmul.msk.f32.gmra.mxu1 %vm109_vm0, %v4450_v11  ;;  %3719 = vmatmul.msk.f32.gmra.mxu3 %vm109_vm0, %v4488_v17 }
  0x22   :  { %3712 = vmatmul.msk.f32.gmra.mxu2 %vm109_vm0, %v4501_v18 }
  0x25   :  { %3693 = vmatmul.msk.f32.gmra.mxu0 %vm109_vm0, %v4460_v13 }
  0x26   :  { %3701 = vmatmul.msk.f32.gmra.mxu1 %vm109_vm0, %v4460_v13  ;;  %3720 = vmatmul.msk.f32.gmra.mxu3 %vm109_vm0, %v4501_v18 }
  0x2a   :  { %3737 = vmatmul.msk.f32.vlgmr.msrb.gmra.mxu2 %vm109_vm0, %v4402_v2 }
  0x2d   :  { %3694 = vmatmul.msk.f32.gmra.mxu0 %vm109_vm0, %v4474_v15 }
  0x2e   :  { %3702 = vmatmul.msk.f32.gmra.mxu1 %vm109_vm0, %v4474_v15  ;;  %3745 = vmatmul.msk.f32.vlgmr.msrb.gmra.mxu3 %vm109_vm0, %v4402_v2 }
  0x32   :  { %3738 = vmatmul.msk.f32.gmra.mxu2 %vm109_vm0, %v4428_v8 }
  0x35   :  { %3695 = vmatmul.msk.f32.gmra.mxu0 %vm109_vm0, %v4488_v17 }
  0x36   :  { %3703 = vmatmul.msk.f32.gmra.mxu1 %vm109_vm0, %v4488_v17  ;;  %3746 = vmatmul.msk.f32.gmra.mxu3 %vm109_vm0, %v4428_v8 }
  0x3a   :  { %3739 = vmatmul.msk.f32.gmra.mxu2 %vm109_vm0, %v4437_v9 }
  0x3d   :  { %3696 = vmatmul.msk.f32.gmra.mxu0 %vm109_vm0, %v4501_v18 }
  0x3e   :  { %3704 = vmatmul.msk.f32.gmra.mxu1 %vm109_vm0, %v4501_v18  ;;  %3747 = vmatmul.msk.f32.gmra.mxu3 %vm109_vm0, %v4437_v9 }
  0x42   :  { %3740 = vmatmul.msk.f32.gmra.mxu2 %vm109_vm0, %v4450_v11 }
  0x45   :  { %3705 = vmatmul.msk.f32.vlgmr.msrb.gmra.mxu0 %vm109_vm0, %v4402_v2 }
  0x46   :  { %3713 = vmatmul.msk.f32.vlgmr.msrb.gmra.mxu1 %vm109_vm0, %v4402_v2  ;;  %3748 = vmatmul.msk.f32.gmra.mxu3 %vm109_vm0, %v4450_v11 }
  0x47   :  { %905 = vmatpush.msrb.mxu0 %v787_v47 }
  0x49   :  { %906 = vmatpush.msrb.mxu0 %v785_v60 }
  0x4a   :  { %3741 = vmatmul.msk.f32.gmra.mxu2 %vm109_vm0, %v4460_v13 }
  0x4b   :  { %907 = vmatpush.msrb.mxu0 %v783_v7 }
  0x4d   :  { %3706 = vmatmul.msk.f32.gmra.mxu0 %vm109_vm0, %v4428_v8 }
  0x4e   :  { %3714 = vmatmul.msk.f32.gmra.mxu1 %vm109_vm0, %v4428_v8  ;;  %3749 = vmatmul.msk.f32.gmra.mxu3 %vm109_vm0, %v4460_v13 }
  0x52   :  { %3742 = vmatmul.msk.f32.gmra.mxu2 %vm109_vm0, %v4474_v15 }
  0x55   :  { %3707 = vmatmul.msk.f32.gmra.mxu0 %vm109_vm0, %v4437_v9 }
  0x56   :  { %3715 = vmatmul.msk.f32.gmra.mxu1 %vm109_vm0, %v4437_v9  ;;  %3750 = vmatmul.msk.f32.gmra.mxu3 %vm109_vm0, %v4474_v15 }
  0x5a   :  { %3743 = vmatmul.msk.f32.gmra.mxu2 %vm109_vm0, %v4488_v17 }
  0x5d   :  { %3708 = vmatmul.msk.f32.gmra.mxu0 %vm109_vm0, %v4450_v11 }
  0x5e   :  { %3716 = vmatmul.msk.f32.gmra.mxu1 %vm109_vm0, %v4450_v11  ;;  %3751 = vmatmul.msk.f32.gmra.mxu3 %vm109_vm0, %v4488_v17 }
  0x62   :  { %3744 = vmatmul.msk.f32.gmra.mxu2 %vm109_vm0, %v4501_v18 }
  0x65   :  { %3721 = vmatmul.msk.f32.vlgmr.msra.gmra.mxu0 %vm109_vm0, %v4402_v2 }
  0x66   :  { %3729 = vmatmul.msk.f32.vlgmr.msra.gmra.mxu1 %vm109_vm0, %v4402_v2  ;;  %3752 = vmatmul.msk.f32.gmra.mxu3 %vm109_vm0, %v4501_v18 }
  0x6d   :  { %3722 = vmatmul.msk.f32.gmra.mxu0 %vm109_vm0, %v4428_v8 }
  0x6e   :  { %3730 = vmatmul.msk.f32.gmra.mxu1 %vm109_vm0, %v4428_v8  ;;  %v82_v8 = vld [vmem:[%s7378_s1 + $0x78] sm:$0xff] }
  0x75   :  { %3723 = vmatmul.msk.f32.gmra.mxu0 %vm109_vm0, %v4437_v9 }
  0x76   :  { %3731 = vmatmul.msk.f32.gmra.mxu1 %vm109_vm0, %v4437_v9  ;;  %v80_v9 = vld [vmem:[%s7378_s1 + $0x68] sm:$0xff] }
  0x7d   :  { %3724 = vmatmul.msk.f32.gmra.mxu0 %vm109_vm0, %v4450_v11 }
  0x7e   :  { %3732 = vmatmul.msk.f32.gmra.mxu1 %vm109_vm0, %v4450_v11 }
  0x82   :  { %v4583_v27 = vpop.f32.mrf.mxu0 }
  0x83   :  { %v4585_v28 = vpop.f32.mrf.mxu1 }
  0x85   :  { %3725 = vmatmul.msk.f32.gmra.mxu0 %vm109_vm0, %v4460_v13 }
  0x86   :  { %3733 = vmatmul.msk.f32.gmra.mxu1 %vm109_vm0, %v4460_v13  ;;  %v81_v13 = vld [vmem:[%s7378_s1 + $0x70] sm:$0xff] }
  0x8a   :  { %v4595_v29 = vpop.f32.mrf.mxu0 }
  0x8b   :  { %v4597_v30 = vpop.f32.mrf.mxu1 }
  0x8d   :  { %3726 = vmatmul.msk.f32.gmra.mxu0 %vm109_vm0, %v4474_v15  ;;  %v245_v46 = vpop.f32.mrf.mxu2 }
  0x8e   :  { %3734 = vmatmul.msk.f32.gmra.mxu1 %vm109_vm0, %v4474_v15  ;;  %v788_v15 = vld [vmem:[%s7383_s6 + $0x28] sm:$0xff] }
  0x8f   :  { %1018 = vmatpush.msrb.mxu1 %v788_v15 }
  0x91   :  { %v286_v61 = vpop.f32.mrf.mxu3  ;;  %1019 = vmatpush.msrb.mxu1 %v786_v16 }
  0x92   :  { %v4607_v31 = vpop.f32.mrf.mxu0 }
  0x93   :  { %v4609_v32 = vpop.f32.mrf.mxu1 }
  0x95   :  { %3727 = vmatmul.msk.f32.gmra.mxu0 %vm109_vm0, %v4488_v17  ;;  %v248_v51 = vpop.f32.mrf.mxu2 }
  0x96   :  { %3735 = vmatmul.msk.f32.gmra.mxu1 %vm109_vm0, %v4488_v17 }
  0x99   :  { %v289_v3 = vpop.f32.mrf.mxu3 }
  0x9a   :  { %v4619_v33 = vpop.f32.mrf.mxu0 }
  0x9b   :  { %v4621_v34 = vpop.f32.mrf.mxu1 }
  0x9d   :  { %3728 = vmatmul.msk.f32.gmra.mxu0 %vm109_vm0, %v4501_v18  ;;  %v251_v56 = vpop.f32.mrf.mxu2 }
  0x9e   :  { %3736 = vmatmul.msk.f32.gmra.mxu1 %vm109_vm0, %v4501_v18  ;;  %v784_v18 = vld [vmem:[%s7383_s6 + $0x8] sm:$0xff] }
  0x9f   :  { %1020 = vmatpush.msrb.mxu1 %v784_v18  ;;  %v92_v18 = vld [vmem:[%s7378_s1 + $0xc8] sm:$0xff] }
  0xa1   :  { %v292_v12 = vpop.f32.mrf.mxu3 }
  0xa2   :  { %v163_v35 = vpop.f32.mrf.mxu0 }
  0xa3   :  { %622 = vrot.lane.b32.xlu0 %v163_v35, %s4306_s0  ;;  %v204_v36 = vpop.f32.mrf.mxu1  ;;  %v85_v35 = vld [vmem:[%s7378_s1 + $0x90] sm:$0xff] }
  0xa5   :  { %v254_v2 = vpop.f32.mrf.mxu2 }
  0xa9   :  { %v295_v20 = vpop.f32.mrf.mxu3 }
  0xaa   :  { %v166_v38 = vpop.f32.mrf.mxu0 }
  0xab   :  { %500 = vrot.lane.b32.xlu0 %v70_v37, %s4305_s17  ;;  %624 = vrot.lane.b32.xlu1 %v166_v38, %s4306_s0  ;;  %v207_v39 = vpop.f32.mrf.mxu1  ;;  %v495_v38 = vpop.permute.xlu0 %494 }
  0xad   :  { %v4755_v22 = vpop.f32.mrf.mxu2 }
  0xb2   :  { %v169_v40 = vpop.f32.mrf.mxu0 }
  0xb3   :  { %630 = vrot.lane.b32.xlu0 %v204_v36, %s4306_s0  ;;  %626 = vrot.lane.b32.xlu2 %v169_v40, %s4306_s0  ;;  %v210_v41 = vpop.f32.mrf.mxu1  ;;  %v86_v40 = vld [vmem:[%s7378_s1 + $0x98] sm:$0xff] }
  0xb5   :  { %v4766_v26 = vpop.f32.mrf.mxu2 }
  0xba   :  { %v172_v44 = vpop.f32.mrf.mxu0 }
  0xbb   :  { %506 = vrot.lane.b32.xlu0 %v73_v42, %s4305_s17  ;;  %502 = vrot.lane.b32.xlu2 %v71_v43, %s4305_s17  ;;  %v213_v45 = vpop.f32.mrf.mxu1  ;;  %v4780_v42 = vpop.f32.mrf.mxu3 }
  0xbc   :  { %628 = vrot.lane.b32.xlu1 %v172_v44, %s4306_s0  ;;  %v719_v44 = vsel %vm718_vm1, %v4583_v27, %v495_v38 }
  0xc2   :  { %v4660_v49 = vpop.f32.mrf.mxu0 }
  0xc3   :  { %636 = vrot.lane.b32.xlu0 %v213_v45, %s4306_s0  ;;  %632 = vrot.lane.b32.xlu2 %v207_v39, %s4306_s0  ;;  %v4664_v50 = vpop.f32.mrf.mxu1  ;;  %v4773_v39 = vpop.f32.mrf.mxu2 }
  0xc4   :  { %504 = vrot.lane.b32.xlu1 %v72_v48, %s4305_s17  ;;  %v497_v45 = vpop.permute.xlu1 %496  ;;  %v87_v48 = vld [vmem:[%s7378_s1 + $0xa0] sm:$0xff] }
  0xc5   :  { %v720_v27 = vsel %vm718_vm1, %v4595_v29, %v497_v45  ;;  %v95_v45 = vld [vmem:[%s7378_s1 + $0xe0] sm:$0xff] }
  0xca   :  { %v4673_v54 = vpop.f32.mrf.mxu0 }
  0xcb   :  { %512 = vrot.lane.b32.xlu0 %v76_v52, %s4305_s17  ;;  %508 = vrot.lane.b32.xlu2 %v74_v53, %s4305_s17  ;;  %v4677_v55 = vpop.f32.mrf.mxu1  ;;  %v499_v53 = vpop.permute.xlu2 %498 }
  0xcc   :  { %634 = vrot.lane.b32.xlu1 %v210_v41, %s4306_s0 }
  0xd2   :  { %v4683_v58 = vpop.f32.mrf.mxu0 }
  0xd3   :  { %642 = vrot.lane.b32.xlu0 %v251_v56, %s4306_s0  ;;  %638 = vrot.lane.b32.xlu2 %v245_v46, %s4306_s0  ;;  %v4687_v59 = vpop.f32.mrf.mxu1 }
  0xd4   :  { %510 = vrot.lane.b32.xlu1 %v75_v57, %s4305_s17  ;;  %v4797_v57 = vpop.f32.mrf.mxu3 }
  0xda   :  { %v4699_v0 = vpop.f32.mrf.mxu0 }
  0xdb   :  { %518 = vrot.lane.b32.xlu0 %v79_v62, %s4305_s17  ;;  %514 = vrot.lane.b32.xlu2 %v77_v63, %s4305_s17  ;;  %v4703_v1 = vpop.f32.mrf.mxu1  ;;  %v89_v62 = vld [vmem:[%s7378_s1 + $0xb0] sm:$0xff]  ;;  %v88_v63 = vld [vmem:[%s7378_s1 + $0xa8] sm:$0xff] }
  0xdc   :  { %640 = vrot.lane.b32.xlu1 %v248_v51, %s4306_s0  ;;  %v4790_v51 = vpop.f32.mrf.mxu2  ;;  %v4816_v7 = vpop.f32.mrf.mxu3 }
  0xe2   :  { %v4709_v5 = vpop.f32.mrf.mxu0 }
  0xe3   :  { %648 = vrot.lane.b32.xlu0 %v289_v3, %s4306_s0  ;;  %644 = vrot.lane.b32.xlu2 %v254_v2, %s4306_s0  ;;  %v4713_v6 = vpop.f32.mrf.mxu1  ;;  %v721_v3 = vsel %vm718_vm1, %v4607_v31, %v499_v53 }
  0xe4   :  { %516 = vrot.lane.b32.xlu1 %v78_v4, %s4305_s17  ;;  %v409_v2 = vpop.f32.mrf.mxu2 }
  0xea   :  { %v4725_v10 = vpop.f32.mrf.mxu0 }
  0xeb   :  { %524 = vrot.lane.b32.xlu0 %v82_v8, %s4305_s17  ;;  %520 = vrot.lane.b32.xlu2 %v80_v9, %s4305_s17  ;;  %v4730_v11 = vpop.f32.mrf.mxu1  ;;  %v90_v9 = vld [vmem:[%s7378_s1 + $0xb8] sm:$0xff] }
  0xec   :  { %646 = vrot.lane.b32.xlu1 %v286_v61, %s4306_s0  ;;  %v412_v31 = vpop.f32.mrf.mxu2 }
  0xf2   :  { %v4735_v14 = vpop.f32.mrf.mxu0 }
  0xf3   :  { %650 = vrot.lane.b32.xlu2 %v292_v12, %s4306_s0  ;;  %v4745_v17 = vpop.f32.mrf.mxu1 }
  0xf4   :  { %522 = vrot.lane.b32.xlu1 %v81_v13, %s4305_s17 }
  0xfa   :  { %v4753_v21 = vpop.f32.mrf.mxu0 }
  0xfb   :  { %526 = vrot.lane.b32.xlu2 %v83_v19, %s4305_s17  ;;  %v4759_v23 = vpop.f32.mrf.mxu1  ;;  %v91_v19 = vld [vmem:[%s7378_s1 + $0xc0] sm:$0xff] }
  0xfc   :  { %652 = vrot.lane.b32.xlu1 %v295_v20, %s4306_s0  ;;  %v4835_v20 = vpop.f32.mrf.mxu3 }
 0x102   :  { %v327_v25 = vpop.f32.mrf.mxu0 }
 0x103   :  { %654 = vrot.lane.b32.xlu0 %v327_v25, %s4306_s0  ;;  %v368_v37 = vpop.f32.mrf.mxu1 }
 0x104   :  { %528 = vrot.lane.b32.xlu1 %v84_v24, %s4305_s17 }
 0x10a   :  { %v330_v36 = vpop.f32.mrf.mxu0 }
 0x10b   :  { %530 = vrot.lane.b32.xlu0 %v85_v35, %s4305_s17  ;;  %656 = vrot.lane.b32.xlu2 %v330_v36, %s4306_s0  ;;  %v371_v43 = vpop.f32.mrf.mxu1  ;;  %v415_v35 = vpop.f32.mrf.mxu2 }
 0x10d   :  { %v627_v29 = vpop.permute.xlu2 %626 }
 0x10e   :  { %v753_v4 = vsel %vm109_vm0, %v721_v3, %v627_v29  ;;  %v97_v29 = vld [vmem:[%s7378_s1 + $0xf0] sm:$0xff] }
 0x112   :  { %v333_v41 = vpop.f32.mrf.mxu0 }
 0x113   :  { %532 = vrot.lane.b32.xlu2 %v86_v40, %s4305_s17  ;;  %658 = vrot.lane.b32.xlu1 %v333_v41, %s4306_s0  ;;  %v374_v61 = vpop.f32.mrf.mxu1  ;;  %v450_v40 = vpop.f32.mrf.mxu3 }
 0x115   :  { %v623_v46 = vpop.permute.xlu0 %622  ;;  %v503_v24 = vpop.permute.xlu2 %502 }
 0x116   :  { %v751_v47 = vsel %vm109_vm0, %v719_v44, %v623_v46  ;;  %v723_v25 = vsel %vm718_vm1, %v4585_v28, %v503_v24  ;;  %v418_v44 = vpop.f32.mrf.mxu2  ;;  %v94_v46 = vld [vmem:[%s7378_s1 + $0xd8] sm:$0xff] }
 0x117   :  { %3753 = vmatmul.msk.f32.vlgmr.msrb.gmra.mxu0 %vm795_vm2, %v751_v47  ;;  %3785 = vmatmul.msk.f32.vlgmr.msrb.gmra.mxu1 %vm795_vm2, %v751_v47 }
 0x11a   :  { %v336_v52 = vpop.f32.mrf.mxu0 }
 0x11b   :  { %662 = vrot.lane.b32.xlu2 %v368_v37, %s4306_s0  ;;  %534 = vrot.lane.b32.xlu1 %v87_v48, %s4305_s17  ;;  %v377_v8 = vpop.f32.mrf.mxu1  ;;  %v93_v37 = vld [vmem:[%s7378_s1 + $0xd0] sm:$0xff]  ;;  %v453_v48 = vpop.f32.mrf.mxu3 }
 0x11c   :  { %660 = vrot.lane.b32.xlu0 %v336_v52, %s4306_s0 }
 0x11d   :  { %v625_v56 = vpop.permute.xlu1 %624  ;;  %v501_v12 = vpop.permute.xlu0 %500 }
 0x11e   :  { %v752_v60 = vsel %vm109_vm0, %v720_v27, %v625_v56  ;;  %v722_v13 = vsel %vm718_vm1, %v4619_v33, %v501_v12  ;;  %v633_v41 = vpop.permute.xlu2 %632  ;;  %v96_v27 = vld [vmem:[%s7378_s1 + $0xe8] sm:$0xff] }
 0x11f   :  { %3754 = vmatmul.msk.f32.gmra.mxu0 %vm795_vm2, %v752_v60  ;;  %3786 = vmatmul.msk.f32.gmra.mxu1 %vm795_vm2, %v752_v60 }
 0x123   :  { %538 = vrot.lane.b32.xlu2 %v89_v62, %s4305_s17  ;;  %664 = vrot.lane.b32.xlu1 %v371_v43, %s4306_s0  ;;  %v456_v62 = vpop.f32.mrf.mxu3 }
 0x124   :  { %536 = vrot.lane.b32.xlu0 %v88_v63, %s4305_s17  ;;  %v98_v63 = vld [vmem:[%s7378_s1 + $0xf8] sm:$0xff] }
 0x125   :  { %v631_v33 = vpop.permute.xlu0 %630 }
 0x126   :  { %v755_v36 = vsel %vm109_vm0, %v723_v25, %v631_v33  ;;  %v509_v56 = vpop.permute.xlu2 %508 }
 0x127   :  { %3755 = vmatmul.msk.f32.gmra.mxu0 %vm795_vm2, %v753_v4  ;;  %3787 = vmatmul.msk.f32.gmra.mxu1 %vm795_vm2, %v753_v4 }
 0x12b   :  { %668 = vrot.lane.b32.xlu2 %v377_v8, %s4306_s0  ;;  %540 = vrot.lane.b32.xlu1 %v90_v9, %s4305_s17  ;;  %v459_v8 = vpop.f32.mrf.mxu3 }
 0x12c   :  { %666 = vrot.lane.b32.xlu0 %v374_v61, %s4306_s0 }
 0x12d   :  { %v507_v47 = vpop.permute.xlu0 %506 }
 0x12e   :  { %v629_v15 = vpop.permute.xlu1 %628  ;;  %v725_v52 = vsel %vm718_vm1, %v4609_v32, %v507_v47  ;;  %v726_v32 = vsel %vm718_vm1, %v4621_v34, %v509_v56  ;;  %v639_v3 = vpop.permute.xlu2 %638 }
 0x12f   :  { %v754_v16 = vsel %vm109_vm0, %v722_v13, %v629_v15 }
 0x130   :  { %3756 = vmatmul.msk.f32.gmra.mxu0 %vm795_vm2, %v754_v16  ;;  %3788 = vmatmul.msk.f32.gmra.mxu1 %vm795_vm2, %v754_v16 }
 0x133   :  { %544 = vrot.lane.b32.xlu2 %v92_v18, %s4305_s17  ;;  %670 = vrot.lane.b32.xlu1 %v409_v2, %s4306_s0 }
 0x134   :  { %542 = vrot.lane.b32.xlu0 %v91_v19, %s4305_s17 }
 0x135   :  { %v637_v60 = vpop.permute.xlu0 %636 }
 0x136   :  { %v505_v38 = vpop.permute.xlu1 %504  ;;  %v758_v61 = vsel %vm109_vm0, %v726_v32, %v637_v60 }
 0x137   :  { %v724_v28 = vsel %vm718_vm1, %v4597_v30, %v505_v38 }
 0x138   :  { %3757 = vmatmul.msk.f32.gmra.mxu0 %vm795_vm2, %v755_v36  ;;  %3789 = vmatmul.msk.f32.gmra.mxu1 %vm795_vm2, %v755_v36  ;;  %v756_v43 = vsel %vm109_vm0, %v724_v28, %v633_v41 }
 0x13b   :  { %674 = vrot.lane.b32.xlu2 %v415_v35, %s4306_s0  ;;  %546 = vrot.lane.b32.xlu1 %v93_v37, %s4305_s17 }
 0x13c   :  { %672 = vrot.lane.b32.xlu0 %v412_v31, %s4306_s0 }
 0x13d   :  { %v513_v9 = vpop.permute.xlu0 %512 }
 0x13e   :  { %v635_v30 = vpop.permute.xlu1 %634  ;;  %v728_v31 = vsel %vm718_vm1, %v4673_v54, %v513_v9 }
 0x13f   :  { %v757_v53 = vsel %vm109_vm0, %v725_v52, %v635_v30 }
 0x140   :  { %3758 = vmatmul.msk.f32.gmra.mxu0 %vm795_vm2, %v756_v43  ;;  %3790 = vmatmul.msk.f32.gmra.mxu1 %vm795_vm2, %v756_v43 }
 0x143   :  { %550 = vrot.lane.b32.xlu2 %v95_v45, %s4305_s17  ;;  %676 = vrot.lane.b32.xlu1 %v418_v44, %s4306_s0 }
 0x144   :  { %548 = vrot.lane.b32.xlu0 %v94_v46, %s4305_s17 }
 0x145   :  { %v643_v15 = vpop.permute.xlu0 %642 }
 0x146   :  { %v511_v2 = vpop.permute.xlu1 %510 }
 0x147   :  { %v727_v34 = vsel %vm718_vm1, %v4660_v49, %v511_v2  ;;  %v515_v49 = vpop.permute.xlu2 %514 }
 0x148   :  { %3759 = vmatmul.msk.f32.gmra.mxu0 %vm795_vm2, %v757_v53  ;;  %3791 = vmatmul.msk.f32.gmra.mxu1 %vm795_vm2, %v757_v53  ;;  %v759_v4 = vsel %vm109_vm0, %v727_v34, %v639_v3  ;;  %v729_v16 = vsel %vm718_vm1, %v4683_v58, %v515_v49  ;;  %v4937_v53 = vld [vmem:[%s7384_s7] sm:$0x3]  ;;  %s4307_s7 = smov 64  }
 0x149   :  { %v761_v18 = vsel %vm109_vm0, %v729_v16, %v643_v15 }
 0x14b   :  { %680 = vrot.lane.b32.xlu2 %v453_v48, %s4306_s0  ;;  %552 = vrot.lane.b32.xlu1 %v96_v27, %s4305_s17  ;;  %v4942_v27 = vperm.slane %v4937_v53, 0 }
 0x14c   :  { %678 = vrot.lane.b32.xlu0 %v450_v40, %s4306_s0 }
 0x14d   :  { %v519_v25 = vpop.permute.xlu0 %518 }
 0x14e   :  { %v641_v12 = vpop.permute.xlu1 %640  ;;  %v731_v58 = vsel %vm718_vm1, %v4664_v50, %v519_v25 }
 0x14f   :  { %v760_v13 = vsel %vm109_vm0, %v728_v31, %v641_v12  ;;  %v645_v24 = vpop.permute.xlu2 %644 }
 0x150   :  { %3760 = vmatmul.msk.f32.gmra.mxu0 %vm795_vm2, %v758_v61  ;;  %3792 = vmatmul.msk.f32.gmra.mxu1 %vm795_vm2, %v758_v61 }
 0x153   :  { %556 = vrot.lane.b32.xlu2 %v98_v63, %s4305_s17  ;;  %682 = vrot.lane.b32.xlu1 %v456_v62, %s4306_s0 }
 0x154   :  { %554 = vrot.lane.b32.xlu0 %v97_v29, %s4305_s17 }
 0x156   :  { %v517_v19 = vpop.permute.xlu1 %516 }
 0x157   :  { %v730_v54 = vsel %vm718_vm1, %v4699_v0, %v517_v19  ;;  %v521_v37 = vpop.permute.xlu2 %520  ;;  %v649_v0 = vpop.permute.xlu0 %648 }
 0x158   :  { %3761 = vmatmul.msk.f32.gmra.mxu0 %vm795_vm2, %v759_v4  ;;  %3793 = vmatmul.msk.f32.gmra.mxu1 %vm795_vm2, %v759_v4  ;;  %v762_v33 = vsel %vm109_vm0, %v730_v54, %v645_v24  ;;  %v732_v38 = vsel %vm718_vm1, %v4677_v55, %v521_v37 }
 0x159   :  { %v764_v40 = vsel %vm109_vm0, %v732_v38, %v649_v0 }
 0x15c   :  { %684 = vrot.lane.b32.xlu0 %v459_v8, %s4306_s0 }
 0x15e   :  { %v647_v35 = vpop.permute.xlu1 %646 }
 0x15f   :  { %v763_v36 = vsel %vm109_vm0, %v731_v58, %v647_v35  ;;  %v651_v41 = vpop.permute.xlu2 %650  ;;  %v525_v44 = vpop.permute.xlu0 %524 }
 0x160   :  { %3762 = vmatmul.msk.f32.gmra.mxu0 %vm795_vm2, %v760_v13  ;;  %3794 = vmatmul.msk.f32.gmra.mxu1 %vm795_vm2, %v760_v13  ;;  %v734_v55 = vsel %vm718_vm1, %v4703_v1, %v525_v44 }
 0x166   :  { %v523_v28 = vpop.permute.xlu1 %522 }
 0x167   :  { %v733_v50 = vsel %vm718_vm1, %v4687_v59, %v523_v28  ;;  %v527_v47 = vpop.permute.xlu2 %526 }
 0x168   :  { %3763 = vmatmul.msk.f32.gmra.mxu0 %vm795_vm2, %v761_v18  ;;  %3795 = vmatmul.msk.f32.gmra.mxu1 %vm795_vm2, %v761_v18  ;;  %v765_v43 = vsel %vm109_vm0, %v733_v50, %v651_v41  ;;  %v735_v48 = vsel %vm718_vm1, %v4709_v5, %v527_v47 }
 0x16e   :  { %v653_v45 = vpop.permute.xlu1 %652 }
 0x16f   :  { %v766_v46 = vsel %vm109_vm0, %v734_v55, %v653_v45  ;;  %v657_v32 = vpop.permute.xlu2 %656 }
 0x170   :  { %3764 = vmatmul.msk.f32.gmra.mxu0 %vm795_vm2, %v762_v33  ;;  %3796 = vmatmul.msk.f32.gmra.mxu1 %vm795_vm2, %v762_v33 }
 0x175   :  { %v655_v59 = vpop.permute.xlu0 %654 }
 0x176   :  { %v767_v52 = vsel %vm109_vm0, %v735_v48, %v655_v59  ;;  %v529_v1 = vpop.permute.xlu1 %528 }
 0x177   :  { %v736_v56 = vsel %vm718_vm1, %v4725_v10, %v529_v1  ;;  %v533_v8 = vpop.permute.xlu2 %532 }
 0x178   :  { %3765 = vmatmul.msk.f32.gmra.mxu0 %vm795_vm2, %v763_v36  ;;  %3797 = vmatmul.msk.f32.gmra.mxu1 %vm795_vm2, %v763_v36  ;;  %v768_v62 = vsel %vm109_vm0, %v736_v56, %v657_v32  ;;  %v738_v31 = vsel %vm718_vm1, %v4753_v21, %v533_v8 }
 0x17d   :  { %v531_v63 = vpop.permute.xlu0 %530 }
 0x17e   :  { %v737_v34 = vsel %vm718_vm1, %v4735_v14, %v531_v63 }
 0x17f   :  { %v663_v19 = vpop.permute.xlu2 %662 }
 0x180   :  { %3766 = vmatmul.msk.f32.gmra.mxu0 %vm795_vm2, %v764_v40  ;;  %3798 = vmatmul.msk.f32.gmra.mxu1 %vm795_vm2, %v764_v40 }
 0x185   :  { %v659_v10 = vpop.permute.xlu1 %658 }
 0x186   :  { %v769_v3 = vsel %vm109_vm0, %v737_v34, %v659_v10 }
 0x187   :  { %v539_v0 = vpop.permute.xlu2 %538 }
 0x188   :  { %3767 = vmatmul.msk.f32.gmra.mxu0 %vm795_vm2, %v765_v43  ;;  %3799 = vmatmul.msk.f32.gmra.mxu1 %vm795_vm2, %v765_v43 }
 0x18d   :  { %v535_v15 = vpop.permute.xlu1 %534 }
 0x18e   :  { %v661_v9 = vpop.permute.xlu0 %660  ;;  %v739_v16 = vsel %vm718_vm1, %v4713_v6, %v535_v15 }
 0x18f   :  { %v770_v13 = vsel %vm109_vm0, %v738_v31, %v661_v9  ;;  %v771_v54 = vsel %vm109_vm0, %v739_v16, %v663_v19  ;;  %v669_v55 = vpop.permute.xlu2 %668 }
 0x190   :  { %3768 = vmatmul.msk.f32.gmra.mxu0 %vm795_vm2, %v766_v46  ;;  %3800 = vmatmul.msk.f32.gmra.mxu1 %vm795_vm2, %v766_v46 }
 0x194   :  { %v909_v30 = vpop.f32.mrf.mxu0  ;;  %v5013_v44 = vpop.f32.mrf.mxu1 }
 0x195   :  { %v4983_v21 = vadd.f32 %v909_v30, %v4942_v27  ;;  %v665_v25 = vpop.permute.xlu1 %664 }
 0x196   :  { %v537_v33 = vpop.permute.xlu0 %536 }
 0x197   :  { %v1118_v24 = vmax.f32 %v4983_v21, 0.0  ;;  %v740_v6 = vsel %vm718_vm1, %v4730_v11, %v537_v33  ;;  %v741_v11 = vsel %vm718_vm1, %v4745_v17, %v539_v0 }
 0x198   :  { %3769 = vmatmul.msk.f32.gmra.mxu0 %vm795_vm2, %v767_v52  ;;  %3801 = vmatmul.msk.f32.gmra.mxu1 %vm795_vm2, %v767_v52  ;;  %v772_v36 = vsel %vm109_vm0, %v740_v6, %v665_v25 }
 0x19c   :  { %v912_v60 = vpop.f32.mrf.mxu0  ;;  %v5030_v48 = vpop.f32.mrf.mxu1 }
 0x19d   :  { %v4947_v5 = vadd.f32 %v912_v60, %v4942_v27  ;;  %v541_v43 = vpop.permute.xlu1 %540 }
 0x19e   :  { %v667_v38 = vpop.permute.xlu0 %666  ;;  %v742_v17 = vsel %vm718_vm1, %v4759_v23, %v541_v43 }
 0x19f   :  { %v1120_v61 = vmax.f32 %v4947_v5, 0.0  ;;  %v773_v50 = vsel %vm109_vm0, %v741_v11, %v667_v38  ;;  %v774_v47 = vsel %vm109_vm0, %v742_v17, %v669_v55 }
 0x1a0   :  { %3770 = vmatmul.msk.f32.gmra.mxu0 %vm795_vm2, %v768_v62  ;;  %3802 = vmatmul.msk.f32.gmra.mxu1 %vm795_vm2, %v768_v62  ;;  %v545_v62 = vpop.permute.xlu2 %544 }
 0x1a1   :  { %1216 = vrot.lane.b32.xlu0 %v1120_v61, %s4307_s7 }
 0x1a4   :  { %v915_v2 = vpop.f32.mrf.mxu0 }
 0x1a5   :  { %v4957_v29 = vadd.f32 %v915_v2, %v4942_v27  ;;  %v671_v23 = vpop.permute.xlu1 %670  ;;  %v5046_v2 = vpop.f32.mrf.mxu1 }
 0x1a6   :  { %v543_v30 = vpop.permute.xlu0 %542 }
 0x1a7   :  { %v1122_v4 = vmax.f32 %v4957_v29, 0.0  ;;  %v743_v52 = vsel %vm718_vm1, %v4755_v22, %v543_v30  ;;  %v744_v22 = vsel %vm718_vm1, %v4766_v26, %v545_v62 }
 0x1a8   :  { %3771 = vmatmul.msk.f32.gmra.mxu0 %vm795_vm2, %v769_v3  ;;  %3803 = vmatmul.msk.f32.gmra.mxu1 %vm795_vm2, %v769_v3  ;;  %v775_v60 = vsel %vm109_vm0, %v743_v52, %v671_v23  ;;  %v675_v31 = vpop.permute.xlu2 %674 }
 0x1a9   :  { %1218 = vrot.lane.b32.xlu2 %v1122_v4, %s4307_s7 }
 0x1ad   :  { %v918_v12 = vpop.f32.mrf.mxu0  ;;  %v547_v9 = vpop.permute.xlu1 %546 }
 0x1ae   :  { %v4971_v14 = vadd.f32 %v918_v12, %v4942_v27  ;;  %v673_v63 = vpop.permute.xlu0 %672  ;;  %v745_v26 = vsel %vm718_vm1, %v4773_v39, %v547_v9  ;;  %v5064_v16 = vpop.f32.mrf.mxu1 }
 0x1af   :  { %v776_v3 = vsel %vm109_vm0, %v744_v22, %v673_v63  ;;  %v777_v15 = vsel %vm109_vm0, %v745_v26, %v675_v31 }
 0x1b0   :  { %v1124_v49 = vmax.f32 %v4971_v14, 0.0  ;;  %3772 = vmatmul.msk.f32.gmra.mxu0 %vm795_vm2, %v770_v13  ;;  %3804 = vmatmul.msk.f32.gmra.mxu1 %vm795_vm2, %v770_v13  ;;  %v551_v0 = vpop.permute.xlu2 %550 }
 0x1b1   :  { %v747_v11 = vsel %vm718_vm1, %v4780_v42, %v551_v0 }
 0x1b2   :  { %1220 = vrot.lane.b32.xlu1 %v1124_v49, %s4307_s7 }
 0x1b5   :  { %v921_v18 = vpop.f32.mrf.mxu0  ;;  %v677_v39 = vpop.permute.xlu1 %676 }
 0x1b6   :  { %v5035_v1 = vadd.f32 %v921_v18, %v4942_v27  ;;  %v549_v19 = vpop.permute.xlu0 %548 }
 0x1b8   :  { %3773 = vmatmul.msk.f32.gmra.mxu0 %vm795_vm2, %v771_v54  ;;  %3805 = vmatmul.msk.f32.gmra.mxu1 %vm795_vm2, %v771_v54  ;;  %v1126_v32 = vmax.f32 %v5035_v1, 0.0  ;;  %v746_v54 = vsel %vm718_vm1, %v4790_v51, %v549_v19  ;;  %v681_v42 = vpop.permute.xlu2 %680 }
 0x1b9   :  { %v778_v6 = vsel %vm109_vm0, %v746_v54, %v677_v39 }
 0x1ba   :  { %1214 = vrot.lane.b32.xlu1 %v1118_v24, %s4307_s7 }
 0x1bd   :  { %v924_v35 = vpop.f32.mrf.mxu0  ;;  %v553_v17 = vpop.permute.xlu1 %552 }
 0x1be   :  { %v4995_v58 = vadd.f32 %v924_v35, %v4942_v27  ;;  %v679_v51 = vpop.permute.xlu0 %678  ;;  %v748_v55 = vsel %vm718_vm1, %v4797_v57, %v553_v17 }
 0x1bf   :  { %v780_v23 = vsel %vm109_vm0, %v748_v55, %v681_v42 }
 0x1c0   :  { %v1128_v37 = vmax.f32 %v4995_v58, 0.0  ;;  %3774 = vmatmul.msk.f32.gmra.mxu0 %vm795_vm2, %v772_v36  ;;  %3806 = vmatmul.msk.f32.gmra.mxu1 %vm795_vm2, %v772_v36  ;;  %v5081_v36 = vpop.f32.mrf.mxu1 }
 0x1c2   :  { %1224 = vrot.lane.b32.xlu1 %v1128_v37, %s4307_s7 }
 0x1c5   :  { %v927_v40 = vpop.f32.mrf.mxu0 }
 0x1c6   :  { %v5007_v28 = vadd.f32 %v927_v40, %v4942_v27 }
 0x1c8   :  { %v1130_v41 = vmax.f32 %v5007_v28, 0.0  ;;  %3775 = vmatmul.msk.f32.gmra.mxu0 %vm795_vm2, %v773_v50  ;;  %3807 = vmatmul.msk.f32.gmra.mxu1 %vm795_vm2, %v773_v50  ;;  %v779_v50 = vsel %vm109_vm0, %v747_v11, %v679_v51 }
 0x1ca   :  { %1226 = vrot.lane.b32.xlu0 %v1130_v41, %s4307_s7 }
 0x1cd   :  { %v930_v45 = vpop.f32.mrf.mxu0 }
 0x1ce   :  { %v5021_v46 = vadd.f32 %v930_v45, %v4942_v27  ;;  %v5098_v45 = vpop.f32.mrf.mxu1 }
 0x1d0   :  { %v1132_v59 = vmax.f32 %v5021_v46, 0.0  ;;  %3776 = vmatmul.msk.f32.gmra.mxu0 %vm795_vm2, %v774_v47  ;;  %3808 = vmatmul.msk.f32.gmra.mxu1 %vm795_vm2, %v774_v47 }
 0x1d2   :  { %1228 = vrot.lane.b32.xlu2 %v1132_v59, %s4307_s7 }
 0x1d5   :  { %v933_v56 = vpop.f32.mrf.mxu0 }
 0x1d6   :  { %v5087_v38 = vadd.f32 %v933_v56, %v4942_v27  ;;  %v555_v56 = vpop.permute.xlu0 %554  ;;  %v5114_v63 = vpop.f32.mrf.mxu1 }
 0x1d7   :  { %v749_v57 = vsel %vm718_vm1, %v4816_v7, %v555_v56  ;;  %v557_v7 = vpop.permute.xlu2 %556 }
 0x1d8   :  { %3777 = vmatmul.msk.f32.gmra.mxu0 %vm795_vm2, %v775_v60  ;;  %3809 = vmatmul.msk.f32.gmra.mxu1 %vm795_vm2, %v775_v60  ;;  %v1134_v43 = vmax.f32 %v5087_v38, 0.0  ;;  %v683_v60 = vpop.permute.xlu1 %682 }
 0x1d9   :  { %v781_v22 = vsel %vm109_vm0, %v749_v57, %v683_v60 }
 0x1da   :  { %1222 = vrot.lane.b32.xlu2 %v1126_v32, %s4307_s7 }
 0x1dd   :  { %v936_v10 = vpop.f32.mrf.mxu0 }
 0x1de   :  { %v5049_v34 = vadd.f32 %v936_v10, %v4942_v27  ;;  %v685_v9 = vpop.permute.xlu0 %684  ;;  %v5132_v19 = vpop.f32.mrf.mxu1 }
 0x1e0   :  { %v1136_v8 = vmax.f32 %v5049_v34, 0.0  ;;  %3778 = vmatmul.msk.f32.gmra.mxu0 %vm795_vm2, %v776_v3  ;;  %3810 = vmatmul.msk.f32.gmra.mxu1 %vm795_vm2, %v776_v3  ;;  %v5247_v34 = vld [vmem:[%s7380_s3] sm:$0xff] }
 0x1e2   :  { %1232 = vrot.lane.b32.xlu2 %v1136_v8, %s4307_s7 }
 0x1e5   :  { %v939_v12 = vpop.f32.mrf.mxu0 }
 0x1e6   :  { %v5061_v13 = vadd.f32 %v939_v12, %v4942_v27  ;;  %v750_v12 = vsel %vm718_vm1, %v4835_v20, %v557_v7 }
 0x1e8   :  { %v1138_v18 = vmax.f32 %v5061_v13, 0.0  ;;  %3779 = vmatmul.msk.f32.gmra.mxu0 %vm795_vm2, %v777_v15  ;;  %3811 = vmatmul.msk.f32.gmra.mxu1 %vm795_vm2, %v777_v15  ;;  %v782_v15 = vsel %vm109_vm0, %v750_v12, %v685_v9 }
 0x1ea   :  { %1234 = vrot.lane.b32.xlu1 %v1138_v18, %s4307_s7 }
 0x1ed   :  { %v942_v33 = vpop.f32.mrf.mxu0 }
 0x1ee   :  { %v5075_v25 = vadd.f32 %v942_v33, %v4942_v27 }
 0x1f0   :  { %v1140_v35 = vmax.f32 %v5075_v25, 0.0  ;;  %3780 = vmatmul.msk.f32.gmra.mxu0 %vm795_vm2, %v778_v6  ;;  %3812 = vmatmul.msk.f32.gmra.mxu1 %vm795_vm2, %v778_v6 }
 0x1f2   :  { %1236 = vrot.lane.b32.xlu0 %v1140_v35, %s4307_s7 }
 0x1f5   :  { %v945_v40 = vpop.f32.mrf.mxu0 }
 0x1f6   :  { %v5141_v54 = vadd.f32 %v945_v40, %v4942_v27 }
 0x1f8   :  { %3781 = vmatmul.msk.f32.gmra.mxu0 %vm795_vm2, %v779_v50  ;;  %3813 = vmatmul.msk.f32.gmra.mxu1 %vm795_vm2, %v779_v50  ;;  %v1142_v33 = vmax.f32 %v5141_v54, 0.0 }
 0x1fa   :  { %1230 = vrot.lane.b32.xlu0 %v1134_v43, %s4307_s7 }
 0x1fd   :  { %v948_v47 = vpop.f32.mrf.mxu0 }
 0x1fe   :  { %v5103_v30 = vadd.f32 %v948_v47, %v4942_v27 }
 0x200   :  { %v1144_v52 = vmax.f32 %v5103_v30, 0.0  ;;  %3782 = vmatmul.msk.f32.gmra.mxu0 %vm795_vm2, %v780_v23  ;;  %3814 = vmatmul.msk.f32.gmra.mxu1 %vm795_vm2, %v780_v23 }
 0x202   :  { %1240 = vrot.lane.b32.xlu0 %v1144_v52, %s4307_s7 }
 0x203   :  { %v1219_v11 = vpop.permute.xlu2 %1218 }
 0x204   :  { %v1312_v42 = vadd.f32 %v1219_v11, %v1122_v4 }
 0x205   :  { %v951_v62 = vpop.f32.mrf.mxu0 }
 0x206   :  { %v5117_v10 = vadd.f32 %v951_v62, %v4942_v27 }
 0x208   :  { %v1146_v3 = vmax.f32 %v5117_v10, 0.0  ;;  %3783 = vmatmul.msk.f32.gmra.mxu0 %vm795_vm2, %v781_v22  ;;  %3815 = vmatmul.msk.f32.gmra.mxu1 %vm795_vm2, %v781_v22 }
 0x20a   :  { %1242 = vrot.lane.b32.xlu2 %v1146_v3, %s4307_s7 }
 0x20d   :  { %v954_v26 = vpop.f32.mrf.mxu0 }
 0x20e   :  { %v5129_v31 = vadd.f32 %v954_v26, %v4942_v27 }
 0x210   :  { %v1148_v39 = vmax.f32 %v5129_v31, 0.0  ;;  %3784 = vmatmul.msk.f32.gmra.mxu0 %vm795_vm2, %v782_v15  ;;  %3816 = vmatmul.msk.f32.gmra.mxu1 %vm795_vm2, %v782_v15 }
 0x212   :  { %1244 = vrot.lane.b32.xlu1 %v1148_v39, %s4307_s7 }
 0x213   :  { %v1217_v55 = vpop.permute.xlu0 %1216 }
 0x214   :  { %v1311_v56 = vadd.f32 %v1217_v55, %v1120_v61 }
 0x215   :  { %v957_v20 = vpop.f32.mrf.mxu0 }
 0x216   :  { %v5179_v61 = vadd.f32 %v957_v20, %v4942_v27 }
 0x21a   :  { %1238 = vrot.lane.b32.xlu1 %v1142_v33, %s4307_s7 }
 0x21d   :  { %v960_v6 = vpop.f32.mrf.mxu0 }
 0x21e   :  { %v5148_v0 = vadd.f32 %v960_v6, %v4942_v27 }
 0x220   :  { %v1152_v51 = vmax.f32 %v5148_v0, 0.0 }
 0x222   :  { %1248 = vrot.lane.b32.xlu1 %v1152_v51, %s4307_s7 }
 0x224   :  { %v1221_v40 = vpop.permute.xlu1 %1220 }
 0x225   :  { %v1313_v50 = vadd.f32 %v1221_v40, %v1124_v49  ;;  %v963_v17 = vpop.f32.mrf.mxu0 }
 0x226   :  { %v5157_v47 = vadd.f32 %v963_v17, %v4942_v27 }
 0x227   :  { %1361 = vmatpush.msra.mxu2 %v1313_v50 }
 0x228   :  { %v1154_v23 = vmax.f32 %v5157_v47, 0.0 }
 0x229   :  { %1362 = vmatpush.msra.mxu2 %v1312_v42 }
 0x22a   :  { %1250 = vrot.lane.b32.xlu0 %v1154_v23, %s4307_s7 }
 0x22b   :  { %1363 = vmatpush.msra.mxu2 %v1311_v56 }
 0x22c   :  { %v1229_v14 = vpop.permute.xlu2 %1228  ;;  %v1215_v49 = vpop.permute.xlu1 %1214 }
 0x22d   :  { %v1317_v57 = vadd.f32 %v1229_v14, %v1132_v59  ;;  %v1310_v29 = vadd.f32 %v1215_v49, %v1118_v24  ;;  %v966_v4 = vpop.f32.mrf.mxu0  ;;  %v1150_v59 = vmax.f32 %v5179_v61, 0.0 }
 0x22e   :  { %v5172_v60 = vadd.f32 %v966_v4, %v4942_v27 }
 0x22f   :  { %1364 = vmatpush.msra.mxu2 %v1310_v29  ;;  %1384 = vmatpush.msra.mxu3 %v1317_v57 }
 0x230   :  { %v1156_v5 = vmax.f32 %v5172_v60, 0.0  ;;  %3817 = vmatmul.msk.f32.vlgmr.msra.gmra.mxu2 %vm1342_vm3, %v5247_v34 }
 0x232   :  { %1252 = vrot.lane.b32.xlu2 %v1156_v5, %s4307_s7 }
 0x234   :  { %v1225_v21 = vpop.permute.xlu1 %1224  ;;  %v1223_v7 = vpop.permute.xlu2 %1222 }
 0x235   :  { %v969_v46 = vpop.f32.mrf.mxu0  ;;  %v1315_v26 = vadd.f32 %v1225_v21, %v1128_v37  ;;  %v1314_v15 = vadd.f32 %v1223_v7, %v1126_v32 }
 0x236   :  { %v5213_v32 = vadd.f32 %v969_v46, %v4942_v27 }
 0x238   :  { %v1158_v11 = vmax.f32 %v5213_v32, 0.0 }
 0x23a   :  { %1246 = vrot.lane.b32.xlu2 %v1150_v59, %s4307_s7 }
 0x23c   :  { %v1227_v24 = vpop.permute.xlu0 %1226  ;;  %v1233_v49 = vpop.permute.xlu2 %1232 }
 0x23d   :  { %v1316_v62 = vadd.f32 %v1227_v24, %v1130_v41  ;;  %v972_v22 = vpop.f32.mrf.mxu0  ;;  %v1319_v46 = vadd.f32 %v1233_v49, %v1136_v8 }
 0x23e   :  { %v5188_v9 = vadd.f32 %v972_v22, %v4942_v27 }
 0x23f   :  { %1385 = vmatpush.msra.mxu3 %v1316_v62 }
 0x240   :  { %v1160_v12 = vmax.f32 %v5188_v9, 0.0 }
 0x241   :  { %1386 = vmatpush.msra.mxu3 %v1315_v26 }
 0x242   :  { %1256 = vrot.lane.b32.xlu2 %v1160_v12, %s4307_s7 }
 0x243   :  { %1387 = vmatpush.msra.mxu3 %v1314_v15 }
 0x244   :  { %3819 = vmatmul.msk.f32.vlgmr.msra.gmra.mxu3 %vm1342_vm3, %v5247_v34 }
 0x245   :  { %v975_v28 = vpop.f32.mrf.mxu0 }
 0x246   :  { %v5199_v41 = vadd.f32 %v975_v28, %v4942_v27 }
 0x248   :  { %v1162_v20 = vmax.f32 %v5199_v41, 0.0 }
 0x24a   :  { %1258 = vrot.lane.b32.xlu1 %v1162_v20, %s4307_s7 }
 0x24d   :  { %v978_v58 = vpop.f32.mrf.mxu0 }
 0x24e   :  { %v5206_v37 = vadd.f32 %v978_v58, %v4942_v27 }
 0x250   :  { %v1164_v1 = vmax.f32 %v5206_v37, 0.0 }
 0x252   :  { %1260 = vrot.lane.b32.xlu0 %v1164_v1, %s4307_s7 }
 0x255   :  { %v981_v6 = vpop.f32.mrf.mxu0 }
 0x25a   :  { %1254 = vrot.lane.b32.xlu0 %v1158_v11, %s4307_s7 }
 0x25c   :  { %v1235_v55 = vpop.permute.xlu1 %1234 }
 0x25d   :  { %v984_v40 = vpop.f32.mrf.mxu0  ;;  %v1320_v29 = vadd.f32 %v1235_v55, %v1138_v18  ;;  %v5258_v18 = vadd.f32 %v981_v6, %v4942_v27 }
 0x25e   :  { %v5220_v50 = vadd.f32 %v984_v40, %v4942_v27 }
 0x25f   :  { %v1166_v24 = vmax.f32 %v5258_v18, 0.0  ;;  %v5362_v18 = vperm.slane %v4937_v53, 1  ;;  %v1801_v53 = vld [vmem:[%s7389_s12 + $0x8] sm:$0xff] }
 0x260   :  { %v1168_v17 = vmax.f32 %v5220_v50, 0.0  ;;  %v1806_v50 = vld [vmem:[%s7389_s12 + $0x30] sm:$0xff] }
 0x262   :  { %1264 = vrot.lane.b32.xlu0 %v1168_v17, %s4307_s7 }
 0x264   :  { %v1237_v42 = vpop.permute.xlu0 %1236  ;;  %v1243_v26 = vpop.permute.xlu2 %1242 }
 0x265   :  { %v1321_v56 = vadd.f32 %v1237_v42, %v1140_v35  ;;  %v987_v14 = vpop.f32.mrf.mxu0  ;;  %v1324_v55 = vadd.f32 %v1243_v26, %v1146_v3  ;;  %v1023_v26 = vadd.f32 %v5013_v44, %v5362_v18 }
 0x266   :  { %v5229_v57 = vadd.f32 %v987_v14, %v4942_v27 }
 0x267   :  { %1407 = vmatpush.msrb.mxu2 %v1321_v56 }
 0x268   :  { %v1170_v4 = vmax.f32 %v5229_v57, 0.0  ;;  %v1804_v57 = vld [vmem:[%s7389_s12 + $0x20] sm:$0xff] }
 0x269   :  { %1408 = vmatpush.msrb.mxu2 %v1320_v29 }
 0x26a   :  { %1266 = vrot.lane.b32.xlu2 %v1170_v4, %s4307_s7 }
 0x26b   :  { %1409 = vmatpush.msrb.mxu2 %v1319_v46 }
 0x26c   :  { %v1231_v25 = vpop.permute.xlu0 %1230 }
 0x26d   :  { %v1318_v35 = vadd.f32 %v1231_v25, %v1134_v43  ;;  %v990_v21 = vpop.f32.mrf.mxu0  ;;  %v5263_v43 = vld [vmem:[%s7380_s3 + $0x8] sm:$0xff]  ;;  %s4311_s3 = smov [#allocation4]  }
 0x26e   :  { %v5242_v13 = vadd.f32 %v990_v21, %v4942_v27  ;;  %3818 = vmatmul.msk.f32.gmra.mxu2 %vm1342_vm3, %v5263_v43  ;;  %3820 = vmatmul.msk.f32.gmra.mxu3 %vm1342_vm3, %v5263_v43  ;;  %s3670_s6 = sshll.u32 %s4311_s3, 4  ;;  %s3671_s6 = int_to_ptr.vmem [resolvable:$true] %s3670_s6 }
 0x26f   :  { %1410 = vmatpush.msrb.mxu2 %v1318_v35 }
 0x270   :  { %v1172_v8 = vmax.f32 %v5242_v13, 0.0  ;;  %v1807_v13 = vld [vmem:[%s7389_s12 + $0x38] sm:$0xff] }
 0x272   :  { %1268 = vrot.lane.b32.xlu1 %v1172_v8, %s4307_s7 }
 0x274   :  { %v1241_v6 = vpop.permute.xlu0 %1240 }
 0x275   :  { %v993_v38 = vpop.f32.mrf.mxu0  ;;  %v1323_v56 = vadd.f32 %v1241_v6, %v1144_v52  ;;  %v3271_v6 = vld [vmem:[%s7381_s4 + $0x10] sm:$0xff] }
 0x276   :  { %3821 = vmatmul.msk.f32.vlgmr.msrb.gmra.mxu2 %vm1342_vm3, %v5247_v34  ;;  %v5306_v52 = vadd.f32 %v993_v38, %v4942_v27 }
 0x278   :  { %v1174_v60 = vmax.f32 %v5306_v52, 0.0  ;;  %v1029_v52 = vadd.f32 %v5046_v2, %v5362_v18  ;;  %v3274_v2 = vld [vmem:[%s7381_s4 + $0x28] sm:$0xff] }
 0x27a   :  { %1262 = vrot.lane.b32.xlu1 %v1166_v24, %s4307_s7 }
 0x27d   :  { %v996_v62 = vpop.f32.mrf.mxu0 }
 0x27e   :  { %v5274_v22 = vadd.f32 %v996_v62, %v4942_v27  ;;  %3822 = vmatmul.msk.f32.gmra.mxu2 %vm1342_vm3, %v5263_v43  ;;  %v1802_v62 = vld [vmem:[%s7389_s12 + $0x10] sm:$0xff] }
 0x280   :  { %v1176_v7 = vmax.f32 %v5274_v22, 0.0  ;;  %v1539_v22 = vld [vmem:[%s7385_s8 + $0x30] sm:$0xff] }
 0x282   :  { %1272 = vrot.lane.b32.xlu1 %v1176_v7, %s4307_s7 }
 0x284   :  { %v1245_v15 = vpop.permute.xlu1 %1244 }
 0x285   :  { %v1325_v28 = vadd.f32 %v1245_v15, %v1148_v39  ;;  %v999_v58 = vpop.f32.mrf.mxu0 }
 0x286   :  { %v5285_v40 = vadd.f32 %v999_v58, %v4942_v27  ;;  %v1800_v58 = vld [vmem:[%s7389_s12] sm:$0xff] }
 0x287   :  { %1430 = vmatpush.msrb.mxu3 %v1325_v28 }
 0x288   :  { %v1178_v42 = vmax.f32 %v5285_v40, 0.0  ;;  %v1026_v40 = vadd.f32 %v5030_v48, %v5362_v18  ;;  %v3269_v48 = vld [vmem:[%s7381_s4] sm:$0xff] }
 0x289   :  { %1431 = vmatpush.msrb.mxu3 %v1324_v55  ;;  %v3272_v55 = vld [vmem:[%s7381_s4 + $0x18] sm:$0xff] }
 0x28a   :  { %1274 = vrot.lane.b32.xlu0 %v1178_v42, %s4307_s7 }
 0x28b   :  { %1432 = vmatpush.msrb.mxu3 %v1323_v56  ;;  %v1119_v56 = vmax.f32 %v1023_v26, 0.0 }
 0x28c   :  { %v1253_v31 = vpop.permute.xlu2 %1252  ;;  %v1239_v39 = vpop.permute.xlu1 %1238 }
 0x28d   :  { %v1329_v10 = vadd.f32 %v1253_v31, %v1156_v5  ;;  %v1322_v3 = vadd.f32 %v1239_v39, %v1142_v33  ;;  %v1002_v14 = vpop.f32.mrf.mxu0 }
 0x28e   :  { %v1003_v49 = vadd.f32 %v1002_v14, %v4942_v27  ;;  %v1121_v14 = vmax.f32 %v1026_v40, 0.0 }
 0x28f   :  { %1433 = vmatpush.msrb.mxu3 %v1322_v3  ;;  %1453 = vmatpush.msra.mxu2 %v1329_v10  ;;  %v3275_v3 = vld [vmem:[%s7381_s4 + $0x30] sm:$0xff] }
 0x290   :  { %v1180_v30 = vmax.f32 %v1003_v49, 0.0  ;;  %3823 = vmatmul.msk.f32.vlgmr.msrb.gmra.mxu3 %vm1342_vm3, %v5247_v34  ;;  %v1538_v49 = vld [vmem:[%s7385_s8 + $0x28] sm:$0xff] }
 0x292   :  { %1276 = vrot.lane.b32.xlu2 %v1180_v30, %s4307_s7 }
 0x294   :  { %v1249_v54 = vpop.permute.xlu1 %1248  ;;  %v1247_v29 = vpop.permute.xlu2 %1246 }
 0x295   :  { %v1327_v46 = vadd.f32 %v1249_v54, %v1152_v51  ;;  %v1326_v27 = vadd.f32 %v1247_v29, %v1150_v59  ;;  %v1535_v54 = vld [vmem:[%s7385_s8 + $0x10] sm:$0xff]  ;;  %v1123_v29 = vmax.f32 %v1029_v52, 0.0 }
 0x298   :  { %3824 = vmatmul.msk.f32.gmra.mxu3 %vm1342_vm3, %v5263_v43 }
 0x29a   :  { %1270 = vrot.lane.b32.xlu2 %v1174_v60, %s4307_s7 }
 0x29c   :  { %v1251_v33 = vpop.permute.xlu0 %1250 }
 0x29d   :  { %v1328_v5 = vadd.f32 %v1251_v33, %v1154_v23  ;;  %v1257_v23 = vpop.permute.xlu2 %1256  ;;  %v3276_v33 = vld [vmem:[%s7381_s4 + $0x38] sm:$0xff] }
 0x29e   :  { %v1331_v51 = vadd.f32 %v1257_v23, %v1160_v12  ;;  %v3279_v23 = vld [vmem:[%s7381_s4 + $0x50] sm:$0xff] }
 0x29f   :  { %1454 = vmatpush.msra.mxu2 %v1328_v5  ;;  %v3278_v5 = vld [vmem:[%s7381_s4 + $0x48] sm:$0xff] }
 0x2a1   :  { %1455 = vmatpush.msra.mxu2 %v1327_v46  ;;  %v1534_v46 = vld [vmem:[%s7385_s8 + $0x8] sm:$0xff] }
 0x2a3   :  { %1456 = vmatpush.msra.mxu2 %v1326_v27  ;;  %v1533_v27 = vld [vmem:[%s7385_s8] sm:$0xff] }
 0x2a4   :  { %3825 = vmatmul.msk.f32.vlgmr.msra.gmra.mxu2 %vm1342_vm3, %v5247_v34 }
 0x2ac   :  { %3826 = vmatmul.msk.f32.gmra.mxu2 %vm1342_vm3, %v5263_v43 }
 0x2bc   :  { %v1259_v25 = vpop.permute.xlu1 %1258 }
 0x2bd   :  { %v1332_v0 = vadd.f32 %v1259_v25, %v1162_v20  ;;  %v1032_v25 = vadd.f32 %v5064_v16, %v5362_v18  ;;  %v3281_v16 = vld [vmem:[%s7381_s4 + $0x60] sm:$0xff] }
 0x2c4   :  { %v1261_v35 = vpop.permute.xlu0 %1260  ;;  %v1267_v37 = vpop.permute.xlu2 %1266 }
 0x2c5   :  { %v1333_v47 = vadd.f32 %v1261_v35, %v1164_v1  ;;  %v1336_v12 = vadd.f32 %v1267_v37, %v1170_v4  ;;  %v4308_v4 = vmov 0   ;;  %v1035_v37 = vadd.f32 %v5081_v36, %v5362_v18 }
 0x2c6   :  { %3958 = vset.pattern.permute.xlu1 %v4308_v4  ;;  %3959 = vset.pattern.permute.xlu2 %v4308_v4 }
 0x2c7   :  { %1476 = vmatpush.msra.mxu3 %v1333_v47  ;;  %3957 = vset.pattern.permute.xlu0 %v4308_v4  ;;  %v1682_v47 = vld [vmem:[%s7387_s10 + $0x38] sm:$0xff]  ;;  %v1389_v36 = vpop.f32.mrf.mxu3 }
 0x2c8   :  { %3297 = vperm.xlu2 %3959, %v3271_v6   ;;  %3287 = vperm.xlu0 %3957, %v3269_v48   ;;  %v3384_v4 = vld [vmem:[%s7382_s5 + $0x18] sm:$0xff]  ;;  %v1679_v6 = vld [vmem:[%s7387_s10 + $0x20] sm:$0xff] }
 0x2c9   :  { %1477 = vmatpush.msra.mxu3 %v1332_v0  ;;  %v3277_v0 = vld [vmem:[%s7381_s4 + $0x40] sm:$0xff] }
 0x2ca   :  { %v3393_v48 = vld [vmem:[%s7382_s5 + $0x60] sm:$0xff] }
 0x2cb   :  { %1478 = vmatpush.msra.mxu3 %v1331_v51  ;;  %v1681_v51 = vld [vmem:[%s7387_s10 + $0x30] sm:$0xff] }
 0x2cc   :  { %v1255_v61 = vpop.permute.xlu0 %1254 }
 0x2cd   :  { %v1330_v59 = vadd.f32 %v1255_v61, %v1158_v11  ;;  %v1125_v61 = vmax.f32 %v1032_v25, 0.0  ;;  %v3401_v25 = vld [vmem:[%s7382_s5 + $0xa0] sm:$0xff] }
 0x2cf   :  { %1479 = vmatpush.msra.mxu3 %v1330_v59 }
 0x2d0   :  { %3827 = vmatmul.msk.f32.vlgmr.msra.gmra.mxu3 %vm1342_vm3, %v5247_v34  ;;  %3312 = vperm.xlu0 %3957, %v3274_v2  }
 0x2d4   :  { %v1265_v9 = vpop.permute.xlu0 %1264 }
 0x2d5   :  { %v1335_v1 = vadd.f32 %v1265_v9, %v1168_v17  ;;  %v1805_v17 = vld [vmem:[%s7389_s12 + $0x28] sm:$0xff]  ;;  %v3280_v9 = vld [vmem:[%s7381_s4 + $0x58] sm:$0xff] }
 0x2d8   :  { %3828 = vmatmul.msk.f32.gmra.mxu3 %vm1342_vm3, %v5263_v43  ;;  %3327 = vperm.xlu0 %3957, %v3277_v0  }
 0x2e0   :  { %3342 = vperm.xlu0 %3957, %v3280_v9  }
 0x2e4   :  { %v1269_v41 = vpop.permute.xlu1 %1268 }
 0x2e5   :  { %v1337_v20 = vadd.f32 %v1269_v41, %v1172_v8  ;;  %v3270_v8 = vld [vmem:[%s7381_s4 + $0x8] sm:$0xff] }
 0x2e6   :  { %3292 = vperm.xlu1 %3958, %v3270_v8   ;;  %v3382_v8 = vld [vmem:[%s7382_s5 + $0x8] sm:$0xff] }
 0x2e7   :  { %1499 = vmatpush.msrb.mxu2 %v1337_v20  ;;  %v3282_v20 = vld [vmem:[%s7381_s4 + $0x68] sm:$0xff] }
 0x2e9   :  { %1500 = vmatpush.msrb.mxu2 %v1336_v12  ;;  %v3284_v12 = vld [vmem:[%s7381_s4 + $0x78] sm:$0xff] }
 0x2eb   :  { %1501 = vmatpush.msrb.mxu2 %v1335_v1  ;;  %v1127_v1 = vmax.f32 %v1035_v37, 0.0  ;;  %v3404_v37 = vld [vmem:[%s7382_s5 + $0xb8] sm:$0xff] }
 0x2ec   :  { %v1277_v32 = vpop.permute.xlu2 %1276  ;;  %v1263_v11 = vpop.permute.xlu1 %1262 }
 0x2ed   :  { %v1341_v21 = vadd.f32 %v1277_v32, %v1180_v30  ;;  %v1334_v38 = vadd.f32 %v1263_v11, %v1166_v24  ;;  %v1803_v24 = vld [vmem:[%s7389_s12 + $0x18] sm:$0xff]  ;;  %v1537_v30 = vld [vmem:[%s7385_s8 + $0x20] sm:$0xff]  ;;  %v1038_v32 = vadd.f32 %v5098_v45, %v5362_v18 }
 0x2ee   :  { %3302 = vperm.xlu1 %3958, %v3272_v55   ;;  %v3381_v11 = vld [vmem:[%s7382_s5] sm:$0xff] }
 0x2ef   :  { %1502 = vmatpush.msrb.mxu2 %v1334_v38  ;;  %1522 = vmatpush.msrb.mxu3 %v1341_v21  ;;  %v3283_v21 = vld [vmem:[%s7381_s4 + $0x70] sm:$0xff]  ;;  %v1129_v45 = vmax.f32 %v1038_v32, 0.0 }
 0x2f0   :  { %3829 = vmatmul.msk.f32.vlgmr.msrb.gmra.mxu2 %vm1342_vm3, %v5247_v34  ;;  %v3383_v38 = vld [vmem:[%s7382_s5 + $0x10] sm:$0xff]  ;;  %3357 = vperm.xlu0 %3957, %v3283_v21  }
 0x2f1   :  { %1916 = vmatpush.msra.mxu2 %v1807_v13  ;;  %v1680_v13 = vld [vmem:[%s7387_s10 + $0x28] sm:$0xff]  ;;  %v3403_v32 = vld [vmem:[%s7382_s5 + $0xb0] sm:$0xff] }
 0x2f3   :  { %1917 = vmatpush.msra.mxu2 %v1806_v50 }
 0x2f4   :  { %v1273_v15 = vpop.permute.xlu1 %1272  ;;  %v1271_v31 = vpop.permute.xlu2 %1270 }
 0x2f5   :  { %1918 = vmatpush.msra.mxu2 %v1805_v17  ;;  %v1339_v39 = vadd.f32 %v1273_v15, %v1176_v7  ;;  %v1338_v10 = vadd.f32 %v1271_v31, %v1174_v60  ;;  %v3273_v7 = vld [vmem:[%s7381_s4 + $0x20] sm:$0xff]  ;;  %v1536_v60 = vld [vmem:[%s7385_s8 + $0x18] sm:$0xff]  ;;  %v1392_v17 = vpop.f32.mrf.mxu3  ;;  %v3387_v15 = vld [vmem:[%s7382_s5 + $0x30] sm:$0xff] }
 0x2f6   :  { %3307 = vperm.xlu2 %3959, %v3273_v7   ;;  %3317 = vperm.xlu1 %3958, %v3275_v3   ;;  %v3390_v31 = vld [vmem:[%s7382_s5 + $0x48] sm:$0xff]  ;;  %v3391_v3 = vld [vmem:[%s7382_s5 + $0x50] sm:$0xff] }
 0x2f7   :  { %1919 = vmatpush.msra.mxu2 %v1804_v57  ;;  %v1041_v57 = vadd.f32 %v5114_v63, %v5362_v18 }
 0x2f8   :  { %3830 = vmatmul.msk.f32.gmra.mxu2 %vm1342_vm3, %v5263_v43  ;;  %3420 = vperm.xlu0 %3957, %v3382_v8  }
 0x2f9   :  { %1920 = vmatpush.msra.mxu2 %v1803_v24  ;;  %v3386_v24 = vld [vmem:[%s7382_s5 + $0x28] sm:$0xff] }
 0x2fb   :  { %1921 = vmatpush.msra.mxu2 %v1802_v62  ;;  %v1131_v62 = vmax.f32 %v1041_v57, 0.0  ;;  %v3408_v57 = vld [vmem:[%s7382_s5 + $0xd8] sm:$0xff] }
 0x2fc   :  { %v1275_v28 = vpop.permute.xlu0 %1274 }
 0x2fd   :  { %v1340_v44 = vadd.f32 %v1275_v28, %v1178_v42  ;;  %1922 = vmatpush.msra.mxu2 %v1801_v53  ;;  %v1540_v42 = vld [vmem:[%s7385_s8 + $0x38] sm:$0xff]  ;;  %v1044_v53 = vadd.f32 %v5132_v19, %v5362_v18  ;;  %v3385_v28 = vld [vmem:[%s7382_s5 + $0x20] sm:$0xff] }
 0x2fe   :  { %3322 = vperm.xlu2 %3959, %v3276_v33   ;;  %3332 = vperm.xlu1 %3958, %v3278_v5   ;;  %v3398_v33 = vld [vmem:[%s7382_s5 + $0x88] sm:$0xff] }
 0x2ff   :  { %1523 = vmatpush.msrb.mxu3 %v1340_v44  ;;  %1923 = vmatpush.msra.mxu2 %v1800_v58  ;;  %v3389_v58 = vld [vmem:[%s7382_s5 + $0x40] sm:$0xff]  ;;  %v1133_v19 = vmax.f32 %v1044_v53, 0.0 }
 0x300   :  { %3865 = vmatmul.msk.f32.vlgmr.msra.gmra.mxu2 %vm1545_vm4, %v1119_v56  ;;  %3435 = vperm.xlu0 %3957, %v3385_v28   ;;  %v3409_v53 = vld [vmem:[%s7382_s5 + $0xe0] sm:$0xff] }
 0x301   :  { %1524 = vmatpush.msrb.mxu3 %v1339_v39  ;;  %v3388_v39 = vld [vmem:[%s7382_s5 + $0x38] sm:$0xff] }
 0x303   :  { %1525 = vmatpush.msrb.mxu3 %v1338_v10  ;;  %v3392_v10 = vld [vmem:[%s7382_s5 + $0x58] sm:$0xff] }
 0x304   :  { %3831 = vmatmul.msk.f32.vlgmr.msrb.gmra.mxu3 %vm1342_vm3, %v5247_v34  ;;  %v5415_v34 = vpop.f32.mrf.mxu1 }
 0x305   :  { %1602 = vmatpush.msra.mxu3 %v1540_v42  ;;  %v1047_v44 = vadd.f32 %v5415_v34, %v5362_v18 }
 0x306   :  { %3337 = vperm.xlu2 %3959, %v3279_v23   ;;  %3347 = vperm.xlu1 %3958, %v3281_v16  }
 0x307   :  { %1603 = vmatpush.msra.mxu3 %v1539_v22  ;;  %v1135_v40 = vmax.f32 %v1047_v44, 0.0  ;;  %v1675_v44 = vld [vmem:[%s7387_s10] sm:$0xff] }
 0x308   :  { %3866 = vmatmul.msk.f32.gmra.mxu2 %vm1545_vm4, %v1121_v14  ;;  %3450 = vperm.xlu0 %3957, %v3388_v39   ;;  %v3395_v14 = vld [vmem:[%s7382_s5 + $0x70] sm:$0xff] }
 0x309   :  { %1604 = vmatpush.msra.mxu3 %v1538_v49  ;;  %v1678_v49 = vld [vmem:[%s7387_s10 + $0x18] sm:$0xff] }
 0x30b   :  { %1605 = vmatpush.msra.mxu3 %v1537_v30 }
 0x30c   :  { %3832 = vmatmul.msk.f32.gmra.mxu3 %vm1342_vm3, %v5263_v43  ;;  %v1366_v43 = vpop.f32.mrf.mxu2  ;;  %v5449_v35 = vpop.f32.mrf.mxu1 }
 0x30d   :  { %1606 = vmatpush.msra.mxu3 %v1536_v60  ;;  %v1050_v22 = vadd.f32 %v5449_v35, %v5362_v18  ;;  %v3396_v60 = vld [vmem:[%s7382_s5 + $0x78] sm:$0xff]  ;;  %v1677_v35 = vld [vmem:[%s7387_s10 + $0x10] sm:$0xff] }
 0x30e   :  { %3352 = vperm.xlu2 %3959, %v3282_v20   ;;  %3362 = vperm.xlu1 %3958, %v3284_v12  }
 0x30f   :  { %1607 = vmatpush.msra.mxu3 %v1535_v54  ;;  %v1137_v34 = vmax.f32 %v1050_v22, 0.0  ;;  %v3394_v54 = vld [vmem:[%s7382_s5 + $0x68] sm:$0xff] }
 0x310   :  { %3867 = vmatmul.msk.f32.gmra.mxu2 %vm1545_vm4, %v1123_v29  ;;  %3465 = vperm.xlu0 %3957, %v3391_v3  }
 0x311   :  { %1608 = vmatpush.msra.mxu3 %v1534_v46 }
 0x313   :  { %1609 = vmatpush.msra.mxu3 %v1533_v27  ;;  %v1435_v42 = vpop.f32.mrf.mxu3  ;;  %v3397_v27 = vld [vmem:[%s7382_s5 + $0x80] sm:$0xff] }
 0x314   :  { %3833 = vmatmul.msk.f32.vlgmr.msra.gmra.mxu3 %vm1545_vm4, %v1366_v43  ;;  %v1369_v59 = vpop.f32.mrf.mxu2  ;;  %v5470_v41 = vpop.f32.mrf.mxu1  ;;  %v3399_v43 = vld [vmem:[%s7382_s5 + $0x90] sm:$0xff] }
 0x315   :  { %1743 = vmatpush.msrb.mxu3 %v1682_v47  ;;  %v1053_v52 = vadd.f32 %v5470_v41, %v5362_v18 }
 0x316   :  { %3415 = vperm.xlu2 %3959, %v3381_v11   ;;  %3425 = vperm.xlu1 %3958, %v3383_v38   ;;  %v3407_v11 = vld [vmem:[%s7382_s5 + $0xd0] sm:$0xff] }
 0x317   :  { %1744 = vmatpush.msrb.mxu3 %v1681_v51  ;;  %v1139_v2 = vmax.f32 %v1053_v52, 0.0 }
 0x318   :  { %3868 = vmatmul.msk.f32.gmra.mxu2 %vm1545_vm4, %v1125_v61  ;;  %3480 = vperm.xlu0 %3957, %v3394_v54   ;;  %v3402_v61 = vld [vmem:[%s7382_s5 + $0xa8] sm:$0xff] }
 0x319   :  { %1745 = vmatpush.msrb.mxu3 %v1680_v13 }
 0x31b   :  { %1746 = vmatpush.msrb.mxu3 %v1679_v6  ;;  %v1438_v30 = vpop.f32.mrf.mxu3 }
 0x31c   :  { %3834 = vmatmul.msk.f32.gmra.mxu3 %vm1545_vm4, %v1369_v59  ;;  %v5498_v50 = vpop.f32.mrf.mxu1  ;;  %v1412_v26 = vpop.f32.mrf.mxu2  ;;  %v3400_v59 = vld [vmem:[%s7382_s5 + $0x98] sm:$0xff] }
 0x31d   :  { %1747 = vmatpush.msrb.mxu3 %v1678_v49  ;;  %v1056_v46 = vadd.f32 %v5498_v50, %v5362_v18 }
 0x31e   :  { %3430 = vperm.xlu2 %3959, %v3384_v4   ;;  %3440 = vperm.xlu1 %3958, %v3386_v24   ;;  %v3406_v4 = vld [vmem:[%s7382_s5 + $0xc8] sm:$0xff] }
 0x31f   :  { %v1141_v47 = vmax.f32 %v1056_v46, 0.0  ;;  %1748 = vmatpush.msrb.mxu3 %v1677_v35  ;;  %v1676_v24 = vld [vmem:[%s7387_s10 + $0x8] sm:$0xff]  ;;  %s4309_s10 = smov 96  }
 0x320   :  { %3869 = vmatmul.msk.f32.gmra.mxu2 %vm1545_vm4, %v1127_v1  ;;  %3495 = vperm.xlu0 %3957, %v3397_v27  }
 0x321   :  { %1749 = vmatpush.msrb.mxu3 %v1676_v24 }
 0x322   :  { %v5594_v16 = vpop.permute.xlu2 %3297 }
 0x323   :  { %7393 = vst [vmem:[#allocation8_spill] sm:$0xff] %v5594_v16  ;;  %1750 = vmatpush.msrb.mxu3 %v1675_v44 }
 0x324   :  { %3835 = vmatmul.msk.f32.gmra.mxu3 %vm1545_vm4, %v1389_v36  ;;  %v5513_v63 = vpop.f32.mrf.mxu1  ;;  %v1415_v55 = vpop.f32.mrf.mxu2  ;;  %v3405_v36 = vld [vmem:[%s7382_s5 + $0xc0] sm:$0xff] }
 0x325   :  { %v1059_v51 = vadd.f32 %v5513_v63, %v5362_v18 }
 0x326   :  { %3445 = vperm.xlu2 %3959, %v3387_v15   ;;  %3455 = vperm.xlu1 %3958, %v3389_v58  }
 0x327   :  { %v1143_v41 = vmax.f32 %v1059_v51, 0.0 }
 0x328   :  { %3870 = vmatmul.msk.f32.gmra.mxu2 %vm1545_vm4, %v1129_v45  ;;  %3510 = vperm.xlu0 %3957, %v3400_v59  }
 0x32c   :  { %3836 = vmatmul.msk.f32.gmra.mxu3 %vm1545_vm4, %v1392_v17  ;;  %v5534_v56 = vpop.f32.mrf.mxu1  ;;  %v1458_v29 = vpop.f32.mrf.mxu2 }
 0x32d   :  { %v1062_v9 = vadd.f32 %v5534_v56, %v5362_v18 }
 0x32e   :  { %3460 = vperm.xlu2 %3959, %v3390_v31   ;;  %3470 = vperm.xlu1 %3958, %v3392_v10   ;;  %v5664_v10 = vld [vmem:[%s7390_s13] ss:$0 sm:$0xff] }
 0x32f   :  { %v1145_v21 = vmax.f32 %v1062_v9, 0.0 }
 0x330   :  { %3871 = vmatmul.msk.f32.gmra.mxu2 %vm1545_vm4, %v1131_v62  ;;  %3525 = vperm.xlu0 %3957, %v3403_v32  }
 0x334   :  { %3837 = vmatmul.msk.f32.gmra.mxu3 %vm1545_vm4, %v1412_v26  ;;  %v5549_v7 = vpop.f32.mrf.mxu1  ;;  %v1461_v0 = vpop.f32.mrf.mxu2 }
 0x335   :  { %v1065_v45 = vadd.f32 %v5549_v7, %v5362_v18 }
 0x336   :  { %3475 = vperm.xlu2 %3959, %v3393_v48   ;;  %3485 = vperm.xlu1 %3958, %v3395_v14  }
 0x337   :  { %v1147_v8 = vmax.f32 %v1065_v45, 0.0 }
 0x338   :  { %3872 = vmatmul.msk.f32.gmra.mxu2 %vm1545_vm4, %v1133_v19  ;;  %3540 = vperm.xlu0 %3957, %v3406_v4  }
 0x33a   :  { %v5651_v6 = vpop.permute.xlu0 %3287 }
 0x33b   :  { %7399 = vst [vmem:[#allocation14_spill] sm:$0xff] %v5651_v6 }
 0x33c   :  { %3838 = vmatmul.msk.f32.gmra.mxu3 %vm1545_vm4, %v1415_v55  ;;  %v1067_v5 = vpop.f32.mrf.mxu1 }
 0x33d   :  { %v1068_v62 = vadd.f32 %v1067_v5, %v5362_v18 }
 0x33e   :  { %3490 = vperm.xlu2 %3959, %v3396_v60   ;;  %3500 = vperm.xlu1 %3958, %v3398_v33  }
 0x33f   :  { %v1149_v15 = vmax.f32 %v1068_v62, 0.0 }
 0x340   :  { %3873 = vmatmul.msk.f32.gmra.mxu2 %vm1545_vm4, %v1135_v40  ;;  %3555 = vperm.xlu0 %3957, %v3409_v53  }
 0x342   :  { %v5669_v7 = vpop.permute.xlu0 %3312 }
 0x343   :  { %7402 = vst [vmem:[#allocation17_spill] sm:$0xff] %v5669_v7 }
 0x344   :  { %3839 = vmatmul.msk.f32.gmra.mxu3 %vm1545_vm4, %v1435_v42  ;;  %v1070_v23 = vpop.f32.mrf.mxu1 }
 0x345   :  { %v1071_v19 = vadd.f32 %v1070_v23, %v5362_v18  ;;  %v5700_v23 = vld [vmem:[%s7386_s9] ss:$0 sm:$0xff] }
 0x346   :  { %3505 = vperm.xlu2 %3959, %v3399_v43   ;;  %3515 = vperm.xlu1 %3958, %v3401_v25  }
 0x347   :  { %v1151_v31 = vmax.f32 %v1071_v19, 0.0 }
 0x348   :  { %3874 = vmatmul.msk.f32.gmra.mxu2 %vm1545_vm4, %v1137_v34 }
 0x34c   :  { %3840 = vmatmul.msk.f32.gmra.mxu3 %vm1545_vm4, %v1438_v30  ;;  %v1073_v12 = vpop.f32.mrf.mxu1 }
 0x34d   :  { %v1074_v42 = vadd.f32 %v1073_v12, %v5362_v18 }
 0x34e   :  { %3520 = vperm.xlu2 %3959, %v3402_v61   ;;  %3530 = vperm.xlu1 %3958, %v3404_v37  }
 0x34f   :  { %v1153_v3 = vmax.f32 %v1074_v42, 0.0 }
 0x350   :  { %3875 = vmatmul.msk.f32.gmra.mxu2 %vm1545_vm4, %v1139_v2  ;;  %v5611_v1 = vpop.permute.xlu2 %3307  ;;  %v5686_v2 = vpop.permute.xlu0 %3327 }
 0x351   :  { %7394 = vst [vmem:[#allocation9_spill] sm:$0xff] %v5611_v1 }
 0x352   :  { %7404 = vst [vmem:[#allocation19_spill] sm:$0xff] %v5686_v2 }
 0x353   :  { %v1481_v20 = vpop.f32.mrf.mxu3 }
 0x354   :  { %3841 = vmatmul.msk.f32.gmra.mxu3 %vm1545_vm4, %v1458_v29  ;;  %v1076_v50 = vpop.f32.mrf.mxu1 }
 0x355   :  { %v1077_v34 = vadd.f32 %v1076_v50, %v5362_v18 }
 0x356   :  { %3535 = vperm.xlu2 %3959, %v3405_v36   ;;  %3545 = vperm.xlu1 %3958, %v3407_v11  }
 0x357   :  { %v1155_v5 = vmax.f32 %v1077_v34, 0.0 }
 0x358   :  { %3876 = vmatmul.msk.f32.gmra.mxu2 %vm1545_vm4, %v1141_v47  ;;  %v5624_v13 = vpop.permute.xlu1 %3292  ;;  %v5629_v17 = vpop.permute.xlu2 %3322 }
 0x359   :  { %7395 = vst [vmem:[#allocation10_spill] sm:$0xff] %v5624_v13  ;;  %v5706_v59 = vpop.permute.xlu0 %3342 }
 0x35a   :  { %7396 = vst [vmem:[#allocation11_spill] sm:$0xff] %v5629_v17 }
 0x35b   :  { %v1484_v38 = vpop.f32.mrf.mxu3  ;;  %7406 = vst [vmem:[#allocation21_spill] sm:$0xff] %v5706_v59 }
 0x35c   :  { %3842 = vmatmul.msk.f32.gmra.mxu3 %vm1545_vm4, %v1461_v0  ;;  %v1079_v28 = vpop.f32.mrf.mxu1 }
 0x35d   :  { %v1080_v43 = vadd.f32 %v1079_v28, %v5362_v18 }
 0x35e   :  { %3550 = vperm.xlu2 %3959, %v3408_v57  }
 0x35f   :  { %v1157_v51 = vmax.f32 %v1080_v43, 0.0 }
 0x360   :  { %3877 = vmatmul.msk.f32.gmra.mxu2 %vm1545_vm4, %v1143_v41  ;;  %v5642_v63 = vpop.permute.xlu1 %3302  ;;  %v5648_v58 = vpop.permute.xlu2 %3337 }
 0x361   :  { %7397 = vst [vmem:[#allocation12_spill] sm:$0xff] %v5642_v63 }
 0x362   :  { %7398 = vst [vmem:[#allocation13_spill] sm:$0xff] %v5648_v58  ;;  %v5723_v57 = vpop.permute.xlu0 %3357 }
 0x363   :  { %7408 = vst [vmem:[#allocation23_spill] sm:$0xff] %v5723_v57 }
 0x364   :  { %3843 = vmatmul.msk.f32.gmra.mxu3 %vm1545_vm4, %v1481_v20  ;;  %v1082_v39 = vpop.f32.mrf.mxu1 }
 0x365   :  { %v1083_v41 = vadd.f32 %v1082_v39, %v5362_v18 }
 0x367   :  { %v1159_v11 = vmax.f32 %v1083_v41, 0.0 }
 0x368   :  { %3878 = vmatmul.msk.f32.gmra.mxu2 %vm1545_vm4, %v1145_v21  ;;  %v5658_v56 = vpop.permute.xlu1 %3317  ;;  %v5666_v40 = vpop.permute.xlu2 %3352 }
 0x369   :  { %7400 = vst [vmem:[#allocation15_spill] sm:$0xff] %v5658_v56 }
 0x36a   :  { %7401 = vst [vmem:[#allocation16_spill] sm:$0xff] %v5666_v40 }
 0x36c   :  { %3844 = vmatmul.msk.f32.gmra.mxu3 %vm1545_vm4, %v1484_v38  ;;  %v1085_v30 = vpop.f32.mrf.mxu1 }
 0x36d   :  { %v1086_v4 = vadd.f32 %v1085_v30, %v5362_v18 }
 0x370   :  { %3879 = vmatmul.msk.f32.gmra.mxu2 %vm1545_vm4, %v1147_v8  ;;  %v5675_v49 = vpop.permute.xlu1 %3332  ;;  %v5680_v60 = vpop.permute.xlu2 %3415 }
 0x371   :  { %7403 = vst [vmem:[#allocation18_spill] sm:$0xff] %v5675_v49 }
 0x373   :  { %v1504_v26 = vpop.f32.mrf.mxu2 }
 0x374   :  { %3845 = vmatmul.msk.f32.gmra.mxu3 %vm1545_vm4, %v1504_v26  ;;  %v1088_v35 = vpop.f32.mrf.mxu1 }
 0x378   :  { %3880 = vmatmul.msk.f32.gmra.mxu2 %vm1545_vm4, %v1149_v15  ;;  %v5691_v46 = vpop.permute.xlu1 %3347  ;;  %v5703_v0 = vpop.permute.xlu2 %3430  ;;  %v1161_v15 = vmax.f32 %v1086_v4, 0.0 }
 0x379   :  { %7405 = vst [vmem:[#allocation20_spill] sm:$0xff] %v5691_v46 }
 0x37b   :  { %v1507_v55 = vpop.f32.mrf.mxu2 }
 0x37c   :  { %3846 = vmatmul.msk.f32.gmra.mxu3 %vm1545_vm4, %v1507_v55  ;;  %v1091_v21 = vpop.f32.mrf.mxu1 }
 0x380   :  { %3881 = vmatmul.msk.f32.gmra.mxu2 %vm1545_vm4, %v1151_v31  ;;  %v5711_v12 = vpop.permute.xlu1 %3362  ;;  %v5719_v45 = vpop.permute.xlu2 %3445  ;;  %v1089_v31 = vadd.f32 %v1088_v35, %v5362_v18 }
 0x381   :  { %7407 = vst [vmem:[#allocation22_spill] sm:$0xff] %v5711_v12 }
 0x382   :  { %v1163_v34 = vmax.f32 %v1089_v31, 0.0 }
 0x383   :  { %v1925_v22 = vpop.f32.mrf.mxu2 }
 0x384   :  { %v5672_v48 = vadd.f32 %v5664_v10, %v1925_v22  ;;  %v1094_v19 = vpop.f32.mrf.mxu1  ;;  %v5739_v22 = vpop.permute.xlu0 %3420 }
 0x386   :  { %3963 = vtanh.f32 %v5672_v48 }
 0x387   :  { %v1527_v14 = vpop.f32.mrf.mxu3 }
 0x388   :  { %3847 = vmatmul.msk.f32.gmra.mxu3 %vm1545_vm4, %v1527_v14  ;;  %3882 = vmatmul.msk.f32.gmra.mxu2 %vm1545_vm4, %v1153_v3  ;;  %v5731_v53 = vpop.permute.xlu1 %3425  ;;  %v5736_v44 = vpop.permute.xlu2 %3460 }
 0x38b   :  { %v1928_v52 = vpop.f32.mrf.mxu2 }
 0x38c   :  { %v3964_v54 = vpop.eup %3963  ;;  %v5683_v33 = vadd.f32 %v5664_v10, %v1928_v52 }
 0x38d   :  { %3141 = vrot.lane.b32.xlu1 %v3964_v54, %s4309_s10 }
 0x38e   :  { %3965 = vtanh.f32 %v5683_v33 }
 0x38f   :  { %v1530_v29 = vpop.f32.mrf.mxu3 }
 0x390   :  { %3848 = vmatmul.msk.f32.gmra.mxu3 %vm1545_vm4, %v1530_v29  ;;  %3883 = vmatmul.msk.f32.gmra.mxu2 %vm1545_vm4, %v1155_v5  ;;  %v5747_v52 = vpop.permute.xlu1 %3440  ;;  %v1092_v5 = vadd.f32 %v1091_v21, %v5362_v18  ;;  %v1097_v29 = vpop.f32.mrf.mxu1 }
 0x393   :  { %v1931_v27 = vpop.f32.mrf.mxu2 }
 0x394   :  { %v3966_v25 = vpop.eup %3965  ;;  %v5695_v47 = vadd.f32 %v5664_v10, %v1931_v27 }
 0x395   :  { %3143 = vrot.lane.b32.xlu2 %v3966_v25, %s4309_s10  ;;  %v5752_v25 = vpop.permute.xlu2 %3475 }
 0x396   :  { %3967 = vtanh.f32 %v5695_v47 }
 0x397   :  { %v1611_v61 = vpop.f32.mrf.mxu3 }
 0x398   :  { %v1612_v37 = vadd.f32 %v5700_v23, %v1611_v61  ;;  %3884 = vmatmul.msk.f32.gmra.mxu2 %vm1545_vm4, %v1157_v51  ;;  %v5759_v61 = vpop.permute.xlu0 %3435 }
 0x39a   :  { %v1659_v20 = vmax.f32 %v1612_v37, 0.0  ;;  %v1165_v37 = vmax.f32 %v1092_v5, 0.0 }
 0x39b   :  { %v1934_v9 = vpop.f32.mrf.mxu2 }
 0x39c   :  { %v3968_v36 = vpop.eup %3967  ;;  %v5714_v32 = vadd.f32 %v5664_v10, %v1934_v9  ;;  %3849 = vmatmul.msk.f32.vlgmr.msrb.gmra.mxu3 %vm1545_vm4, %v1659_v20  ;;  %v5764_v9 = vpop.permute.xlu1 %3455 }
 0x39d   :  { %3145 = vrot.lane.b32.xlu0 %v3968_v36, %s4309_s10  ;;  %v1095_v36 = vadd.f32 %v1094_v19, %v5362_v18 }
 0x39e   :  { %3969 = vtanh.f32 %v5714_v32  ;;  %v3916_v57 = vmul.f32 -1.442695, %v5714_v32 }
 0x39f   :  { %v1614_v38 = vpop.f32.mrf.mxu3 }
 0x3a0   :  { %v1615_v50 = vadd.f32 %v5700_v23, %v1614_v38  ;;  %3885 = vmatmul.msk.f32.gmra.mxu2 %vm1545_vm4, %v1159_v11 }
 0x3a2   :  { %v1660_v8 = vmax.f32 %v1615_v50, 0.0  ;;  %v1100_v50 = vpop.f32.mrf.mxu1 }
 0x3a3   :  { %v1937_v24 = vpop.f32.mrf.mxu2 }
 0x3a4   :  { %v3970_v62 = vpop.eup %3969  ;;  %v5727_v26 = vadd.f32 %v5664_v10, %v1937_v24  ;;  %3850 = vmatmul.msk.f32.gmra.mxu3 %vm1545_vm4, %v1660_v8  ;;  %v5772_v8 = vpop.permute.xlu2 %3490  ;;  %v1167_v24 = vmax.f32 %v1095_v36, 0.0 }
 0x3a5   :  { %3147 = vrot.lane.b32.xlu1 %v3970_v62, %s4309_s10  ;;  %v3914_v62 = vmul.f32 -1.442695, %v5683_v33 }
 0x3a6   :  { %3971 = vtanh.f32 %v5727_v26 }
 0x3a7   :  { %v1617_v28 = vpop.f32.mrf.mxu3 }
 0x3a8   :  { %v1618_v55 = vadd.f32 %v5700_v23, %v1617_v28  ;;  %3886 = vmatmul.msk.f32.gmra.mxu2 %vm1545_vm4, %v1161_v15  ;;  %v5776_v28 = vpop.permute.xlu0 %3450 }
 0x3aa   :  { %v1661_v39 = vmax.f32 %v1618_v55, 0.0  ;;  %v1098_v55 = vadd.f32 %v1097_v29, %v5362_v18 }
 0x3ab   :  { %v1940_v42 = vpop.f32.mrf.mxu2 }
 0x3ac   :  { %v3972_v3 = vpop.eup %3971  ;;  %v5742_v14 = vadd.f32 %v5664_v10, %v1940_v42  ;;  %3851 = vmatmul.msk.f32.gmra.mxu3 %vm1545_vm4, %v1661_v39  ;;  %v5781_v42 = vpop.permute.xlu1 %3470  ;;  %v1169_v33 = vmax.f32 %v1098_v55, 0.0 }
 0x3ad   :  { %3149 = vrot.lane.b32.xlu2 %v3972_v3, %s4309_s10  ;;  %v5789_v5 = vpop.permute.xlu2 %3505 }
 0x3ae   :  { %3973 = vtanh.f32 %v5742_v14  ;;  %7409 = vst [vmem:[#allocation24_spill] sm:$0xff] %v5789_v5 }
 0x3af   :  { %v1620_v30 = vpop.f32.mrf.mxu3 }
 0x3b0   :  { %v1621_v54 = vadd.f32 %v5700_v23, %v1620_v30  ;;  %3887 = vmatmul.msk.f32.gmra.mxu2 %vm1545_vm4, %v1163_v34  ;;  %v1103_v30 = vpop.f32.mrf.mxu1 }
 0x3b2   :  { %v1662_v43 = vmax.f32 %v1621_v54, 0.0 }
 0x3b3   :  { %v1943_v27 = vpop.f32.mrf.mxu2 }
 0x3b4   :  { %v3974_v35 = vpop.eup %3973  ;;  %v5755_v51 = vadd.f32 %v5664_v10, %v1943_v27  ;;  %3852 = vmatmul.msk.f32.gmra.mxu3 %vm1545_vm4, %v1662_v43  ;;  %v5793_v27 = vpop.permute.xlu0 %3465 }
 0x3b5   :  { %3151 = vrot.lane.b32.xlu0 %v3974_v35, %s4309_s10  ;;  %v1101_v35 = vadd.f32 %v1100_v50, %v5362_v18 }
 0x3b6   :  { %3975 = vtanh.f32 %v5755_v51 }
 0x3b7   :  { %v1623_v41 = vpop.f32.mrf.mxu3 }
 0x3b8   :  { %v1624_v20 = vadd.f32 %v5700_v23, %v1623_v41  ;;  %3888 = vmatmul.msk.f32.gmra.mxu2 %vm1545_vm4, %v1165_v37 }
 0x3ba   :  { %v1663_v11 = vmax.f32 %v1624_v20, 0.0 }
 0x3bb   :  { %v1946_v21 = vpop.f32.mrf.mxu2 }
 0x3bc   :  { %v3976_v38 = vpop.eup %3975  ;;  %v5768_v4 = vadd.f32 %v5664_v10, %v1946_v21  ;;  %3853 = vmatmul.msk.f32.gmra.mxu3 %vm1545_vm4, %v1663_v11  ;;  %v3913_v11 = vmul.f32 -1.442695, %v5672_v48  ;;  %v5810_v48 = vpop.permute.xlu2 %3520 }
 0x3bd   :  { %3153 = vrot.lane.b32.xlu1 %v3976_v38, %s4309_s10  ;;  %v5804_v38 = vpop.permute.xlu1 %3485  ;;  %7410 = vst [vmem:[#allocation25_spill] sm:$0xff] %v5810_v48 }
 0x3be   :  { %3977 = vtanh.f32 %v5768_v4 }
 0x3bf   :  { %v1626_v15 = vpop.f32.mrf.mxu3  ;;  %3979 = vpow2.f32 %v3914_v62  ;;  %v1106_v62 = vpop.f32.mrf.mxu1 }
 0x3c0   :  { %v1627_v19 = vadd.f32 %v5700_v23, %v1626_v15  ;;  %3889 = vmatmul.msk.f32.gmra.mxu2 %vm1545_vm4, %v1167_v24  ;;  %v1171_v24 = vmax.f32 %v1101_v35, 0.0  ;;  %v3917_v35 = vmul.f32 -1.442695, %v5727_v26 }
 0x3c2   :  { %v1664_v31 = vmax.f32 %v1627_v19, 0.0  ;;  %v1104_v19 = vadd.f32 %v1103_v30, %v5362_v18 }
 0x3c3   :  { %v1949_v39 = vpop.f32.mrf.mxu2 }
 0x3c4   :  { %v3978_v3 = vpop.eup %3977  ;;  %v5784_v34 = vadd.f32 %v5664_v10, %v1949_v39  ;;  %3854 = vmatmul.msk.f32.gmra.mxu3 %vm1545_vm4, %v1664_v31  ;;  %v5813_v39 = vpop.permute.xlu0 %3480 }
 0x3c5   :  { %3155 = vrot.lane.b32.xlu2 %v3978_v3, %s4309_s10  ;;  %v3980_v29 = vpop.eup %3979 }
 0x3c6   :  { %3981 = vtanh.f32 %v5784_v34  ;;  %v5796_v41 = vadd.f32 1.0, %v3980_v29 }
 0x3c7   :  { %v1629_v54 = vpop.f32.mrf.mxu3 }
 0x3c8   :  { %v1630_v43 = vadd.f32 %v5700_v23, %v1629_v54  ;;  %3890 = vmatmul.msk.f32.gmra.mxu2 %vm1545_vm4, %v1169_v33  ;;  %vm2585_vm6 = vweird.f32 %v5796_v41  ;;  %v2589_v32 = vand.u32 2147483647, %v5796_v41 }
 0x3ca   :  { %v1665_v37 = vmax.f32 %v1630_v43, 0.0  ;;  %v1173_v43 = vmax.f32 %v1104_v19, 0.0  ;;  %v5833_v19 = vpop.permute.xlu2 %3535  ;;  %vm2590_vm8 = vcmp.eq.f32.partialorder %v2589_v32, 8.507059e+37 }
 0x3cb   :  { %v1952_v20 = vpop.f32.mrf.mxu2  ;;  %7411 = vst [vmem:[#allocation26_spill] sm:$0xff] %v5833_v19 }
 0x3cc   :  { %v3982_v36 = vpop.eup %3981  ;;  %v5800_v21 = vadd.f32 %v5664_v10, %v1952_v20  ;;  %3855 = vmatmul.msk.f32.gmra.mxu3 %vm1545_vm4, %v1665_v37  ;;  %v5824_v37 = vpop.permute.xlu1 %3500 }
 0x3cd   :  { %3157 = vrot.lane.b32.xlu0 %v3982_v36, %s4309_s10 }
 0x3ce   :  { %3983 = vtanh.f32 %v5800_v21 }
 0x3cf   :  { %3985 = vrcp.f32 %v5796_v41  ;;  %v1632_v50 = vpop.f32.mrf.mxu3 }
 0x3d0   :  { %3987 = vpow2.f32 %v3913_v11  ;;  %v1633_v15 = vadd.f32 %v5700_v23, %v1632_v50  ;;  %3891 = vmatmul.msk.f32.gmra.mxu2 %vm1545_vm4, %v1171_v24  ;;  %v1107_v24 = vadd.f32 %v1106_v62, %v5362_v18  ;;  %v1109_v50 = vpop.f32.mrf.mxu1 }
 0x3d2   :  { %v1666_v55 = vmax.f32 %v1633_v15, 0.0  ;;  %v1175_v62 = vmax.f32 %v1107_v24, 0.0 }
 0x3d3   :  { %v1955_v31 = vpop.f32.mrf.mxu2 }
 0x3d4   :  { %v3984_v3 = vpop.eup %3983  ;;  %v5816_v33 = vadd.f32 %v5664_v10, %v1955_v31  ;;  %3856 = vmatmul.msk.f32.gmra.mxu3 %vm1545_vm4, %v1666_v55 }
 0x3d5   :  { %v5819_v54 = vpop.eup %3985  ;;  %3159 = vrot.lane.b32.xlu1 %v3984_v3, %s4309_s10 }
 0x3d6   :  { %v3988_v29 = vpop.eup %3987  ;;  %3989 = vtanh.f32 %v5816_v33  ;;  %v2581_v36 = vmul.f32 %v5819_v54, %v5796_v41  ;;  %vm2586_vm5 = vweird.f32 %v5819_v54 }
 0x3d7   :  { %v1635_v30 = vpop.f32.mrf.mxu3  ;;  %v5830_v11 = vadd.f32 1.0, %v3988_v29  ;;  %3991 = vpow2.f32 %v3917_v35  ;;  %v5841_v29 = vpop.permute.xlu0 %3495  ;;  %vm2587_vm7 = vmor %vm2585_vm6, %vm2586_vm5 }
 0x3d8   :  { %v1636_v20 = vadd.f32 %v5700_v23, %v1635_v30  ;;  %3892 = vmatmul.msk.f32.gmra.mxu2 %vm1545_vm4, %v1173_v43  ;;  %v2582_v3 = vsub.f32 1.0, %v2581_v36  ;;  %v3915_v43 = vmul.f32 -1.442695, %v5695_v47  ;;  %v5848_v36 = vpop.permute.xlu1 %3515  ;;  %v1112_v46 = vpop.f32.mrf.mxu1 }
 0x3d9   :  { %3993 = vrcp.f32 %v5830_v11  ;;  %7412 = vst [vmem:[#allocation27_spill] sm:$0xff] %v5848_v36  ;;  %vm2570_vm10 = vweird.f32 %v5830_v11 }
 0x3da   :  { %v1667_v15 = vmax.f32 %v1636_v20, 0.0 }
 0x3db   :  { %v1958_v26 = vpop.f32.mrf.mxu2 }
 0x3dc   :  { %v3990_v55 = vpop.eup %3989  ;;  %v5836_v31 = vadd.f32 %v5664_v10, %v1958_v26  ;;  %3857 = vmatmul.msk.f32.gmra.mxu3 %vm1545_vm4, %v1667_v15  ;;  %v2583_v15 = vmul.f32 %v5819_v54, %v2582_v3  ;;  %v1110_v26 = vadd.f32 %v1109_v50, %v5362_v18  ;;  %v5863_v50 = vpop.permute.xlu2 %3550 }
 0x3dd   :  { %3161 = vrot.lane.b32.xlu2 %v3990_v55, %s4309_s10  ;;  %v3992_v30 = vpop.eup %3991  ;;  %7413 = vst [vmem:[#allocation28_spill] sm:$0xff] %v5863_v50 }
 0x3de   :  { %3995 = vtanh.f32 %v5836_v31  ;;  %v5853_v24 = vadd.f32 1.0, %v3992_v30  ;;  %v2584_v3 = vadd.f32 %v5819_v54, %v2583_v15 }
 0x3df   :  { %v1638_v35 = vpop.f32.mrf.mxu3  ;;  %3997 = vpow2.f32 %v3915_v43  ;;  %v5851_v12 = vpop.eup %3993  ;;  %v1177_v43 = vmax.f32 %v1110_v26, 0.0 }
 0x3e0   :  { %v1639_v20 = vadd.f32 %v5700_v23, %v1638_v35  ;;  %3893 = vmatmul.msk.f32.gmra.mxu2 %vm1545_vm4, %v1175_v62  ;;  %v2591_v62 = vand.u32 2147483648, %v5796_v41  ;;  %v2588_v26 = vsel %vm2587_vm7, %v5819_v54, %v2584_v3  ;;  %v1113_v41 = vadd.f32 %v1112_v46, %v5362_v18  ;;  %v5880_v63 = vpop.permute.xlu1 %3530  ;;  %v1115_v3 = vpop.f32.mrf.mxu1 }
 0x3e1   :  { %7414 = vst [vmem:[#allocation29_spill] sm:$0xff] %v5880_v63  ;;  %vm2571_vm9 = vweird.f32 %v5851_v12  ;;  %vm2630_vm14 = vweird.f32 %v5853_v24 }
 0x3e2   :  { %v1668_v55 = vmax.f32 %v1639_v20, 0.0  ;;  %v5870_v20 = vpop.permute.xlu0 %3510  ;;  %v1179_v54 = vmax.f32 %v1113_v41, 0.0  ;;  %v2576_v41 = vand.u32 2147483648, %v5830_v11  ;;  %vm2572_vm11 = vmor %vm2570_vm10, %vm2571_vm9 }
 0x3e3   :  { %v1961_v47 = vpop.f32.mrf.mxu2 }
 0x3e4   :  { %v3996_v40 = vpop.eup %3995  ;;  %v5857_v35 = vadd.f32 %v5664_v10, %v1961_v47  ;;  %3858 = vmatmul.msk.f32.gmra.mxu3 %vm1545_vm4, %v1668_v55  ;;  %v2592_v47 = vor.u32 1.1754944e-38, %v2591_v62  ;;  %v3920_v62 = vmul.f32 -1.442695, %v5768_v4 }
 0x3e5   :  { %3163 = vrot.lane.b32.xlu0 %v3996_v40, %s4309_s10  ;;  %v2566_v40 = vmul.f32 %v5851_v12, %v5830_v11  ;;  %v3998_v15 = vpop.eup %3997 }
 0x3e6   :  { %3999 = vtanh.f32 %v5857_v35  ;;  %v5878_v49 = vadd.f32 1.0, %v3998_v15  ;;  %v2593_v17 = vsel %vm2590_vm8, %v2592_v47, %v2588_v26 }
 0x3e7   :  { %4001 = vrcp.f32 %v5853_v24  ;;  %v1641_v30 = vpop.f32.mrf.mxu3  ;;  %v2567_v50 = vsub.f32 1.0, %v2566_v40  ;;  %v3046_v32 = vsub.f32 1.0, %v2593_v17  ;;  %v1116_v17 = vadd.f32 %v1115_v3, %v5362_v18 }
 0x3e8   :  { %4003 = vpow2.f32 %v3916_v57  ;;  %v1642_v55 = vadd.f32 %v5700_v23, %v1641_v30  ;;  %3894 = vmatmul.msk.f32.gmra.mxu2 %vm1545_vm4, %v1177_v43  ;;  %v5916_v18 = vpop.permute.xlu1 %3545  ;;  %v2574_v3 = vand.u32 2147483647, %v5830_v11  ;;  %vm2600_vm2 = vweird.f32 %v5878_v49 }
 0x3e9   :  { %7416 = vst [vmem:[#allocation31_spill] sm:$0xff] %v5916_v18 }
 0x3ea   :  { %v1669_v58 = vmax.f32 %v1642_v55, 0.0  ;;  %v5901_v4 = vpop.permute.xlu0 %3525  ;;  %vm2575_vm12 = vcmp.eq.f32.partialorder %v2574_v3, 8.507059e+37 }
 0x3eb   :  { %v1964_v59 = vpop.f32.mrf.mxu2  ;;  %7415 = vst [vmem:[#allocation30_spill] sm:$0xff] %v5901_v4 }
 0x3ec   :  { %v4000_v56 = vpop.eup %3999  ;;  %v5883_v57 = vadd.f32 %v5664_v10, %v1964_v59  ;;  %3859 = vmatmul.msk.f32.gmra.mxu3 %vm1545_vm4, %v1669_v58  ;;  %v2568_v59 = vmul.f32 %v5851_v12, %v2567_v50 }
 0x3ed   :  { %v5886_v43 = vpop.eup %4001  ;;  %3165 = vrot.lane.b32.xlu1 %v4000_v56, %s4309_s10 }
 0x3ee   :  { %v4004_v46 = vpop.eup %4003  ;;  %4005 = vtanh.f32 %v5883_v57  ;;  %v2626_v56 = vmul.f32 %v5886_v43, %v5853_v24  ;;  %v2569_v50 = vadd.f32 %v5851_v12, %v2568_v59  ;;  %vm2631_vm13 = vweird.f32 %v5886_v43 }
 0x3ef   :  { %4007 = vrcp.f32 %v5878_v49  ;;  %v3144_v30 = vpop.permute.xlu2 %3143  ;;  %v1644_v40 = vpop.f32.mrf.mxu3  ;;  %v5899_v55 = vadd.f32 1.0, %v4004_v46  ;;  %vm2632_vm15 = vmor %vm2630_vm14, %vm2631_vm13 }
 0x3f0   :  { %v5893_v15 = vmul.f32 %v3144_v30, %v3046_v32  ;;  %v1645_v58 = vadd.f32 %v5700_v23, %v1644_v40  ;;  %3895 = vmatmul.msk.f32.gmra.mxu2 %vm1545_vm4, %v1179_v54  ;;  %4009 = vpow2.f32 %v3920_v62  ;;  %v3918_v54 = vmul.f32 -1.442695, %v5742_v14 }
 0x3f1   :  { %v2627_v46 = vsub.f32 1.0, %v2626_v56  ;;  %4011 = vrcp.f32 %v5899_v55  ;;  %v1181_v62 = vmax.f32 %v1116_v17, 0.0  ;;  %v2573_v59 = vsel %vm2572_vm11, %v5851_v12, %v2569_v50 }
 0x3f2   :  { %v1670_v26 = vmax.f32 %v1645_v58, 0.0  ;;  %v2577_v58 = vor.u32 1.1754944e-38, %v2576_v41  ;;  %v5933_v50 = vpop.permute.xlu0 %3540  ;;  %vm2615_vm8 = vweird.f32 %v5899_v55 }
 0x3f3   :  { %v1967_v47 = vpop.f32.mrf.mxu2  ;;  %7417 = vst [vmem:[#allocation32_spill] sm:$0xff] %v5933_v50 }
 0x3f4   :  { %v4006_v32 = vpop.eup %4005  ;;  %v5909_v30 = vadd.f32 %v5664_v10, %v1967_v47  ;;  %3860 = vmatmul.msk.f32.gmra.mxu3 %vm1545_vm4, %v1670_v26  ;;  %v2628_v47 = vmul.f32 %v5886_v43, %v2627_v46 }
 0x3f5   :  { %v5912_v40 = vpop.eup %4007  ;;  %3167 = vrot.lane.b32.xlu2 %v4006_v32, %s4309_s10  ;;  %v2578_v32 = vsel %vm2575_vm12, %v2577_v58, %v2573_v59  ;;  %v3919_v58 = vmul.f32 -1.442695, %v5755_v51 }
 0x3f6   :  { %4013 = vtanh.f32 %v5909_v30  ;;  %v4010_v56 = vpop.eup %4009  ;;  %v2596_v11 = vmul.f32 %v5912_v40, %v5878_v49  ;;  %v2629_v46 = vadd.f32 %v5886_v43, %v2628_v47  ;;  %vm2601_vm1 = vweird.f32 %v5912_v40 }
 0x3f7   :  { %v1647_v14 = vpop.f32.mrf.mxu3  ;;  %4015 = vpow2.f32 %v3918_v54  ;;  %v5929_v16 = vpop.eup %4011  ;;  %v5931_v18 = vadd.f32 1.0, %v4010_v56  ;;  %v2634_v56 = vand.u32 2147483647, %v5853_v24  ;;  %vm2602_vm5 = vmor %vm2600_vm2, %vm2601_vm1 }
 0x3f8   :  { %v1648_v26 = vadd.f32 %v5700_v23, %v1647_v14  ;;  %3896 = vmatmul.msk.f32.gmra.mxu2 %vm1545_vm4, %v1181_v62  ;;  %v2597_v3 = vsub.f32 1.0, %v2596_v11  ;;  %v3045_v62 = vsub.f32 1.0, %v2578_v32  ;;  %v2636_v14 = vand.u32 2147483648, %v5853_v24 }
 0x3f9   :  { %v2611_v11 = vmul.f32 %v5929_v16, %v5899_v55  ;;  %v2633_v51 = vsel %vm2632_vm15, %v5886_v43, %v2629_v46  ;;  %vm2635_vm0 = vcmp.eq.f32.partialorder %v2634_v56, 8.507059e+37  ;;  %vm2616_vm7 = vweird.f32 %v5929_v16 }
 0x3fa   :  { %v1671_v17 = vmax.f32 %v1648_v26, 0.0  ;;  %v2637_v2 = vor.u32 1.1754944e-38, %v2636_v14  ;;  %v5967_v46 = vpop.permute.xlu0 %3555  ;;  %v2604_v14 = vand.u32 2147483647, %v5878_v49  ;;  %vm2617_vm9 = vmor %vm2615_vm8, %vm2616_vm7  ;;  %vm2675_vm12 = vweird.f32 %v5931_v18 }
 0x3fb   :  { %v1970_v12 = vpop.f32.mrf.mxu2  ;;  %v2612_v63 = vsub.f32 1.0, %v2611_v11  ;;  %7418 = vst [vmem:[#allocation33_spill] sm:$0xff] %v5967_v46 }
 0x3fc   :  { %v4014_v41 = vpop.eup %4013  ;;  %v5936_v54 = vadd.f32 %v5664_v10, %v1970_v12  ;;  %3861 = vmatmul.msk.f32.gmra.mxu3 %vm1545_vm4, %v1671_v17  ;;  %v2598_v12 = vmul.f32 %v5912_v40, %v2597_v3  ;;  %v2638_v6 = vsel %vm2635_vm0, %v2637_v2, %v2633_v51  ;;  %v2606_v2 = vand.u32 2147483648, %v5878_v49 }
 0x3fd   :  { %3169 = vrot.lane.b32.xlu0 %v4014_v41, %s4309_s10  ;;  %v4016_v59 = vpop.eup %4015  ;;  %v3049_v3 = vsub.f32 1.0, %v2638_v6  ;;  %vm2605_vm6 = vcmp.eq.f32.partialorder %v2604_v14, 8.507059e+37 }
 0x3fe   :  { %4017 = vtanh.f32 %v5936_v54  ;;  %v5955_v41 = vadd.f32 1.0, %v4016_v59  ;;  %v2607_v11 = vor.u32 1.1754944e-38, %v2606_v2 }
 0x3ff   :  { %4019 = vrcp.f32 %v5931_v18  ;;  %v1650_v26 = vpop.f32.mrf.mxu3  ;;  %v3142_v47 = vpop.permute.xlu1 %3141 }
 0x400   :  { %v1651_v17 = vadd.f32 %v5700_v23, %v1650_v26  ;;  %v5951_v32 = vmul.f32 %v3142_v47, %v3045_v62  ;;  %4021 = vpow2.f32 %v3919_v58  ;;  %v2599_v62 = vadd.f32 %v5912_v40, %v2598_v12 }
 0x401   :  { %4023 = vrcp.f32 %v5955_v41  ;;  %v2613_v58 = vmul.f32 %v5929_v16, %v2612_v63 }
 0x402   :  { %v1672_v24 = vmax.f32 %v1651_v17, 0.0 }
 0x403   :  { %v1973_v1 = vpop.f32.mrf.mxu2  ;;  %v2614_v12 = vadd.f32 %v5929_v16, %v2613_v58 }
 0x404   :  { %v4018_v19 = vpop.eup %4017  ;;  %v5958_v7 = vadd.f32 %v5664_v10, %v1973_v1  ;;  %3862 = vmatmul.msk.f32.gmra.mxu3 %vm1545_vm4, %v1672_v24  ;;  %v3923_v1 = vmul.f32 -1.442695, %v5816_v33  ;;  %v2621_v33 = vand.u32 2147483648, %v5899_v55  ;;  %v3921_v24 = vmul.f32 -1.442695, %v5784_v34 }
 0x405   :  { %v5963_v43 = vpop.eup %4019  ;;  %3171 = vrot.lane.b32.xlu1 %v4018_v19, %s4309_s10  ;;  %v2603_v19 = vsel %vm2602_vm5, %v5912_v40, %v2599_v62  ;;  %v2618_v58 = vsel %vm2617_vm9, %v5929_v16, %v2614_v12 }
 0x406   :  { %4025 = vtanh.f32 %v5958_v7  ;;  %v4022_v56 = vpop.eup %4021  ;;  %v2671_v47 = vmul.f32 %v5963_v43, %v5931_v18  ;;  %v2608_v63 = vsel %vm2605_vm6, %v2607_v11, %v2603_v19  ;;  %vm2676_vm11 = vweird.f32 %v5963_v43 }
 0x407   :  { %v3150_v59 = vpop.permute.xlu2 %3149  ;;  %4027 = vpow2.f32 %v3923_v1  ;;  %v5981_v6 = vpop.eup %4023  ;;  %v5983_v49 = vadd.f32 1.0, %v4022_v56  ;;  %vm2677_vm13 = vmor %vm2675_vm12, %vm2676_vm11 }
 0x408   :  { %v5975_v26 = vmul.f32 %v3150_v59, %v3049_v3  ;;  %v2672_v1 = vsub.f32 1.0, %v2671_v47  ;;  %v2619_v3 = vand.u32 2147483647, %v5899_v55  ;;  %v3047_v59 = vsub.f32 1.0, %v2608_v63 }
 0x409   :  { %v2641_v56 = vmul.f32 %v5981_v6, %v5955_v41  ;;  %v2622_v55 = vor.u32 1.1754944e-38, %v2621_v33  ;;  %vm2646_vm15 = vweird.f32 %v5981_v6  ;;  %vm2660_vm5 = vweird.f32 %v5983_v49 }
 0x40a   :  { %v2673_v11 = vmul.f32 %v5963_v43, %v2672_v1  ;;  %vm2620_vm10 = vcmp.eq.f32.partialorder %v2619_v3, 8.507059e+37  ;;  %v2681_v1 = vand.u32 2147483648, %v5931_v18 }
 0x40b   :  { %v1653_v17 = vpop.f32.mrf.mxu3  ;;  %v1976_v51 = vpop.f32.mrf.mxu2  ;;  %v2642_v12 = vsub.f32 1.0, %v2641_v56 }
 0x40c   :  { %v4026_v40 = vpop.eup %4025  ;;  %v1654_v62 = vadd.f32 %v5700_v23, %v1653_v17  ;;  %v5990_v2 = vadd.f32 %v5664_v10, %v1976_v51  ;;  %v2623_v17 = vsel %vm2620_vm10, %v2622_v55, %v2618_v58  ;;  %v3922_v51 = vmul.f32 -1.442695, %v5800_v21 }
 0x40d   :  { %3173 = vrot.lane.b32.xlu2 %v4026_v40, %s4309_s10  ;;  %v4028_v19 = vpop.eup %4027  ;;  %v3048_v21 = vsub.f32 1.0, %v2623_v17  ;;  %v2643_v58 = vmul.f32 %v5981_v6, %v2642_v12 }
 0x40e   :  { %v1673_v14 = vmax.f32 %v1654_v62, 0.0  ;;  %4029 = vtanh.f32 %v5990_v2  ;;  %v6005_v63 = vadd.f32 1.0, %v4028_v19 }
 0x40f   :  { %4031 = vrcp.f32 %v5983_v49  ;;  %v3146_v34 = vpop.permute.xlu0 %3145 }
 0x410   :  { %4033 = vpow2.f32 %v3921_v24  ;;  %v6000_v47 = vmul.f32 %v3146_v34, %v3047_v59  ;;  %3863 = vmatmul.msk.f32.gmra.mxu3 %vm1545_vm4, %v1673_v14  ;;  %v2674_v14 = vadd.f32 %v5963_v43, %v2673_v11  ;;  %v2682_v11 = vor.u32 1.1754944e-38, %v2681_v1 }
 0x411   :  { %vm2720_vm9 = vweird.f32 %v6005_v63 }
 0x412   :  { %v2678_v19 = vsel %vm2677_vm13, %v5963_v43, %v2674_v14  ;;  %v2651_v43 = vand.u32 2147483648, %v5955_v41 }
 0x413   :  { %v1656_v40 = vpop.f32.mrf.mxu3  ;;  %v1979_v16 = vpop.f32.mrf.mxu2 }
 0x414   :  { %v4030_v62 = vpop.eup %4029  ;;  %v1657_v46 = vadd.f32 %v5700_v23, %v1656_v40  ;;  %v6009_v24 = vadd.f32 %v5664_v10, %v1979_v16  ;;  %v2679_v23 = vand.u32 2147483647, %v5931_v18 }
 0x415   :  { %v6013_v33 = vpop.eup %4031  ;;  %3175 = vrot.lane.b32.xlu0 %v4030_v62, %s4309_s10 }
 0x416   :  { %v4034_v3 = vpop.eup %4033  ;;  %v1674_v59 = vmax.f32 %v1657_v46, 0.0  ;;  %4035 = vtanh.f32 %v6009_v24  ;;  %v2656_v46 = vmul.f32 %v6013_v33, %v5983_v49  ;;  %vm2680_vm14 = vcmp.eq.f32.partialorder %v2679_v23, 8.507059e+37 }
 0x417   :  { %4037 = vrcp.f32 %v6005_v63  ;;  %v3148_v34 = vpop.permute.xlu1 %3147  ;;  %v6028_v55 = vadd.f32 1.0, %v4034_v3  ;;  %v2683_v17 = vsel %vm2680_vm14, %v2682_v11, %v2678_v19  ;;  %v2649_v3 = vand.u32 2147483647, %v5955_v41 }
 0x418   :  { %4039 = vpow2.f32 %v3922_v51  ;;  %v6022_v56 = vmul.f32 %v3148_v34, %v3048_v21  ;;  %3864 = vmatmul.msk.f32.gmra.mxu3 %vm1545_vm4, %v1674_v59  ;;  %v2644_v51 = vadd.f32 %v5981_v6, %v2643_v58  ;;  %v2657_v12 = vsub.f32 1.0, %v2656_v46 }
 0x419   :  { %4041 = vrcp.f32 %v6028_v55  ;;  %vm2645_vm4 = vweird.f32 %v5955_v41  ;;  %v3926_v21 = vmul.f32 -1.442695, %v5883_v57  ;;  %v3052_v1 = vsub.f32 1.0, %v2683_v17 }
 0x41a   :  { %vm2647_vm0 = vmor %vm2645_vm4, %vm2646_vm15  ;;  %v2658_v19 = vmul.f32 %v6013_v33, %v2657_v12  ;;  %v2652_v57 = vor.u32 1.1754944e-38, %v2651_v43  ;;  %vm2650_vm1 = vcmp.eq.f32.partialorder %v2649_v3, 8.507059e+37  ;;  %v3924_v41 = vmul.f32 -1.442695, %v5836_v31 }
 0x41b   :  { %v1982_v18 = vpop.f32.mrf.mxu2  ;;  %v2648_v58 = vsel %vm2647_vm0, %v5981_v6, %v2644_v51  ;;  %vm2661_vm2 = vweird.f32 %v6013_v33  ;;  %v2666_v12 = vand.u32 2147483648, %v5983_v49  ;;  %v2664_v43 = vand.u32 2147483647, %v5983_v49 }
 0x41c   :  { %v4036_v40 = vpop.eup %4035  ;;  %v6031_v16 = vadd.f32 %v5664_v10, %v1982_v18  ;;  %v2659_v6 = vadd.f32 %v6013_v33, %v2658_v19  ;;  %vm2662_vm6 = vmor %vm2660_vm5, %vm2661_vm2  ;;  %vm2690_vm13 = vweird.f32 %v6028_v55 }
 0x41d   :  { %v6035_v62 = vpop.eup %4037  ;;  %3177 = vrot.lane.b32.xlu1 %v4036_v40, %s4309_s10  ;;  %v2653_v40 = vsel %vm2650_vm1, %v2652_v57, %v2648_v58  ;;  %vm2665_vm7 = vcmp.eq.f32.partialorder %v2664_v43, 8.507059e+37 }
 0x41e   :  { %v4040_v14 = vpop.eup %4039  ;;  %4043 = vtanh.f32 %v6031_v16  ;;  %v2716_v46 = vmul.f32 %v6035_v62, %v6005_v63  ;;  %v3050_v31 = vsub.f32 1.0, %v2653_v40  ;;  %vm2721_vm8 = vweird.f32 %v6035_v62 }
 0x41f   :  { %v3156_v59 = vpop.permute.xlu2 %3155  ;;  %v1752_v23 = vpop.f32.mrf.mxu3  ;;  %v6050_v11 = vadd.f32 1.0, %v4040_v14  ;;  %4045 = vpow2.f32 %v3926_v21  ;;  %v6069_v14 = vld [vmem:[%s7388_s11] ss:$0 sm:$0xff]  ;;  %vm2722_vm10 = vmor %vm2720_vm9, %vm2721_vm8 }
 0x420   :  { %v6044_v34 = vmul.f32 %v3156_v59, %v3052_v1  ;;  %v6052_v18 = vpop.eup %4041  ;;  %v2717_v51 = vsub.f32 1.0, %v2716_v46  ;;  %v3925_v46 = vmul.f32 -1.442695, %v5857_v35  ;;  %v6083_v13 = vadd.f32 %v6069_v14, %v1752_v23 }
 0x421   :  { %4047 = vrcp.f32 %v6050_v11  ;;  %v2686_v58 = vmul.f32 %v6052_v18, %v6028_v55  ;;  %v2726_v23 = vand.u32 2147483648, %v6005_v63  ;;  %vm2691_vm12 = vweird.f32 %v6052_v18 }
 0x422   :  { %v2718_v49 = vmul.f32 %v6035_v62, %v2717_v51  ;;  %vm6126_vm14 = vmor %vm2690_vm13, %vm2691_vm12  ;;  %vm2705_vm0 = vweird.f32 %v6050_v11 }
 0x423   :  { %v1985_v17 = vpop.f32.mrf.mxu2  ;;  %v2687_v4 = vsub.f32 1.0, %v2686_v58 }
 0x424   :  { %v4044_v1 = vpop.eup %4043  ;;  %v6056_v59 = vadd.f32 %v5664_v10, %v1985_v17  ;;  %v2663_v17 = vsel %vm2662_vm6, %v6013_v33, %v2659_v6  ;;  %v2719_v33 = vadd.f32 %v6035_v62, %v2718_v49 }
 0x425   :  { %3179 = vrot.lane.b32.xlu2 %v4044_v1, %s4309_s10  ;;  %v4046_v19 = vpop.eup %4045  ;;  %v2688_v43 = vmul.f32 %v6052_v18, %v2687_v4 }
 0x426   :  { %4049 = vtanh.f32 %v6056_v59  ;;  %v6080_v1 = vadd.f32 1.0, %v4046_v19  ;;  %v2727_v19 = vor.u32 1.1754944e-38, %v2726_v23  ;;  %v3929_v23 = vmul.f32 -1.442695, %v5958_v7 }
 0x427   :  { %4051 = vpow2.f32 %v3924_v41  ;;  %v3152_v21 = vpop.permute.xlu0 %3151  ;;  %v1755_v3 = vpop.f32.mrf.mxu3  ;;  %v2667_v41 = vor.u32 1.1754944e-38, %v2666_v12  ;;  %v2724_v12 = vand.u32 2147483647, %v6005_v63  ;;  %v3927_v7 = vmul.f32 -1.442695, %v5909_v30 }
 0x428   :  { %v6074_v57 = vmul.f32 %v3152_v21, %v3050_v31  ;;  %v6078_v40 = vpop.eup %4047  ;;  %4053 = vpow2.f32 %v3925_v46  ;;  %vm2765_vm6 = vweird.f32 %v6080_v1 }
 0x429   :  { %v2668_v50 = vsel %vm2665_vm7, %v2667_v41, %v2663_v17  ;;  %4055 = vtanh.f32 %v6083_v13  ;;  %v2701_v21 = vmul.f32 %v6078_v40, %v6050_v11  ;;  %vm2725_vm11 = vcmp.eq.f32.partialorder %v2724_v12, 8.507059e+37 }
 0x42a   :  { %v3051_v51 = vsub.f32 1.0, %v2668_v50  ;;  %v2723_v50 = vsel %vm2722_vm10, %v6035_v62, %v2719_v33  ;;  %v6107_v17 = vadd.f32 %v6069_v14, %v1755_v3  ;;  %v2689_v41 = vadd.f32 %v6052_v18, %v2688_v43 }
 0x42b   :  { %v1988_v48 = vpop.f32.mrf.mxu2  ;;  %v2728_v4 = vsel %vm2725_vm11, %v2727_v19, %v2723_v50  ;;  %v2702_v5 = vsub.f32 1.0, %v2701_v21  ;;  %v2696_v62 = vand.u32 2147483648, %v6028_v55  ;;  %v2694_v3 = vand.u32 2147483647, %v6028_v55 }
 0x42c   :  { %v4050_v36 = vpop.eup %4049  ;;  %v6086_v35 = vadd.f32 %v5664_v10, %v1988_v48  ;;  %v2693_v50 = vsel %vm6126_vm14, %v6052_v18, %v2689_v41  ;;  %vm2706_vm4 = vweird.f32 %v6078_v40 }
 0x42d   :  { %v4052_v6 = vpop.eup %4051  ;;  %3181 = vrot.lane.b32.xlu0 %v4050_v36, %s4309_s10  ;;  %v2703_v55 = vmul.f32 %v6078_v40, %v2702_v5  ;;  %vm2695_vm15 = vcmp.eq.f32.partialorder %v2694_v3, 8.507059e+37  ;;  %vm6167_vm1 = vmor %vm2705_vm0, %vm2706_vm4 }
 0x42e   :  { %4057 = vtanh.f32 %v6086_v35  ;;  %v6100_v36 = vadd.f32 1.0, %v4052_v6  ;;  %v4054_v46 = vpop.eup %4053 }
 0x42f   :  { %4059 = vrcp.f32 %v6080_v1  ;;  %v1758_v48 = vpop.f32.mrf.mxu3  ;;  %v3154_v31 = vpop.permute.xlu1 %3153  ;;  %v2704_v3 = vadd.f32 %v6078_v40, %v2703_v55 }
 0x430   :  { %v6102_v58 = vmul.f32 %v3154_v31, %v3051_v51  ;;  %v4056_v63 = vpop.eup %4055  ;;  %4061 = vrcp.f32 %v6100_v36  ;;  %v6130_v31 = vadd.f32 1.0, %v4054_v46  ;;  %v6147_v30 = vadd.f32 %v6069_v14, %v1758_v48 }
 0x431   :  { %4063 = vtanh.f32 %v6107_v17  ;;  %v2709_v48 = vand.u32 2147483647, %v6050_v11  ;;  %vm2735_vm10 = vweird.f32 %v6100_v36 }
 0x432   :  { %vm2750_vm14 = vweird.f32 %v6130_v31 }
 0x433   :  { %v1991_v49 = vpop.f32.mrf.mxu2  ;;  %vm2710_vm2 = vcmp.eq.f32.partialorder %v2709_v48, 8.507059e+37 }
 0x434   :  { %v4058_v6 = vpop.eup %4057  ;;  %v6112_v51 = vadd.f32 %v5664_v10, %v1991_v49  ;;  %v3055_v10 = vsub.f32 1.0, %v2728_v4  ;;  %v2711_v4 = vand.u32 2147483648, %v6050_v11 }
 0x435   :  { %v6115_v33 = vpop.eup %4059  ;;  %3183 = vrot.lane.b32.xlu1 %v4058_v6, %s4309_s10  ;;  %2373 = vrot.lane.b32.xlu0 %v4056_v63, %s4309_s10  ;;  %v2697_v63 = vor.u32 1.1754944e-38, %v2696_v62  ;;  %v3575_v6 = vmul.f32 %v5731_v53, %v6000_v47  ;;  %v6156_v53 = vld [vmem:[%s7390_s13] ss:$0 sm:$0xff] }
 0x436   :  { %4065 = vtanh.f32 %v6112_v51  ;;  %v2761_v49 = vmul.f32 %v6115_v33, %v6080_v1  ;;  %v6140_v46 = vpop.eup %4061  ;;  %vm2766_vm5 = vweird.f32 %v6115_v33 }
 0x437   :  { %v3162_v43 = vpop.permute.xlu2 %3161  ;;  %v1761_v21 = vpop.f32.mrf.mxu3  ;;  %4067 = vpow2.f32 %v3929_v23  ;;  %v2698_v41 = vsel %vm2695_vm15, %v2697_v63, %v2693_v50  ;;  %v3928_v50 = vmul.f32 -1.442695, %v5936_v54  ;;  %v2731_v63 = vmul.f32 %v6140_v46, %v6100_v36  ;;  %vm6207_vm7 = vmor %vm2765_vm6, %vm2766_vm5 }
 0x438   :  { %v3247_v19 = vmul.f32 %v3162_v43, %v3055_v10  ;;  %v4064_v5 = vpop.eup %4063  ;;  %4069 = vrcp.f32 %v6130_v31  ;;  %v2762_v47 = vsub.f32 1.0, %v2761_v49  ;;  %v3053_v12 = vsub.f32 1.0, %v2698_v41 }
 0x439   :  { %4071 = vpow2.f32 %v3927_v7  ;;  %v3573_v54 = vmul.f32 %v5680_v60, %v5951_v32  ;;  %v2771_v32 = vand.u32 2147483648, %v6080_v1  ;;  %vm2736_vm8 = vweird.f32 %v6140_v46 }
 0x43a   :  { %v3583_v18 = vmul.f32 %v5793_v27, %v3247_v19  ;;  %4073 = vtanh.f32 %v6147_v30  ;;  %v2708_v19 = vsel %vm6167_vm1, %v6078_v40, %v2704_v3  ;;  %v6186_v3 = vadd.f32 %v6069_v14, %v1761_v21  ;;  %vm6244_vm11 = vmor %vm2735_vm10, %vm2736_vm8 }
 0x43b   :  { %v1994_v62 = vpop.f32.mrf.mxu2  ;;  %v2769_v21 = vand.u32 2147483647, %v6080_v1 }
 0x43c   :  { %v4066_v10 = vpop.eup %4065  ;;  %v6151_v23 = vadd.f32 %v3583_v18, %v3575_v6  ;;  %v6159_v27 = vadd.f32 %v6156_v53, %v1994_v62  ;;  %v2712_v6 = vor.u32 1.1754944e-38, %v2711_v4  ;;  %v2763_v18 = vmul.f32 %v6115_v33, %v2762_v47 }
 0x43d   :  { %3185 = vrot.lane.b32.xlu2 %v4066_v10, %s4309_s10  ;;  %2375 = vrot.lane.b32.xlu1 %v4064_v5, %s4309_s10  ;;  %v4068_v49 = vpop.eup %4067  ;;  %vm2770_vm9 = vcmp.eq.f32.partialorder %v2769_v21, 8.507059e+37 }
 0x43e   :  { %4075 = vtanh.f32 %v6159_v27  ;;  %v6178_v41 = vpop.eup %4069  ;;  %v2713_v10 = vsel %vm2710_vm2, %v2712_v6, %v2708_v19  ;;  %v6183_v40 = vadd.f32 1.0, %v4068_v49  ;;  %v2764_v60 = vadd.f32 %v6115_v33, %v2763_v18 }
 0x43f   :  { %v3158_v55 = vpop.permute.xlu0 %3157  ;;  %v1764_v7 = vpop.f32.mrf.mxu3  ;;  %4077 = vpow2.f32 %v3928_v50  ;;  %v2746_v50 = vmul.f32 %v6178_v41, %v6130_v31  ;;  %v3930_v6 = vmul.f32 -1.442695, %v5990_v2  ;;  %v3932_v2 = vmul.f32 -1.442695, %v6031_v16 }
 0x440   :  { %v3245_v11 = vmul.f32 %v3158_v55, %v3053_v12  ;;  %v4072_v5 = vpop.eup %4071  ;;  %v2732_v12 = vsub.f32 1.0, %v2731_v63  ;;  %4079 = vtanh.f32 %v6186_v3  ;;  %v2768_v1 = vsel %vm6207_vm7, %v6115_v33, %v2764_v60 }
 0x441   :  { %v4074_v43 = vpop.eup %4073  ;;  %v6204_v19 = vadd.f32 1.0, %v4072_v5  ;;  %v2772_v5 = vor.u32 1.1754944e-38, %v2771_v32  ;;  %v6223_v33 = vadd.f32 %v6069_v14, %v1764_v7  ;;  %v2741_v16 = vand.u32 2147483648, %v6100_v36 }
 0x442   :  { %v3581_v62 = vmul.f32 %v5764_v9, %v3245_v11  ;;  %v3054_v9 = vsub.f32 1.0, %v2713_v10  ;;  %v3574_v10 = vmul.f32 %v5739_v22, %v5893_v15  ;;  %vm2751_vm13 = vweird.f32 %v6178_v41 }
 0x443   :  { %v1997_v4 = vpop.f32.mrf.mxu2  ;;  %v2773_v60 = vsel %vm2770_vm9, %v2772_v5, %v2768_v1  ;;  %v3931_v1 = vmul.f32 -1.442695, %v6009_v24  ;;  %v2756_v24 = vand.u32 2147483648, %v6130_v31  ;;  %vm6278_vm15 = vmor %vm2750_vm14, %vm2751_vm13  ;;  %vm2810_vm1 = vweird.f32 %v6183_v40 }
 0x444   :  { %v4076_v47 = vpop.eup %4075  ;;  %v6188_v55 = vadd.f32 %v3581_v62, %v3573_v54  ;;  %v6191_v48 = vadd.f32 %v6156_v53, %v1997_v4  ;;  %v2733_v54 = vmul.f32 %v6140_v46, %v2732_v12  ;;  %v2747_v4 = vsub.f32 1.0, %v2746_v50 }
 0x445   :  { %2377 = vrot.lane.b32.xlu2 %v4074_v43, %s4309_s10  ;;  %3187 = vrot.lane.b32.xlu0 %v4076_v47, %s4309_s10  ;;  %v4078_v62 = vpop.eup %4077  ;;  %v3058_v7 = vsub.f32 1.0, %v2773_v60  ;;  %v2739_v50 = vand.u32 2147483647, %v6100_v36  ;;  %vm2780_vm5 = vweird.f32 %v6204_v19 }
 0x446   :  { %4081 = vtanh.f32 %v6191_v48  ;;  %v4080_v47 = vpop.eup %4079  ;;  %v6233_v21 = vadd.f32 1.0, %v4078_v62 }
 0x447   :  { %4083 = vrcp.f32 %v6183_v40  ;;  %v1767_v63 = vpop.f32.mrf.mxu3  ;;  %v3160_v49 = vpop.permute.xlu1 %3159  ;;  %vm2740_vm12 = vcmp.eq.f32.partialorder %v2739_v50, 8.507059e+37 }
 0x448   :  { %v3246_v18 = vmul.f32 %v3160_v49, %v3054_v9  ;;  %4085 = vrcp.f32 %v6204_v19 }
 0x449   :  { %4087 = vpow2.f32 %v3930_v6 }
 0x44a   :  { %v3582_v43 = vmul.f32 %v5736_v44, %v3246_v18  ;;  %v2734_v44 = vadd.f32 %v6140_v46, %v2733_v54  ;;  %4089 = vtanh.f32 %v6223_v33  ;;  %v2748_v18 = vmul.f32 %v6178_v41, %v2747_v4 }
 0x44b   :  { %v2000_v12 = vpop.f32.mrf.mxu2 }
 0x44c   :  { %v4082_v9 = vpop.eup %4081  ;;  %v6225_v32 = vadd.f32 %v3582_v43, %v3574_v10  ;;  %v6228_v22 = vadd.f32 %v6156_v53, %v2000_v12  ;;  %v2738_v62 = vsel %vm6244_vm11, %v6140_v46, %v2734_v44  ;;  %v2742_v10 = vor.u32 1.1754944e-38, %v2741_v16 }
 0x44d   :  { %v6231_v15 = vpop.eup %4083  ;;  %3189 = vrot.lane.b32.xlu1 %v4082_v9, %s4309_s10  ;;  %2379 = vrot.lane.b32.xlu0 %v4080_v47, %s4309_s10  ;;  %v3578_v47 = vmul.f32 %v5747_v52, %v6074_v57  ;;  %v6263_v46 = vadd.f32 %v6069_v14, %v1767_v63  ;;  %v2749_v9 = vadd.f32 %v6178_v41, %v2748_v18  ;;  %v2754_v63 = vand.u32 2147483647, %v6130_v31 }
 0x44e   :  { %4091 = vtanh.f32 %v6228_v22  ;;  %v2806_v36 = vmul.f32 %v6231_v15, %v6183_v40  ;;  %v6255_v5 = vpop.eup %4085  ;;  %v2743_v60 = vsel %vm2740_vm12, %v2742_v10, %v2738_v62  ;;  %v2757_v10 = vor.u32 1.1754944e-38, %v2756_v24 }
 0x44f   :  { %4093 = vpow2.f32 %v3932_v2  ;;  %v3168_v49 = vpop.permute.xlu2 %3167  ;;  %v1770_v11 = vpop.f32.mrf.mxu3  ;;  %v2776_v31 = vmul.f32 %v6255_v5, %v6204_v19  ;;  %vm2755_vm4 = vcmp.eq.f32.partialorder %v2754_v63, 8.507059e+37  ;;  %vm2811_vm0 = vweird.f32 %v6231_v15 }
 0x450   :  { %v3250_v54 = vmul.f32 %v3168_v49, %v3058_v7  ;;  %4095 = vrcp.f32 %v6233_v21  ;;  %v4088_v43 = vpop.eup %4087  ;;  %v3056_v7 = vsub.f32 1.0, %v2743_v60  ;;  %v2816_v63 = vand.u32 2147483648, %v6183_v40  ;;  %vm6324_vm2 = vmor %vm2810_vm1, %vm2811_vm0 }
 0x451   :  { %v4090_v2 = vpop.eup %4089  ;;  %4097 = vpow2.f32 %v3931_v1  ;;  %v6284_v6 = vadd.f32 1.0, %v4088_v43  ;;  %v3576_v43 = vmul.f32 %v5703_v0, %v6022_v56  ;;  %vm2781_vm6 = vweird.f32 %v6255_v5 }
 0x452   :  { %v3586_v4 = vmul.f32 %v5813_v39, %v3250_v54  ;;  %v2807_v39 = vsub.f32 1.0, %v2806_v36  ;;  %4099 = vtanh.f32 %v6263_v46  ;;  %v2753_v54 = vsel %vm6278_vm15, %v6178_v41, %v2749_v9  ;;  %vm6373_vm9 = vmor %vm2780_vm5, %vm2781_vm6 }
 0x453   :  { %v2003_v12 = vpop.f32.mrf.mxu2  ;;  %v6301_v9 = vadd.f32 %v6069_v14, %v1770_v11  ;;  %vm2795_vm11 = vweird.f32 %v6233_v21  ;;  %vm2825_vm14 = vweird.f32 %v6284_v6 }
 0x454   :  { %v4092_v44 = vpop.eup %4091  ;;  %v6267_v16 = vadd.f32 %v3586_v4, %v3578_v47  ;;  %v6270_v52 = vadd.f32 %v6156_v53, %v2003_v12  ;;  %v2808_v47 = vmul.f32 %v6231_v15, %v2807_v39  ;;  %v2758_v12 = vsel %vm2755_vm4, %v2757_v10, %v2753_v54 }
 0x455   :  { %v4094_v57 = vpop.eup %4093  ;;  %3191 = vrot.lane.b32.xlu2 %v4092_v44, %s4309_s10  ;;  %2381 = vrot.lane.b32.xlu1 %v4090_v2, %s4309_s10  ;;  %v2777_v44 = vsub.f32 1.0, %v2776_v31  ;;  %v3057_v11 = vsub.f32 1.0, %v2758_v12  ;;  %v3933_v10 = vmul.f32 -1.442695, %v6056_v59  ;;  %v2786_v12 = vand.u32 2147483648, %v6204_v19 }
 0x456   :  { %4101 = vtanh.f32 %v6270_v52  ;;  %v6282_v49 = vpop.eup %4095  ;;  %v6291_v62 = vadd.f32 1.0, %v4094_v57  ;;  %v2809_v56 = vadd.f32 %v6231_v15, %v2808_v47  ;;  %v3577_v59 = vmul.f32 %v5759_v61, %v5975_v26 }
 0x457   :  { %v3164_v18 = vpop.permute.xlu0 %3163  ;;  %v1773_v1 = vpop.f32.mrf.mxu3  ;;  %v2791_v41 = vmul.f32 %v6282_v49, %v6233_v21  ;;  %4103 = vrcp.f32 %v6284_v6  ;;  %vm2796_vm8 = vweird.f32 %v6282_v49 }
 0x458   :  { %v3248_v36 = vmul.f32 %v3164_v18, %v3056_v7  ;;  %v4098_v4 = vpop.eup %4097  ;;  %4105 = vrcp.f32 %v6291_v62  ;;  %v2814_v7 = vand.u32 2147483647, %v6183_v40  ;;  %v2813_v40 = vsel %vm6324_vm2, %v6231_v15, %v2809_v56  ;;  %vm6390_vm12 = vmor %vm2795_vm11, %vm2796_vm8 }
 0x459   :  { %v4100_v60 = vpop.eup %4099  ;;  %v6311_v57 = vadd.f32 1.0, %v4098_v4  ;;  %4107 = vtanh.f32 %v6301_v9  ;;  %v2792_v50 = vsub.f32 1.0, %v2791_v41  ;;  %v2778_v4 = vmul.f32 %v6255_v5, %v2777_v44 }
 0x45a   :  { %v3584_v2 = vmul.f32 %v5781_v42, %v3248_v36  ;;  %v2784_v36 = vand.u32 2147483647, %v6204_v19  ;;  %vm2815_vm7 = vcmp.eq.f32.partialorder %v2814_v7, 8.507059e+37  ;;  %v3897_v44 = vmul.f32 -1.442695, %v6083_v13 }
 0x45b   :  { %v2006_v24 = vpop.f32.mrf.mxu2  ;;  %v2793_v15 = vmul.f32 %v6282_v49, %v2792_v50  ;;  %v2801_v13 = vand.u32 2147483648, %v6233_v21  ;;  %v2787_v19 = vor.u32 1.1754944e-38, %v2786_v12  ;;  %vm2855_vm1 = vweird.f32 %v6291_v62 }
 0x45c   :  { %v4102_v39 = vpop.eup %4101  ;;  %v6305_v0 = vadd.f32 %v3584_v2, %v3576_v43  ;;  %v6308_v42 = vadd.f32 %v6156_v53, %v2006_v24  ;;  %v2817_v2 = vor.u32 1.1754944e-38, %v2816_v63  ;;  %v2799_v63 = vand.u32 2147483647, %v6233_v21 }
 0x45d   :  { %2383 = vrot.lane.b32.xlu2 %v4100_v60, %s4309_s10  ;;  %3193 = vrot.lane.b32.xlu0 %v4102_v39, %s4309_s10  ;;  %v6335_v43 = vpop.eup %4103  ;;  %v6348_v39 = vadd.f32 %v6069_v14, %v1773_v1  ;;  %v3935_v1 = vmul.f32 -1.442695, %v6112_v51  ;;  %v2794_v50 = vadd.f32 %v6282_v49, %v2793_v15  ;;  %vm6377_vm10 = vcmp.eq.f32.partialorder %v2784_v36, 8.507059e+37 }
 0x45e   :  { %4109 = vtanh.f32 %v6308_v42  ;;  %v6340_v41 = vpop.eup %4105  ;;  %v2821_v26 = vmul.f32 %v6335_v43, %v6284_v6  ;;  %vm6394_vm13 = vcmp.eq.f32.partialorder %v2799_v63, 8.507059e+37  ;;  %vm2826_vm15 = vweird.f32 %v6335_v43 }
 0x45f   :  { %v6320_v18 = vpop.f32.mrf.mxu3  ;;  %v3166_v54 = vpop.permute.xlu1 %3165  ;;  %4111 = vrcp.f32 %v6311_v57  ;;  %v2798_v21 = vsel %vm6390_vm12, %v6282_v49, %v2794_v50  ;;  %v3898_v50 = vmul.f32 -1.442695, %v6107_v17  ;;  %vm2856_vm0 = vweird.f32 %v6340_v41  ;;  %vm6470_vm2 = vmor %vm2825_vm14, %vm2826_vm15 }
 0x460   :  { %v3249_v47 = vmul.f32 %v3166_v54, %v3057_v11  ;;  %v4108_v24 = vpop.eup %4107  ;;  %v2818_v11 = vsel %vm2815_vm7, %v2817_v2, %v2813_v40  ;;  %4113 = vpow2.f32 %v3933_v10  ;;  %v2851_v2 = vmul.f32 %v6340_v41, %v6291_v62  ;;  %vm6478_vm5 = vmor %vm2855_vm1, %vm2856_vm0 }
 0x461   :  { %4115 = vtanh.f32 %v6348_v39  ;;  %v3061_v7 = vsub.f32 1.0, %v2818_v11  ;;  %v6407_v63 = vadd.f32 %v6069_v14, %v6320_v18  ;;  %vm2840_vm7 = vweird.f32 %v6311_v57 }
 0x462   :  { %v3585_v60 = vmul.f32 %v5752_v25, %v3249_v47  ;;  %v2779_v25 = vadd.f32 %v6255_v5, %v2778_v4 }
 0x463   :  { %v2009_v56 = vpop.f32.mrf.mxu2 }
 0x464   :  { %v4110_v54 = vpop.eup %4109  ;;  %v6351_v31 = vadd.f32 %v3585_v60, %v3577_v59  ;;  %v6354_v61 = vadd.f32 %v6156_v53, %v2009_v56  ;;  %v3899_v59 = vmul.f32 -1.442695, %v6147_v30  ;;  %v2783_v15 = vsel %vm6373_vm9, %v6255_v5, %v2779_v25 }
 0x465   :  { %3195 = vrot.lane.b32.xlu1 %v4110_v54, %s4309_s10  ;;  %2385 = vrot.lane.b32.xlu0 %v4108_v24, %s4309_s10  ;;  %v6367_v10 = vpop.eup %4111  ;;  %v2822_v30 = vsub.f32 1.0, %v2821_v26  ;;  %v3934_v54 = vmul.f32 -1.442695, %v6086_v35  ;;  %v2852_v26 = vsub.f32 1.0, %v2851_v2  ;;  %v2831_v24 = vand.u32 2147483648, %v6284_v6 }
 0x466   :  { %4117 = vtanh.f32 %v6354_v61  ;;  %v4114_v56 = vpop.eup %4113  ;;  %v2836_v5 = vmul.f32 %v6367_v10, %v6311_v57  ;;  %vm2841_vm6 = vweird.f32 %v6367_v10 }
 0x467   :  { %4119 = vpow2.f32 %v3897_v44  ;;  %v3174_v47 = vpop.permute.xlu2 %3173  ;;  %v1779_v40 = vpop.f32.mrf.mxu3  ;;  %v2802_v44 = vor.u32 1.1754944e-38, %v2801_v13  ;;  %v2788_v13 = vsel %vm6377_vm10, %v2787_v19, %v2783_v15  ;;  %vm6504_vm9 = vmor %vm2840_vm7, %vm2841_vm6 }
 0x468   :  { %v3253_v60 = vmul.f32 %v3174_v47, %v3061_v7  ;;  %4121 = vpow2.f32 %v3935_v1  ;;  %v4116_v12 = vpop.eup %4115  ;;  %v2829_v7 = vand.u32 2147483647, %v6284_v6  ;;  %v6425_v47 = vadd.f32 1.0, %v4114_v56 }
 0x469   :  { %4123 = vpow2.f32 %v3899_v59  ;;  %v2803_v18 = vsel %vm6394_vm13, %v2802_v44, %v2798_v21  ;;  %v3059_v4 = vsub.f32 1.0, %v2788_v13  ;;  %v2837_v51 = vsub.f32 1.0, %v2836_v5 }
 0x46a   :  { %v3589_v11 = vmul.f32 %v5841_v29, %v3253_v60  ;;  %4125 = vtanh.f32 %v6407_v63  ;;  %v2853_v59 = vmul.f32 %v6340_v41, %v2852_v26  ;;  %v3060_v36 = vsub.f32 1.0, %v2803_v18 }
 0x46b   :  { %v2012_v25 = vpop.f32.mrf.mxu2  ;;  %vm6437_vm4 = vcmp.eq.f32.partialorder %v2829_v7, 8.507059e+37  ;;  %v2844_v56 = vand.u32 2147483647, %v6311_v57  ;;  %v3579_v21 = vmul.f32 %v5719_v45, %v6102_v58  ;;  %v6450_v13 = vadd.f32 %v6069_v14, %v1779_v40 }
 0x46c   :  { %v4118_v29 = vpop.eup %4117  ;;  %v6412_v1 = vadd.f32 %v6188_v55, %v3589_v11  ;;  %v6415_v49 = vadd.f32 %v6156_v53, %v2012_v25  ;;  %v2823_v55 = vmul.f32 %v6335_v43, %v2822_v30  ;;  %v2859_v40 = vand.u32 2147483647, %v6291_v62 }
 0x46d   :  { %v4120_v35 = vpop.eup %4119  ;;  %3197 = vrot.lane.b32.xlu2 %v4118_v29, %s4309_s10  ;;  %2387 = vrot.lane.b32.xlu1 %v4116_v12, %s4309_s10  ;;  %v2838_v12 = vmul.f32 %v6367_v10, %v2837_v51  ;;  %v2854_v29 = vadd.f32 %v6340_v41, %v2853_v59  ;;  %v2846_v18 = vand.u32 2147483648, %v6311_v57  ;;  %vm6508_vm10 = vcmp.eq.f32.partialorder %v2844_v56, 8.507059e+37 }
 0x46e   :  { %4127 = vtanh.f32 %v6415_v49  ;;  %v4122_v60 = vpop.eup %4121  ;;  %v6432_v15 = vadd.f32 1.0, %v4120_v35  ;;  %v2824_v44 = vadd.f32 %v6335_v43, %v2823_v55  ;;  %vm2860_vm8 = vcmp.eq.f32.partialorder %v2859_v40, 8.507059e+37 }
 0x46f   :  { %4129 = vpow2.f32 %v3934_v54  ;;  %v3170_v2 = vpop.permute.xlu0 %3169  ;;  %v6428_v17 = vpop.f32.mrf.mxu3  ;;  %v6447_v25 = vadd.f32 1.0, %v4122_v60  ;;  %v2858_v60 = vsel %vm6478_vm5, %v6340_v41, %v2854_v29  ;;  %v3936_v56 = vmul.f32 -1.442695, %v6159_v27 }
 0x470   :  { %v3251_v19 = vmul.f32 %v3170_v2, %v3059_v4  ;;  %4131 = vpow2.f32 %v3898_v50  ;;  %v4124_v11 = vpop.eup %4123  ;;  %v2832_v4 = vor.u32 1.1754944e-38, %v2831_v24  ;;  %v6526_v29 = vadd.f32 %v6069_v14, %v6428_v17 }
 0x471   :  { %4133 = vrcp.f32 %v6425_v47  ;;  %v4126_v54 = vpop.eup %4125  ;;  %v6484_v51 = vadd.f32 1.0, %v4124_v11  ;;  %v3938_v27 = vmul.f32 -1.442695, %v6228_v22  ;;  %v2094_v50 = vand.u32 2147483647, %v6432_v15 }
 0x472   :  { %v3587_v5 = vmul.f32 %v5804_v38, %v3251_v19  ;;  %4135 = vrcp.f32 %v6432_v15  ;;  %v2861_v38 = vand.u32 2147483648, %v6291_v62  ;;  %v2839_v62 = vadd.f32 %v6367_v10, %v2838_v12 }
 0x473   :  { %v2015_v26 = vpop.f32.mrf.mxu2  ;;  %4137 = vtanh.f32 %v6450_v13  ;;  %v2828_v19 = vsel %vm6470_vm2, %v6335_v43, %v2824_v44  ;;  %v3580_v12 = vmul.f32 %v5776_v28, %v6044_v34  ;;  %v2847_v44 = vor.u32 1.1754944e-38, %v2846_v18 }
 0x474   :  { %v4128_v7 = vpop.eup %4127  ;;  %v6455_v35 = vadd.f32 %v3587_v5, %v3579_v21  ;;  %v6458_v45 = vadd.f32 %v6156_v53, %v2015_v26  ;;  %v2862_v11 = vor.u32 1.1754944e-38, %v2861_v38  ;;  %v6517_v28 = vsel %vm6437_vm4, %v2832_v4, %v2828_v19 }
 0x475   :  { %v4130_v58 = vpop.eup %4129  ;;  %2389 = vrot.lane.b32.xlu2 %v4126_v54, %s4309_s10  ;;  %3199 = vrot.lane.b32.xlu0 %v4128_v7, %s4309_s10  ;;  %v2843_v34 = vsel %vm6504_vm9, %v6367_v10, %v2839_v62  ;;  %v3902_v38 = vmul.f32 -1.442695, %v6263_v46  ;;  %v3062_v17 = vsub.f32 1.0, %v6517_v28  ;;  %vm2870_vm11 = vweird.f32 %v6425_v47 }
 0x476   :  { %4139 = vtanh.f32 %v6458_v45  ;;  %v4132_v6 = vpop.eup %4131  ;;  %v6497_v21 = vadd.f32 1.0, %v4130_v58  ;;  %v2863_v57 = vsel %vm2860_vm8, %v2862_v11, %v2858_v60  ;;  %v6552_v4 = vsel %vm6508_vm10, %v2847_v44, %v2843_v34 }
 0x477   :  { %4141 = vrcp.f32 %v6447_v25  ;;  %v6487_v2 = vpop.f32.mrf.mxu3  ;;  %v3172_v59 = vpop.permute.xlu1 %3171  ;;  %v6545_v46 = vadd.f32 1.0, %v4132_v6  ;;  %v3900_v11 = vmul.f32 -1.442695, %v6186_v3  ;;  %v2874_v44 = vand.u32 2147483647, %v6425_v47 }
 0x478   :  { %v6495_v24 = vpop.eup %4133  ;;  %v3252_v5 = vmul.f32 %v3172_v59, %v3060_v36  ;;  %4143 = vrcp.f32 %v6484_v51  ;;  %v2876_v59 = vand.u32 2147483648, %v6425_v47  ;;  %vm2090_vm12 = vweird.f32 %v6432_v15 }
 0x479   :  { %v6512_v54 = vpop.eup %4135  ;;  %4145 = vrcp.f32 %v6497_v21  ;;  %vm2871_vm14 = vweird.f32 %v6495_v24  ;;  %vm6593_vm15 = vcmp.eq.f32.partialorder %v2874_v44, 8.507059e+37  ;;  %vm6608_vm4 = vcmp.eq.f32.partialorder %v2094_v50, 8.507059e+37 }
 0x47a   :  { %v3588_v36 = vmul.f32 %v5772_v8, %v3252_v5  ;;  %v4138_v26 = vpop.eup %4137  ;;  %v2866_v8 = vmul.f32 %v6495_v24, %v6425_v47  ;;  %4147 = vtanh.f32 %v6526_v29  ;;  %v2086_v18 = vmul.f32 %v6512_v54, %v6432_v15  ;;  %vm6625_vm0 = vmor %vm2870_vm11, %vm2871_vm14 }
 0x47b   :  { %v2018_v7 = vpop.f32.mrf.mxu2  ;;  %v6573_v34 = vor.u32 1.1754944e-38, %v2876_v59  ;;  %vm2091_vm13 = vweird.f32 %v6512_v54  ;;  %v2124_v59 = vand.u32 2147483647, %v6484_v51  ;;  %v2906_v28 = vand.u32 2147483648, %v6447_v25 }
 0x47c   :  { %v4140_v30 = vpop.eup %4139  ;;  %v6532_v58 = vadd.f32 %v3588_v36, %v3580_v12  ;;  %v6535_v10 = vadd.f32 %v6156_v53, %v2018_v7  ;;  %v3064_v53 = vsub.f32 1.0, %v2863_v57  ;;  %v2867_v62 = vsub.f32 1.0, %v2866_v8  ;;  %vm6652_vm7 = vmor %vm2090_vm12, %vm2091_vm13 }
 0x47d   :  { %v6537_v40 = vpop.eup %4141  ;;  %3201 = vrot.lane.b32.xlu1 %v4140_v30, %s4309_s10  ;;  %2391 = vrot.lane.b32.xlu0 %v4138_v26, %s4309_s10  ;;  %v2096_v12 = vand.u32 2147483648, %v6432_v15  ;;  %v2087_v36 = vsub.f32 1.0, %v2086_v18  ;;  %vm2120_vm1 = vweird.f32 %v6484_v51  ;;  %vm2900_vm2 = vweird.f32 %v6447_v25 }
 0x47e   :  { %4149 = vtanh.f32 %v6535_v10  ;;  %v2896_v19 = vmul.f32 %v6537_v40, %v6447_v25  ;;  %v6560_v5 = vpop.eup %4143  ;;  %v2868_v3 = vmul.f32 %v6495_v24, %v2867_v62  ;;  %vm2885_vm5 = vweird.f32 %v6497_v21 }
 0x47f   :  { %4151 = vpow2.f32 %v3936_v56  ;;  %v3180_v22 = vpop.permute.xlu2 %3179  ;;  %v1788_v55 = vpop.f32.mrf.mxu3  ;;  %v6577_v56 = vadd.f32 %v6069_v14, %v6487_v2  ;;  %v2116_v8 = vmul.f32 %v6560_v5, %v6484_v51  ;;  %vm2901_vm6 = vweird.f32 %v6537_v40 }
 0x480   :  { %4153 = vpow2.f32 %v3902_v38  ;;  %v3256_v60 = vmul.f32 %v3180_v22, %v3064_v53  ;;  %v6556_v6 = vadd.f32 %v6069_v14, %v1788_v55  ;;  %v6565_v41 = vpop.eup %4145  ;;  %v2897_v7 = vsub.f32 1.0, %v2896_v19  ;;  %vm6674_vm9 = vmor %vm2900_vm2, %vm2901_vm6 }
 0x481   :  { %4155 = vpow2.f32 %v3938_v27  ;;  %v4148_v57 = vpop.eup %4147  ;;  %v3901_v38 = vmul.f32 -1.442695, %v6223_v33  ;;  %v2088_v33 = vmul.f32 %v6512_v54, %v2087_v36  ;;  %v6598_v53 = vor.u32 1.1754944e-38, %v2096_v12 }
 0x482   :  { %v3592_v43 = vmul.f32 %v5870_v20, %v3256_v60  ;;  %4157 = vtanh.f32 %v6556_v6  ;;  %v2869_v62 = vadd.f32 %v6495_v24, %v2868_v3  ;;  %v2126_v60 = vand.u32 2147483648, %v6484_v51 }
 0x483   :  { %4159 = vrcp.f32 %v6545_v46  ;;  %v2889_v19 = vand.u32 2147483647, %v6497_v21  ;;  %v2898_v36 = vmul.f32 %v6537_v40, %v2897_v7  ;;  %v2117_v12 = vsub.f32 1.0, %v2116_v8 }
 0x484   :  { %v4150_v26 = vpop.eup %4149  ;;  %v6580_v20 = vadd.f32 %v6305_v0, %v3592_v43  ;;  %4161 = vpow2.f32 %v3900_v11  ;;  %v2881_v0 = vmul.f32 %v6565_v41, %v6497_v21  ;;  %v3937_v3 = vmul.f32 -1.442695, %v6191_v48 }
 0x485   :  { %v4152_v30 = vpop.eup %4151  ;;  %3203 = vrot.lane.b32.xlu2 %v4150_v26, %s4309_s10  ;;  %2393 = vrot.lane.b32.xlu1 %v4148_v57, %s4309_s10  ;;  %4163 = vtanh.f32 %v6577_v56  ;;  %v2089_v48 = vadd.f32 %v6512_v54, %v2088_v33  ;;  %v2904_v33 = vand.u32 2147483647, %v6447_v25  ;;  %vm6662_vm8 = vcmp.eq.f32.partialorder %v2124_v59, 8.507059e+37 }
 0x486   :  { %v4154_v2 = vpop.eup %4153  ;;  %4165 = vpow2.f32 %v3901_v38  ;;  %v6631_v8 = vadd.f32 1.0, %v4152_v30  ;;  %v2118_v30 = vmul.f32 %v6560_v5, %v2117_v12  ;;  %vm2121_vm10 = vweird.f32 %v6560_v5  ;;  %v3410_v12 = vld [vmem:[%s7382_s5 + $0xe8] sm:$0xff] }
 0x487   :  { %v4156_v18 = vpop.eup %4155  ;;  %v3176_v22 = vpop.permute.xlu0 %3175  ;;  %v2093_v15 = vsel %vm6652_vm7, %v6512_v54, %v2089_v48  ;;  %vm2886_vm11 = vweird.f32 %v6565_v41  ;;  %vm6685_vm12 = vcmp.eq.f32.partialorder %v2889_v19, 8.507059e+37  ;;  %v7463_v25 = vsub.f32 1.0, %v6552_v4  ;;  %v7464_v4 = vld [vmem:[#allocation24_spill] sm:$0xff]  ;;  %vm6714_vm14 = vmor %vm2120_vm1, %vm2121_vm10 }
 0x488   :  { %v1791_v55 = vpop.f32.mrf.mxu3  ;;  %v4158_v11 = vpop.eup %4157  ;;  %v3254_v43 = vmul.f32 %v3176_v22, %v3062_v17  ;;  %v2882_v17 = vsub.f32 1.0, %v2881_v0  ;;  %v6617_v22 = vadd.f32 1.0, %v4154_v2  ;;  %v6633_v38 = vadd.f32 1.0, %v4156_v18 }
 0x489   :  { %v6605_v44 = vadd.f32 %v6069_v14, %v1791_v55  ;;  %v6612_v26 = vpop.eup %4159  ;;  %2397 = vrot.lane.b32.xlu0 %v4158_v11, %s4309_s10  ;;  %v2899_v2 = vadd.f32 %v6537_v40, %v2898_v36  ;;  %v6701_v19 = vsel %vm6608_vm4, %v6598_v53, %v2093_v15  ;;  %vm2905_vm13 = vcmp.eq.f32.partialorder %v2904_v33, 8.507059e+37  ;;  %v4252_v33 = vld [vmem:[%s7388_s11] ss:$0 sm:$0xff]  ;;  %vm6737_vm4 = vmor %vm2885_vm5, %vm2886_vm11 }
 0x48a   :  { %v3590_v14 = vmul.f32 %v5824_v37, %v3254_v43  ;;  %v4162_v7 = vpop.eup %4161  ;;  %v2873_v37 = vsel %vm6625_vm0, %v6495_v24, %v2869_v62  ;;  %v2101_v18 = vmul.f32 %v6612_v26, %v6545_v46  ;;  %v2907_v62 = vor.u32 1.1754944e-38, %v2906_v28 }
 0x48b   :  { %4167 = vtanh.f32 %v6605_v44  ;;  %v4164_v47 = vpop.eup %4163  ;;  %v6659_v55 = vadd.f32 1.0, %v4162_v7  ;;  %v6681_v28 = vsel %vm6593_vm15, %v6573_v34, %v2873_v37  ;;  %v2903_v27 = vsel %vm6674_vm9, %v6537_v40, %v2899_v2 }
 0x48c   :  { %v6641_v0 = vadd.f32 %v6225_v32, %v3590_v14  ;;  %4169 = vpow2.f32 %v3937_v3  ;;  %v2883_v32 = vmul.f32 %v6565_v41, %v2882_v17  ;;  %v4166_v43 = vpop.eup %4165  ;;  %v2119_v34 = vadd.f32 %v6560_v5, %v2118_v30 }
 0x48d   :  { %2395 = vrot.lane.b32.xlu2 %v4164_v47, %s4309_s10  ;;  %4171 = vrcp.f32 %v6617_v22  ;;  %v3903_v17 = vmul.f32 -1.442695, %v6301_v9  ;;  %v2102_v50 = vsub.f32 1.0, %v2101_v18  ;;  %v2127_v7 = vor.u32 1.1754944e-38, %v2126_v60 }
 0x48e   :  { %4173 = vrcp.f32 %v6633_v38  ;;  %v2884_v14 = vadd.f32 %v6565_v41, %v2883_v32  ;;  %v2891_v40 = vand.u32 2147483648, %v6497_v21  ;;  %v6707_v9 = vadd.f32 1.0, %v4166_v43 }
 0x48f   :  { %v3178_v36 = vpop.permute.xlu1 %3177  ;;  %4175 = vrcp.f32 %v6631_v8  ;;  %v2908_v2 = vsel %vm2905_vm13, %v2907_v62, %v2903_v27  ;;  %v3065_v57 = vsub.f32 1.0, %v6681_v28  ;;  %vm2105_vm15 = vweird.f32 %v6545_v46 }
 0x490   :  { %v3255_v3 = vmul.f32 %v3178_v36, %v7463_v25  ;;  %4177 = vrcp.f32 %v6659_v55  ;;  %v2123_v51 = vsel %vm6714_vm14, %v6560_v5, %v2119_v34  ;;  %v2325_v32 = vsub.f32 1.0, %v6701_v19 }
 0x491   :  { %v4168_v59 = vpop.eup %4167  ;;  %4179 = vpow2.f32 %v3903_v17  ;;  %v3941_v62 = vmul.f32 -1.442695, %v6354_v61  ;;  %v2888_v15 = vsel %vm6737_vm4, %v6565_v41, %v2884_v14  ;;  %v2103_v5 = vmul.f32 %v6612_v26, %v2102_v50 }
 0x492   :  { %2399 = vrot.lane.b32.xlu1 %v4168_v59, %s4309_s10  ;;  %v3591_v48 = vmul.f32 %v7464_v4, %v3255_v3  ;;  %v4170_v37 = vpop.eup %4169  ;;  %v3067_v21 = vsub.f32 1.0, %v2908_v2  ;;  %v2892_v59 = vor.u32 1.1754944e-38, %v2891_v40  ;;  %v3939_v61 = vmul.f32 -1.442695, %v6270_v52 }
 0x493   :  { %v1794_v47 = vpop.f32.mrf.mxu3  ;;  %v6719_v60 = vpop.eup %4171  ;;  %v6750_v36 = vadd.f32 1.0, %v4170_v37  ;;  %v2128_v41 = vsel %vm6662_vm8, %v2127_v7, %v2123_v51  ;;  %v3904_v27 = vmul.f32 -1.442695, %v6348_v39  ;;  %v3940_v52 = vmul.f32 -1.442695, %v6308_v42 }
 0x494   :  { %v6722_v30 = vadd.f32 %v6151_v23, %v3591_v48  ;;  %v6727_v24 = vadd.f32 %v4252_v33, %v1794_v47  ;;  %v6741_v23 = vpop.eup %4173  ;;  %v2161_v3 = vmul.f32 %v6719_v60, %v6617_v22  ;;  %v6767_v17 = vsel %vm6685_vm12, %v2892_v59, %v2888_v15 }
 0x495   :  { %v6748_v43 = vpop.eup %4175  ;;  %v2941_v14 = vmul.f32 %v6741_v23, %v6633_v38  ;;  %v2104_v11 = vadd.f32 %v6612_v26, %v2103_v5  ;;  %vm2106_vm0 = vweird.f32 %v6612_v26  ;;  %v2327_v39 = vsub.f32 1.0, %v2128_v41 }
 0x496   :  { %4181 = vtanh.f32 %v6727_v24  ;;  %v6771_v50 = vpop.eup %4177  ;;  %v2109_v54 = vand.u32 2147483647, %v6545_v46  ;;  %v2911_v4 = vmul.f32 %v6748_v43, %v6631_v8  ;;  %v3066_v40 = vsub.f32 1.0, %v6767_v17  ;;  %vm6789_vm1 = vmor %vm2105_vm15, %vm2106_vm0 }
 0x497   :  { %4183 = vrcp.f32 %v6707_v9  ;;  %v3186_v25 = vpop.permute.xlu2 %3185  ;;  %v4180_v48 = vpop.eup %4179  ;;  %v2111_v42 = vand.u32 2147483648, %v6545_v46  ;;  %v2162_v37 = vsub.f32 1.0, %v2161_v3  ;;  %v3905_v2 = vmul.f32 -1.442695, %v6407_v63 }
 0x498   :  { %v6763_v34 = vmul.f32 %v3186_v25, %v3067_v21  ;;  %4185 = vpow2.f32 %v3941_v62  ;;  %v2942_v51 = vsub.f32 1.0, %v2941_v14  ;;  %v2108_v63 = vsel %vm6789_vm1, %v6612_v26, %v2104_v11 }
 0x499   :  { %4187 = vrcp.f32 %v6750_v36  ;;  %vm2165_vm2 = vweird.f32 %v6617_v22  ;;  %v2949_v46 = vand.u32 2147483647, %v6633_v38  ;;  %vm6803_vm5 = vcmp.eq.f32.partialorder %v2109_v54, 8.507059e+37 }
 0x49a   :  { %3560 = vperm.xlu1 %3958, %v3410_v12   ;;  %4189 = vpow2.f32 %v3939_v61  ;;  %v2912_v5 = vsub.f32 1.0, %v2911_v4  ;;  %v6807_v12 = vadd.f32 1.0, %v4180_v48  ;;  %v2112_v25 = vor.u32 1.1754944e-38, %v2111_v42 }
 0x49b   :  { %v1797_v7 = vpop.f32.mrf.mxu3  ;;  %4191 = vpow2.f32 %v3904_v27  ;;  %v2163_v26 = vmul.f32 %v6719_v60, %v2162_v37  ;;  %v2131_v41 = vmul.f32 %v6771_v50, %v6659_v55  ;;  %vm2945_vm6 = vweird.f32 %v6633_v38  ;;  %v3411_v37 = vld [vmem:[%s7382_s5 + $0xf0] sm:$0xff] }
 0x49c   :  { %v4182_v47 = vpop.eup %4181  ;;  %v6783_v53 = vadd.f32 %v4252_v33, %v1797_v7  ;;  %4193 = vpow2.f32 %v3940_v52  ;;  %v2169_v33 = vand.u32 2147483647, %v6617_v22  ;;  %v2943_v52 = vmul.f32 %v6741_v23, %v2942_v51  ;;  %v7475_v7 = vld [vmem:[#allocation27_spill] sm:$0xff] }
 0x49d   :  { %v6793_v62 = vpop.eup %4183  ;;  %2401 = vrot.lane.b32.xlu2 %v4182_v47, %s4309_s10  ;;  %v2951_v54 = vand.u32 2147483648, %v6633_v38  ;;  %v6823_v4 = vsel %vm6803_vm5, %v2112_v25, %v2108_v63  ;;  %v2171_v28 = vand.u32 2147483648, %v6617_v22  ;;  %vm6836_vm8 = vcmp.eq.f32.partialorder %v2949_v46, 8.507059e+37 }
 0x49e   :  { %4195 = vtanh.f32 %v6783_v53  ;;  %v4186_v21 = vpop.eup %4185  ;;  %vm6825_vm7 = vcmp.eq.f32.partialorder %v2169_v33, 8.507059e+37  ;;  %v2164_v18 = vadd.f32 %v6719_v60, %v2163_v26  ;;  %vm2166_vm9 = vweird.f32 %v6719_v60 }
 0x49f   :  { %v3182_v59 = vpop.permute.xlu0 %3181  ;;  %v2378_v61 = vpop.permute.xlu2 %2377  ;;  %4197 = vpow2.f32 %v3905_v2  ;;  %v2913_v2 = vmul.f32 %v6748_v43, %v2912_v5  ;;  %v2132_v63 = vsub.f32 1.0, %v2131_v41  ;;  %v3906_v15 = vmul.f32 -1.442695, %v6450_v13  ;;  %vm6862_vm13 = vmor %vm2165_vm2, %vm2166_vm9 }
 0x4a0   :  { %v6812_v3 = vpop.eup %4187  ;;  %v3257_v27 = vmul.f32 %v3182_v59, %v3065_v57  ;;  %v6816_v14 = vmul.f32 %v2378_v61, %v2327_v39  ;;  %v6830_v39 = vadd.f32 1.0, %v4186_v21  ;;  %4199 = vrcp.f32 %v6807_v12 }
 0x4a1   :  { %v4190_v11 = vpop.eup %4189  ;;  %v2944_v46 = vadd.f32 %v6741_v23, %v2943_v52  ;;  %vm2946_vm10 = vweird.f32 %v6741_v23  ;;  %v2172_v5 = vor.u32 1.1754944e-38, %v2171_v28  ;;  %vm2915_vm11 = vweird.f32 %v6631_v8 }
 0x4a2   :  { %v4192_v57 = vpop.eup %4191  ;;  %v3593_v42 = vmul.f32 %v7475_v7, %v3257_v27  ;;  %v6850_v59 = vadd.f32 1.0, %v4190_v11  ;;  %vm2916_vm12 = vweird.f32 %v6748_v43  ;;  %4201 = vrcp.f32 %v6830_v39  ;;  %vm6875_vm14 = vmor %vm2945_vm6, %vm2946_vm10 }
 0x4a3   :  { %v4194_v51 = vpop.eup %4193  ;;  %v6855_v25 = vadd.f32 1.0, %v4192_v57  ;;  %v2914_v13 = vadd.f32 %v6748_v43, %v2913_v2  ;;  %v2926_v26 = vmul.f32 %v6812_v3, %v6750_v36  ;;  %v2168_v22 = vsel %vm6862_vm13, %v6719_v60, %v2164_v18  ;;  %vm6904_vm15 = vmor %vm2915_vm11, %vm2916_vm12 }
 0x4a4   :  { %v4196_v33 = vpop.eup %4195  ;;  %v6846_v21 = vadd.f32 %v6351_v31, %v3593_v42  ;;  %v6869_v41 = vadd.f32 1.0, %v4194_v51  ;;  %v2921_v28 = vand.u32 2147483648, %v6631_v8  ;;  %v2133_v57 = vmul.f32 %v6771_v50, %v2132_v63 }
 0x4a5   :  { %3565 = vperm.xlu2 %3959, %v3411_v37   ;;  %2403 = vrot.lane.b32.xlu0 %v4196_v33, %s4309_s10  ;;  %v4198_v61 = vpop.eup %4197  ;;  %4203 = vpow2.f32 %v3906_v15  ;;  %v2948_v42 = vsel %vm6875_vm14, %v6741_v23, %v2944_v46  ;;  %v2952_v2 = vor.u32 1.1754944e-38, %v2951_v54  ;;  %v3412_v23 = vld [vmem:[%s7382_s5 + $0xf8] sm:$0xff]  ;;  %v6915_v17 = vsel %vm6825_vm7, %v2172_v5, %v2168_v22 }
 0x4a6   :  { %v6895_v37 = vpop.eup %4199  ;;  %4205 = vrcp.f32 %v6850_v59  ;;  %v6898_v60 = vadd.f32 1.0, %v4198_v61  ;;  %v2927_v54 = vsub.f32 1.0, %v2926_v26  ;;  %vm2136_vm4 = vweird.f32 %v6771_v50 }
 0x4a7   :  { %v2374_v27 = vpop.permute.xlu0 %2373  ;;  %v3184_v52 = vpop.permute.xlu1 %3183  ;;  %4207 = vrcp.f32 %v6855_v25  ;;  %v2953_v51 = vsel %vm6836_vm8, %v2952_v2, %v2948_v42  ;;  %v2139_v18 = vand.u32 2147483647, %v6659_v55  ;;  %v2326_v48 = vsub.f32 1.0, %v6823_v4 }
 0x4a8   :  { %v6886_v7 = vmul.f32 %v2374_v27, %v2325_v32  ;;  %v6890_v38 = vmul.f32 %v3184_v52, %v3066_v40  ;;  %v2919_v32 = vand.u32 2147483647, %v6631_v8  ;;  %v2918_v40 = vsel %vm6904_vm15, %v6748_v43, %v2914_v13  ;;  %v6925_v63 = vpop.eup %4201 }
 0x4a9   :  { %v2134_v8 = vadd.f32 %v6771_v50, %v2133_v57  ;;  %4209 = vrcp.f32 %v6869_v41  ;;  %v2922_v33 = vor.u32 1.1754944e-38, %v2921_v28  ;;  %v2141_v15 = vand.u32 2147483648, %v6659_v55 }
 0x4aa   :  { %4211 = vrcp.f32 %v6898_v60  ;;  %v2330_v43 = vsub.f32 1.0, %v6915_v17  ;;  %vm2920_vm0 = vcmp.eq.f32.partialorder %v2919_v32, 8.507059e+37  ;;  %vm2135_vm1 = vweird.f32 %v6659_v55  ;;  %v7487_v17 = vld [vmem:[#allocation32_spill] sm:$0xff] }
 0x4ab   :  { %v4204_v47 = vpop.eup %4203  ;;  %v3070_v46 = vsub.f32 1.0, %v2953_v51  ;;  %v2923_v5 = vsel %vm2920_vm0, %v2922_v33, %v2918_v40  ;;  %vm6935_vm2 = vmor %vm2135_vm1, %vm2136_vm4  ;;  %v2928_v4 = vmul.f32 %v6812_v3, %v2927_v54  ;;  %v2146_v31 = vmul.f32 %v6793_v62, %v6707_v9 }
 0x4ac   :  { %v6942_v13 = vpop.eup %4205  ;;  %v3942_v26 = vmul.f32 -1.442695, %v6415_v49  ;;  %v2138_v52 = vsel %vm6935_vm2, %v6771_v50, %v2134_v8  ;;  %vm2140_vm5 = vcmp.eq.f32.partialorder %v2139_v18, 8.507059e+37  ;;  %v2986_v11 = vmul.f32 %v6925_v63, %v6830_v39  ;;  %v7486_v49 = vld [vmem:[#allocation30_spill] sm:$0xff] }
 0x4ad   :  { %3570 = vperm.xlu0 %3957, %v3412_v23   ;;  %v6950_v22 = vpop.eup %4207  ;;  %v3907_v28 = vmul.f32 -1.442695, %v6526_v29  ;;  %v2142_v2 = vor.u32 1.1754944e-38, %v2141_v15  ;;  %v6953_v19 = vadd.f32 1.0, %v4204_v47  ;;  %v3595_v32 = vmul.f32 %v7486_v49, %v6763_v34 }
 0x4ae   :  { %vm2931_vm6 = vweird.f32 %v6812_v3  ;;  %v2934_v50 = vand.u32 2147483647, %v6750_v36  ;;  %v2929_v29 = vadd.f32 %v6812_v3, %v2928_v4  ;;  %v2147_v51 = vsub.f32 1.0, %v2146_v31 }
 0x4af   :  { %v3192_v27 = vpop.permute.xlu2 %3191  ;;  %v2376_v55 = vpop.permute.xlu1 %2375  ;;  %v6962_v54 = vsel %vm2140_vm5, %v2142_v2, %v2138_v52  ;;  %4213 = vpow2.f32 %v3942_v26  ;;  %v3068_v18 = vsub.f32 1.0, %v2923_v5  ;;  %v2987_v34 = vsub.f32 1.0, %v2986_v11  ;;  %v7492_v52 = vld [vmem:[#allocation25_spill] sm:$0xff] }
 0x4b0   :  { %v3262_v57 = vmul.f32 %v3192_v27, %v3070_v46  ;;  %v2422_v42 = vmul.f32 %v2376_v55, %v2326_v48  ;;  %v6959_v23 = vpop.eup %4209  ;;  %v2936_v48 = vand.u32 2147483648, %v6750_v36  ;;  %4215 = vpow2.f32 %v3907_v28 }
 0x4b1   :  { %v6965_v8 = vpop.eup %4211  ;;  %v3908_v33 = vmul.f32 -1.442695, %v6577_v56  ;;  %vm2930_vm7 = vweird.f32 %v6750_v36  ;;  %4217 = vrcp.f32 %v6953_v19  ;;  %v2328_v47 = vsub.f32 1.0, %v6962_v54  ;;  %v7494_v54 = vld [vmem:[#allocation17_spill] sm:$0xff] }
 0x4b2   :  { %v3598_v40 = vmul.f32 %v7487_v17, %v3262_v57  ;;  %vm6975_vm8 = vmor %vm2930_vm7, %vm2931_vm6  ;;  %vm6979_vm9 = vcmp.eq.f32.partialorder %v2934_v50, 8.507059e+37  ;;  %v6984_v56 = vadd.f32 %v6455_v35, %v3595_v32  ;;  %v2148_v61 = vmul.f32 %v6793_v62, %v2147_v51  ;;  %v7493_v17 = vld [vmem:[#allocation10_spill] sm:$0xff] }
 0x4b3   :  { %v2933_v36 = vsel %vm6975_vm8, %v6812_v3, %v2929_v29  ;;  %v2206_v4 = vmul.f32 %v6965_v8, %v6898_v60  ;;  %v2937_v27 = vor.u32 1.1754944e-38, %v2936_v48  ;;  %v2988_v55 = vmul.f32 %v6925_v63, %v2987_v34 }
 0x4b4   :  { %v3634_v15 = vadd.f32 %v6641_v0, %v3598_v40  ;;  %v3943_v0 = vmul.f32 -1.442695, %v6458_v45  ;;  %v2994_v35 = vand.u32 2147483647, %v6830_v39  ;;  %v2956_v45 = vmul.f32 %v6942_v13, %v6850_v59 }
 0x4b5   :  { %4219 = vpow2.f32 %v3908_v33  ;;  %v3594_v11 = vmul.f32 %v7492_v52, %v6890_v38  ;;  %v7002_v57 = vpop.eup %4213  ;;  %v2938_v2 = vsel %vm6979_vm9, %v2937_v27, %v2933_v36  ;;  %v2996_v49 = vand.u32 2147483648, %v6830_v39 }
 0x4b6   :  { %3646 = vst.msk [vmem:[#allocation4 + $0x8] sm:$0xff] %vm1342_vm3, %v3634_v15  ;;  %vm2151_vm10 = vweird.f32 %v6793_v62  ;;  %v2156_v32 = vand.u32 2147483648, %v6707_v9  ;;  %v4216_v50 = vpop.eup %4215  ;;  %v3366_v40 = vmul.f32 %v7493_v17, %v2422_v42  ;;  %v2149_v38 = vadd.f32 %v6793_v62, %v2148_v61 }
 0x4b7   :  { %v2384_v31 = vpop.permute.xlu2 %2383  ;;  %v3188_v26 = vpop.permute.xlu0 %3187  ;;  %vm2991_vm11 = vweird.f32 %v6925_v63  ;;  %vm2150_vm12 = vweird.f32 %v6707_v9  ;;  %v2957_v48 = vsub.f32 1.0, %v2956_v45  ;;  %vm2990_vm13 = vweird.f32 %v6830_v39 }
 0x4b8   :  { %v2426_v3 = vmul.f32 %v2384_v31, %v2330_v43  ;;  %v7000_v28 = vmul.f32 %v3188_v26, %v3068_v18  ;;  %v2207_v43 = vsub.f32 1.0, %v2206_v4  ;;  %v7012_v51 = vpop.eup %4217  ;;  %v2989_v18 = vadd.f32 %v6925_v63, %v2988_v55  ;;  %vm7030_vm15 = vmor %vm2150_vm12, %vm2151_vm10 }
 0x4b9   :  { %v2154_v42 = vand.u32 2147483647, %v6707_v9  ;;  %v7022_v33 = vadd.f32 %v6267_v16, %v3594_v11  ;;  %4221 = vpow2.f32 %v3943_v0  ;;  %v3069_v15 = vsub.f32 1.0, %v2938_v2  ;;  %vm7036_vm4 = vmor %vm2990_vm13, %vm2991_vm11 }
 0x4ba   :  { %v3370_v29 = vmul.f32 %v7494_v54, %v2426_v3  ;;  %vm7024_vm14 = vcmp.eq.f32.partialorder %v2994_v35, 8.507059e+37  ;;  %v2997_v5 = vor.u32 1.1754944e-38, %v2996_v49  ;;  %v7034_v39 = vadd.f32 1.0, %v4216_v50  ;;  %v7501_v49 = vld [vmem:[#allocation26_spill] sm:$0xff] }
 0x4bb   :  { %v4220_v61 = vpop.eup %4219  ;;  %v2153_v16 = vsel %vm7030_vm15, %v6793_v62, %v2149_v38  ;;  %v2157_v0 = vor.u32 1.1754944e-38, %v2156_v32  ;;  %v2208_v4 = vmul.f32 %v6965_v8, %v2207_v43  ;;  %v2993_v27 = vsel %vm7036_vm4, %v6925_v63, %v2989_v18 }
 0x4bc   :  { %v7017_v34 = vadd.f32 %v3370_v29, %v3366_v40  ;;  %v2958_v55 = vmul.f32 %v6942_v13, %v2957_v48  ;;  %v2176_v35 = vmul.f32 %v6895_v37, %v6807_v12  ;;  %v2971_v45 = vmul.f32 %v6959_v23, %v6869_v41 }
 0x4bd   :  { %v3909_v52 = vmul.f32 -1.442695, %v6556_v6  ;;  %vm2155_vm0 = vcmp.eq.f32.partialorder %v2154_v42, 8.507059e+37  ;;  %v7055_v3 = vadd.f32 1.0, %v4220_v61  ;;  %vm2211_vm1 = vweird.f32 %v6965_v8 }
 0x4be   :  { %v2158_v2 = vsel %vm2155_vm0, %v2157_v0, %v2153_v16  ;;  %v2214_v63 = vand.u32 2147483647, %v6898_v60  ;;  %v2998_v50 = vsel %vm7024_vm14, %v2997_v5, %v2993_v27  ;;  %v2209_v17 = vadd.f32 %v6965_v8, %v2208_v4 }
 0x4bf   :  { %v2380_v31 = vpop.permute.xlu0 %2379  ;;  %v3190_v26 = vpop.permute.xlu1 %3189  ;;  %v2216_v6 = vand.u32 2147483648, %v6898_v60  ;;  %v2959_v40 = vadd.f32 %v6942_v13, %v2958_v55  ;;  %vm2961_vm2 = vweird.f32 %v6942_v13  ;;  %v2177_v54 = vsub.f32 1.0, %v2176_v35 }
 0x4c0   :  { %v7053_v62 = vmul.f32 %v2380_v31, %v2328_v47  ;;  %v3261_v11 = vmul.f32 %v3190_v26, %v3069_v15  ;;  %v7064_v47 = vpop.eup %4221  ;;  %v2972_v29 = vsub.f32 1.0, %v2971_v45  ;;  %4223 = vpow2.f32 %v3909_v52  ;;  %v7508_v45 = vld [vmem:[#allocation33_spill] sm:$0xff] }
 0x4c1   :  { %v2329_v43 = vsub.f32 1.0, %v2158_v2  ;;  %vm2210_vm5 = vweird.f32 %v6898_v60  ;;  %4225 = vrcp.f32 %v7055_v3  ;;  %vm2960_vm7 = vweird.f32 %v6850_v59 }
 0x4c2   :  { %v3597_v32 = vmul.f32 %v7501_v49, %v3261_v11  ;;  %vm7073_vm6 = vmor %vm2210_vm5, %vm2211_vm1  ;;  %v2964_v48 = vand.u32 2147483647, %v6850_v59  ;;  %v2966_v42 = vand.u32 2147483648, %v6850_v59  ;;  %v3911_v15 = vmul.f32 -1.442695, %v6727_v24  ;;  %v7509_v11 = vld [vmem:[#allocation9_spill] sm:$0xff] }
 0x4c3   :  { %v2213_v60 = vsel %vm7073_vm6, %v6965_v8, %v2209_v17  ;;  %vm2215_vm8 = vcmp.eq.f32.partialorder %v2214_v63, 8.507059e+37  ;;  %vm7087_vm9 = vmor %vm2960_vm7, %vm2961_vm2  ;;  %v2217_v61 = vor.u32 1.1754944e-38, %v2216_v6  ;;  %v2178_v59 = vmul.f32 %v6895_v37, %v2177_v54  ;;  %v7506_v8 = vld [vmem:[#allocation29_spill] sm:$0xff] }
 0x4c4   :  { %v3633_v38 = vadd.f32 %v6412_v1, %v3597_v32  ;;  %v3073_v1 = vsub.f32 1.0, %v2998_v50  ;;  %v2963_v24 = vsel %vm7087_vm9, %v6942_v13, %v2959_v40  ;;  %v2973_v9 = vmul.f32 %v6959_v23, %v2972_v29  ;;  %v7507_v13 = vld [vmem:[#allocation14_spill] sm:$0xff] }
 0x4c5   :  { %v3596_v16 = vmul.f32 %v7506_v8, %v7000_v28  ;;  %v2191_v31 = vmul.f32 %v6950_v22, %v6855_v25  ;;  %v2218_v26 = vsel %vm2215_vm8, %v2217_v61, %v2213_v60  ;;  %vm2965_vm10 = vcmp.eq.f32.partialorder %v2964_v48, 8.507059e+37  ;;  %v7515_v8 = vld [vmem:[#allocation31_spill] sm:$0xff] }
 0x4c6   :  { %3645 = vst.msk [vmem:[#allocation4] sm:$0xff] %vm1342_vm3, %v3633_v38  ;;  %v2967_v27 = vor.u32 1.1754944e-38, %v2966_v42  ;;  %vm2181_vm11 = vweird.f32 %v6895_v37  ;;  %v4224_v55 = vpop.eup %4223  ;;  %4227 = vpow2.f32 %v3911_v15  ;;  %v3365_v35 = vmul.f32 %v7507_v13, %v6886_v7 }
 0x4c7   :  { %v3198_v5 = vpop.permute.xlu2 %3197  ;;  %v2382_v36 = vpop.permute.xlu1 %2381  ;;  %v2179_v49 = vadd.f32 %v6895_v37, %v2178_v59  ;;  %v2974_v32 = vadd.f32 %v6959_v23, %v2973_v9  ;;  %vm2976_vm12 = vweird.f32 %v6959_v23  ;;  %v2192_v6 = vsub.f32 1.0, %v2191_v31  ;;  %v7514_v59 = vld [vmem:[#allocation19_spill] sm:$0xff] }
 0x4c8   :  { %v3265_v0 = vmul.f32 %v3198_v5, %v3073_v1  ;;  %v2425_v4 = vmul.f32 %v2382_v36, %v2329_v43  ;;  %v7105_v28 = vpop.eup %4225  ;;  %v2968_v63 = vsel %vm2965_vm10, %v2967_v27, %v2963_v24  ;;  %v7112_v40 = vadd.f32 %v6532_v58, %v3596_v16 }
 0x4c9   :  { %v2333_v7 = vsub.f32 1.0, %v2218_v26  ;;  %vm2180_vm13 = vweird.f32 %v6807_v12  ;;  %v2186_v54 = vand.u32 2147483648, %v6807_v12  ;;  %v2981_v29 = vand.u32 2147483648, %v6869_v41 }
 0x4ca   :  { %v3601_v52 = vmul.f32 %v7508_v45, %v3265_v0  ;;  %v3369_v2 = vmul.f32 %v7509_v11, %v2425_v4  ;;  %v3071_v38 = vsub.f32 1.0, %v2968_v63  ;;  %vm7120_vm14 = vmor %vm2180_vm13, %vm2181_vm11  ;;  %vm2975_vm15 = vweird.f32 %v6869_v41 }
 0x4cb   :  { %v2979_v58 = vand.u32 2147483647, %v6869_v41  ;;  %4229 = vrcp.f32 %v7034_v39  ;;  %v2183_v42 = vsel %vm7120_vm14, %v6895_v37, %v2179_v49  ;;  %vm7133_vm4 = vmor %vm2975_vm15, %vm2976_vm12  ;;  %v2193_v5 = vmul.f32 %v6950_v22, %v2192_v6 }
 0x4cc   :  { %v3637_v50 = vadd.f32 %v6846_v21, %v3601_v52  ;;  %v3605_v17 = vadd.f32 %v3369_v2, %v3365_v35  ;;  %v2184_v21 = vand.u32 2147483647, %v6807_v12  ;;  %v2251_v12 = vmul.f32 %v7105_v28, %v7055_v3  ;;  %v4228_v1 = vpop.eup %4227 }
 0x4cd   :  { %v2978_v46 = vsel %vm7133_vm4, %v6959_v23, %v2974_v32  ;;  %v7144_v37 = vadd.f32 1.0, %v7064_v47  ;;  %v3910_v36 = vmul.f32 -1.442695, %v6605_v44  ;;  %v2187_v61 = vor.u32 1.1754944e-38, %v2186_v54 }
 0x4ce   :  { %3649 = vst.msk [vmem:[#allocation4 + $0x20] sm:$0xff] %vm1342_vm3, %v3637_v50  ;;  %v2982_v24 = vor.u32 1.1754944e-38, %v2981_v29  ;;  %vm2185_vm0 = vcmp.eq.f32.partialorder %v2184_v21, 8.507059e+37  ;;  %vm2980_vm1 = vcmp.eq.f32.partialorder %v2979_v58, 8.507059e+37  ;;  %v7149_v0 = vadd.f32 1.0, %v4228_v1  ;;  %v7518_v29 = vld [vmem:[#allocation28_spill] sm:$0xff] }
 0x4cf   :  { %v2390_v18 = vpop.permute.xlu2 %2389  ;;  %v3194_v48 = vpop.permute.xlu0 %3193  ;;  %v2188_v4 = vsel %vm2185_vm0, %v2187_v61, %v2183_v42  ;;  %v2252_v23 = vsub.f32 1.0, %v2251_v12  ;;  %v2194_v27 = vadd.f32 %v6950_v22, %v2193_v5  ;;  %vm2196_vm2 = vweird.f32 %v6950_v22 }
 0x4d0   :  { %v2429_v60 = vmul.f32 %v2390_v18, %v2333_v7  ;;  %v3263_v41 = vmul.f32 %v3194_v48, %v3071_v38  ;;  %v2983_v31 = vsel %vm2980_vm1, %v2982_v24, %v2978_v46  ;;  %v7158_v13 = vadd.f32 1.0, %v4224_v55  ;;  %v7517_v7 = vld [vmem:[#allocation15_spill] sm:$0xff] }
 0x4d1   :  { %v7156_v44 = vpop.eup %4229  ;;  %4231 = vpow2.f32 %v3910_v36  ;;  %v2201_v35 = vand.u32 2147483648, %v6855_v25  ;;  %v2331_v45 = vsub.f32 1.0, %v2188_v4  ;;  %v3072_v52 = vsub.f32 1.0, %v2983_v31  ;;  %v7522_v4 = vld [vmem:[#allocation11_spill] sm:$0xff] }
 0x4d2   :  { %v3373_v9 = vmul.f32 %v7514_v59, %v2429_v60  ;;  %v3599_v16 = vmul.f32 %v7515_v8, %v3263_v41  ;;  %vm2195_vm5 = vweird.f32 %v6855_v25  ;;  %v2199_v11 = vand.u32 2147483647, %v6855_v25  ;;  %v7516_v25 = vld [vmem:[#allocation8_spill] sm:$0xff] }
 0x4d3   :  { %4233 = vrcp.f32 %v7149_v0  ;;  %vm2197_vm6 = vmor %vm2195_vm5, %vm2196_vm2  ;;  %v2253_v63 = vmul.f32 %v7105_v28, %v2252_v23  ;;  %v2221_v55 = vmul.f32 %v7012_v51, %v6953_v19  ;;  %v3367_v6 = vmul.f32 %v7516_v25, %v6816_v14 }
 0x4d4   :  { %v7151_v26 = vadd.f32 %v3605_v17, %v3373_v9  ;;  %v3635_v47 = vadd.f32 %v6722_v30, %v3599_v16  ;;  %4235 = vrcp.f32 %v7144_v37  ;;  %v2198_v50 = vsel %vm2197_vm6, %v6950_v22, %v2194_v27  ;;  %v7521_v16 = vld [vmem:[#allocation12_spill] sm:$0xff] }
 0x4d5   :  { %4237 = vrcp.f32 %v7158_v13  ;;  %v2202_v17 = vor.u32 1.1754944e-38, %v2201_v35  ;;  %vm2200_vm7 = vcmp.eq.f32.partialorder %v2199_v11, 8.507059e+37  ;;  %v2254_v58 = vadd.f32 %v7105_v28, %v2253_v63 }
 0x4d6   :  { %3647 = vst.msk [vmem:[#allocation4 + $0x10] sm:$0xff] %vm1342_vm3, %v3635_v47  ;;  %vm2256_vm8 = vweird.f32 %v7105_v28  ;;  %v2222_v18 = vsub.f32 1.0, %v2221_v55  ;;  %v7178_v22 = vadd.f32 1.0, %v7002_v57  ;;  %v2261_v14 = vand.u32 2147483648, %v7055_v3  ;;  %v7540_v55 = vld [vmem:[#allocation16_spill] sm:$0xff] }
 0x4d7   :  { %v2386_v30 = vpop.permute.xlu0 %2385  ;;  %v3196_v2 = vpop.permute.xlu1 %3195  ;;  %v2203_v21 = vsel %vm2200_vm7, %v2202_v17, %v2198_v50  ;;  %vm2255_vm9 = vweird.f32 %v7055_v3  ;;  %v2259_v12 = vand.u32 2147483647, %v7055_v3  ;;  %v2236_v61 = vmul.f32 %v7156_v44, %v7034_v39 }
 0x4d8   :  { %v2427_v49 = vmul.f32 %v2386_v30, %v2331_v45  ;;  %v3264_v32 = vmul.f32 %v3196_v2, %v3072_v52  ;;  %v4232_v43 = vpop.eup %4231  ;;  %v2332_v57 = vsub.f32 1.0, %v2203_v21  ;;  %vm7193_vm10 = vmor %vm2255_vm9, %vm2256_vm8  ;;  %v2223_v36 = vmul.f32 %v7012_v51, %v2222_v18 }
 0x4d9   :  { %v7184_v15 = vpop.eup %4233  ;;  %v7190_v60 = vadd.f32 1.0, %v4232_v43  ;;  %v2258_v3 = vsel %vm7193_vm10, %v7105_v28, %v2254_v58  ;;  %4239 = vrcp.f32 %v7178_v22  ;;  %v2262_v59 = vor.u32 1.1754944e-38, %v2261_v14 }
 0x4da   :  { %v3371_v54 = vmul.f32 %v7517_v7, %v2427_v49  ;;  %v3600_v38 = vmul.f32 %v7518_v29, %v3264_v32  ;;  %v7188_v1 = vpop.eup %4235  ;;  %v2296_v9 = vmul.f32 %v7184_v15, %v7149_v0  ;;  %v3944_v8 = vmul.f32 -1.442695, %v6535_v10 }
 0x4db   :  { %vm2260_vm11 = vcmp.eq.f32.partialorder %v2259_v12, 8.507059e+37  ;;  %4241 = vrcp.f32 %v7190_v60  ;;  %v3368_v28 = vmul.f32 %v7521_v16, %v7053_v62  ;;  %v2224_v47 = vadd.f32 %v7012_v51, %v2223_v36 }
 0x4dc   :  { %v7180_v48 = vadd.f32 %v3371_v54, %v3367_v6  ;;  %v3636_v42 = vadd.f32 %v6580_v20, %v3600_v38  ;;  %v7197_v20 = vpop.eup %4237  ;;  %v2263_v23 = vsel %vm2260_vm11, %v2262_v59, %v2258_v3  ;;  %vm2226_vm12 = vweird.f32 %v7012_v51  ;;  %v7525_v38 = vld [vmem:[#allocation21_spill] sm:$0xff] }
 0x4dd   :  { %v3016_v27 = vmul.f32 %v7188_v1, %v7144_v37  ;;  %v2237_v35 = vsub.f32 1.0, %v2236_v61  ;;  %v2231_v10 = vand.u32 2147483648, %v6953_v19  ;;  %v2297_v52 = vsub.f32 1.0, %v2296_v9 }
 0x4de   :  { %3648 = vst.msk [vmem:[#allocation4 + $0x18] sm:$0xff] %vm1342_vm3, %v3636_v42  ;;  %v2266_v11 = vmul.f32 %v7197_v20, %v7158_v13  ;;  %v3912_v62 = vmul.f32 -1.442695, %v6783_v53  ;;  %vm2225_vm13 = vweird.f32 %v6953_v19  ;;  %v2229_v30 = vand.u32 2147483647, %v6953_v19 }
 0x4df   :  { %v7199_v46 = vpop.permute.xlu2 %3203  ;;  %v2388_v5 = vpop.permute.xlu1 %2387  ;;  %v2336_v63 = vsub.f32 1.0, %v2263_v23  ;;  %vm7227_vm14 = vmor %vm2225_vm13, %vm2226_vm12  ;;  %4243 = vpow2.f32 %v3944_v8  ;;  %v3017_v53 = vsub.f32 1.0, %v3016_v27  ;;  %v2238_v17 = vmul.f32 %v7156_v44, %v2237_v35 }
 0x4e0   :  { %v2428_v24 = vmul.f32 %v2388_v5, %v2332_v57  ;;  %v7225_v2 = vpop.eup %4239  ;;  %v2228_v50 = vsel %vm7227_vm14, %v7012_v51, %v2224_v47  ;;  %v2232_v6 = vor.u32 1.1754944e-38, %v2231_v10  ;;  %v2298_v7 = vmul.f32 %v7184_v15, %v2297_v52  ;;  %v7530_v52 = vld [vmem:[#allocation18_spill] sm:$0xff] }
 0x4e1   :  { %v7237_v25 = vpop.eup %4241  ;;  %v2267_v54 = vsub.f32 1.0, %v2266_v11  ;;  %4245 = vpow2.f32 %v3912_v62  ;;  %v7242_v29 = vmul.f32 %v7225_v2, %v7178_v22  ;;  %vm2230_vm15 = vcmp.eq.f32.partialorder %v2229_v30, 8.507059e+37 }
 0x4e2   :  { %v3372_v31 = vmul.f32 %v7522_v4, %v2428_v24  ;;  %v2233_v21 = vsel %vm2230_vm15, %v2232_v6, %v2228_v50  ;;  %vm3020_vm4 = vweird.f32 %v7144_v37  ;;  %vm3021_vm0 = vweird.f32 %v7188_v1 }
 0x4e3   :  { %v3018_v51 = vmul.f32 %v7188_v1, %v3017_v53  ;;  %v2239_v58 = vadd.f32 %v7156_v44, %v2238_v17  ;;  %vm2241_vm1 = vweird.f32 %v7156_v44  ;;  %v2281_v18 = vmul.f32 %v7237_v25, %v7190_v60  ;;  %vm7291_vm11 = vmor %vm3020_vm4, %vm3021_vm0 }
 0x4e4   :  { %v3608_v45 = vadd.f32 %v3372_v31, %v3368_v28  ;;  %v2299_v14 = vadd.f32 %v7184_v15, %v2298_v7  ;;  %vm2301_vm2 = vweird.f32 %v7184_v15  ;;  %v2268_v12 = vmul.f32 %v7197_v20, %v2267_v54 }
 0x4e5   :  { %v4244_v57 = vpop.eup %4243  ;;  %v3024_v41 = vand.u32 2147483647, %v7144_v37  ;;  %v2306_v5 = vand.u32 2147483648, %v7149_v0  ;;  %vm2240_vm5 = vweird.f32 %v7034_v39  ;;  %v2246_v3 = vand.u32 2147483648, %v7034_v39 }
 0x4e6   :  { %v2334_v36 = vsub.f32 1.0, %v2233_v21  ;;  %vm2300_vm6 = vweird.f32 %v7149_v0  ;;  %v2304_v61 = vand.u32 2147483647, %v7149_v0  ;;  %vm7263_vm7 = vmor %vm2240_vm5, %vm2241_vm1  ;;  %v2244_v59 = vand.u32 2147483647, %v7034_v39 }
 0x4e7   :  { %v2396_v49 = vpop.permute.xlu2 %2395  ;;  %v7231_v32 = vpop.permute.xlu0 %3199  ;;  %v3019_v16 = vadd.f32 %v7188_v1, %v3018_v51  ;;  %v3026_v28 = vand.u32 2147483648, %v7144_v37  ;;  %vm7272_vm8 = vmor %vm2300_vm6, %vm2301_vm2  ;;  %v2243_v0 = vsel %vm7263_vm7, %v7156_v44, %v2239_v58  ;;  %vm2271_vm9 = vweird.f32 %v7197_v20 }
 0x4e8   :  { %v2432_v19 = vmul.f32 %v2396_v49, %v2336_v63  ;;  %v4246_v9 = vpop.eup %4245  ;;  %v2303_v23 = vsel %vm7272_vm8, %v7184_v15, %v2299_v14  ;;  %v2269_v47 = vadd.f32 %v7197_v20, %v2268_v12  ;;  %v2282_v27 = vsub.f32 1.0, %v2281_v18  ;;  %v7535_v18 = vld [vmem:[#allocation13_spill] sm:$0xff] }
 0x4e9   :  { %v2307_v35 = vor.u32 1.1754944e-38, %v2306_v5  ;;  %vm2270_vm10 = vweird.f32 %v7158_v13  ;;  %v2276_v10 = vand.u32 2147483648, %v7158_v13  ;;  %vm2305_vm12 = vcmp.eq.f32.partialorder %v2304_v61, 8.507059e+37  ;;  %v7538_v61 = vld [vmem:[#allocation23_spill] sm:$0xff] }
 0x4ea   :  { %v3376_v43 = vmul.f32 %v7525_v38, %v2432_v19  ;;  %vm2245_vm13 = vcmp.eq.f32.partialorder %v2244_v59, 8.507059e+37  ;;  %v2274_v15 = vand.u32 2147483647, %v7158_v13  ;;  %v7296_v62 = vadd.f32 1.0, %v4246_v9  ;;  %vm7300_vm14 = vmor %vm2270_vm10, %vm2271_vm9 }
 0x4eb   :  { %v2308_v30 = vsel %vm2305_vm12, %v2307_v35, %v2303_v23  ;;  %v3023_v49 = vsel %vm7291_vm11, %v7188_v1, %v3019_v16  ;;  %v2273_v13 = vsel %vm7300_vm14, %v7197_v20, %v2269_v47  ;;  %v2283_v50 = vmul.f32 %v7237_v25, %v2282_v27 }
 0x4ec   :  { %v7252_v42 = vadd.f32 %v3608_v45, %v3376_v43  ;;  %v2247_v45 = vor.u32 1.1754944e-38, %v2246_v3  ;;  %v3002_v53 = vsub.f32 1.0, %v7242_v29  ;;  %v3027_v17 = vor.u32 1.1754944e-38, %v3026_v28 }
 0x4ed   :  { %v2277_v19 = vor.u32 1.1754944e-38, %v2276_v10  ;;  %vm3025_vm15 = vcmp.eq.f32.partialorder %v3024_v41, 8.507059e+37  ;;  %v2339_v6 = vsub.f32 1.0, %v2308_v30  ;;  %vm2275_vm4 = vcmp.eq.f32.partialorder %v2274_v15, 8.507059e+37 }
 0x4ee   :  { %v2248_v63 = vsel %vm2245_vm13, %v2247_v45, %v2243_v0  ;;  %4247 = vrcp.f32 %v7296_v62  ;;  %v2284_v20 = vadd.f32 %v7237_v25, %v2283_v50  ;;  %vm2286_vm0 = vweird.f32 %v7237_v25  ;;  %v7539_v0 = vld [vmem:[#allocation20_spill] sm:$0xff] }
 0x4ef   :  { %v2392_v8 = vpop.permute.xlu0 %2391  ;;  %v3202_v4 = vpop.permute.xlu1 %3201  ;;  %v2335_v7 = vsub.f32 1.0, %v2248_v63  ;;  %v2278_v1 = vsel %vm2275_vm4, %v2277_v19, %v2273_v13  ;;  %v7318_v51 = vadd.f32 1.0, %v4244_v57  ;;  %v3003_v29 = vmul.f32 %v7225_v2, %v3002_v53 }
 0x4f0   :  { %v2430_v39 = vmul.f32 %v2392_v8, %v2334_v36  ;;  %v2291_v58 = vand.u32 2147483648, %v7190_v60  ;;  %v2337_v12 = vsub.f32 1.0, %v2278_v1  ;;  %vm2285_vm1 = vweird.f32 %v7190_v60 }
 0x4f1   :  { %v2289_v41 = vand.u32 2147483647, %v7190_v60  ;;  %vm7325_vm2 = vmor %vm2285_vm1, %vm2286_vm0  ;;  %4249 = vrcp.f32 %v7318_v51  ;;  %v3004_v60 = vadd.f32 %v7225_v2, %v3003_v29  ;;  %vm3006_vm5 = vweird.f32 %v7225_v2 }
 0x4f2   :  { %v3374_v11 = vmul.f32 %v7530_v52, %v2430_v39  ;;  %v2288_v9 = vsel %vm7325_vm2, %v7237_v25, %v2284_v20  ;;  %v2292_v16 = vor.u32 1.1754944e-38, %v2291_v58  ;;  %vm3005_vm7 = vweird.f32 %v7178_v22 }
 0x4f3   :  { %vm2290_vm6 = vcmp.eq.f32.partialorder %v2289_v41, 8.507059e+37  ;;  %v3009_v25 = vand.u32 2147483647, %v7178_v22  ;;  %vm3007_vm8 = vmor %vm3005_vm7, %vm3006_vm5  ;;  %vm2315_vm11 = vweird.f32 %v7296_v62  ;;  %v3039_v20 = vand.u32 2147483647, %v7318_v51 }
 0x4f4   :  { %v7305_v37 = vadd.f32 %v7017_v34, %v3374_v11  ;;  %v3028_v34 = vsel %vm3025_vm15, %v3027_v17, %v3023_v49  ;;  %v4248_v8 = vpop.eup %4247  ;;  %v2293_v47 = vsel %vm2290_vm6, %v2292_v16, %v2288_v9  ;;  %vm3035_vm15 = vweird.f32 %v7318_v51 }
 0x4f5   :  { %v3075_v5 = vsub.f32 1.0, %v3028_v34  ;;  %v2311_v45 = vmul.f32 %v4248_v8, %v7296_v62  ;;  %v2338_v52 = vsub.f32 1.0, %v2293_v47  ;;  %vm3010_vm9 = vcmp.eq.f32.partialorder %v3009_v25, 8.507059e+37 }
 0x4f6   :  { %vm2316_vm10 = vweird.f32 %v4248_v8  ;;  %vm3040_vm0 = vcmp.eq.f32.partialorder %v3039_v20, 8.507059e+37 }
 0x4f7   :  { %v2402_v54 = vpop.permute.xlu2 %2401  ;;  %v2394_v38 = vpop.permute.xlu1 %2393  ;;  %v3267_v28 = vmul.f32 %v3202_v4, %v3075_v5  ;;  %v3008_v4 = vsel %vm3007_vm8, %v7225_v2, %v3004_v60  ;;  %v2312_v15 = vsub.f32 1.0, %v2311_v45  ;;  %vm2317_vm12 = vmor %vm2315_vm11, %vm2316_vm10 }
 0x4f8   :  { %v2435_v43 = vmul.f32 %v2402_v54, %v2339_v6  ;;  %v2431_v21 = vmul.f32 %v2394_v38, %v2335_v7  ;;  %v4250_v11 = vpop.eup %4249  ;;  %v2321_v7 = vand.u32 2147483648, %v7296_v62  ;;  %v2319_v38 = vand.u32 2147483647, %v7296_v62 }
 0x4f9   :  { %v3031_v63 = vmul.f32 %v4250_v11, %v7318_v51  ;;  %v2313_v50 = vmul.f32 %v4248_v8, %v2312_v15  ;;  %vm3036_vm13 = vweird.f32 %v4250_v11 }
 0x4fa   :  { %v3375_v14 = vmul.f32 %v7535_v18, %v2431_v21  ;;  %v3379_v57 = vmul.f32 %v7538_v61, %v2435_v43  ;;  %vm2320_vm14 = vcmp.eq.f32.partialorder %v2319_v38, 8.507059e+37  ;;  %v3041_v43 = vand.u32 2147483648, %v7318_v51  ;;  %vm3037_vm4 = vmor %vm3035_vm15, %vm3036_vm13 }
 0x4fb   :  { %v2398_v3 = vpop.permute.xlu0 %2397  ;;  %v3032_v53 = vsub.f32 1.0, %v3031_v63  ;;  %v2314_v6 = vadd.f32 %v4248_v8, %v2313_v50 }
 0x4fc   :  { %v3619_v24 = vadd.f32 %v7180_v48, %v3375_v14  ;;  %v2433_v59 = vmul.f32 %v2398_v3, %v2337_v12  ;;  %v3011_v48 = vand.u32 2147483648, %v7178_v22  ;;  %v3042_v58 = vor.u32 1.1754944e-38, %v3041_v43  ;;  %v7541_v12 = vld [vmem:[#allocation22_spill] sm:$0xff] }
 0x4fd   :  { %v3033_v34 = vmul.f32 %v4250_v11, %v3032_v53 }
 0x4fe   :  { %v3631_v31 = vadd.f32 %v3619_v24, %v3379_v57  ;;  %v3377_v39 = vmul.f32 %v7539_v0, %v2433_v59  ;;  %v3012_v44 = vor.u32 1.1754944e-38, %v3011_v48 }
 0x4ff   :  { %v3566_v23 = vpop.permute.xlu2 %3565  ;;  %v3034_v1 = vadd.f32 %v4250_v11, %v3033_v34 }
 0x500   :  { %3643 = vst.msk [vmem:[#allocation2 + $0x10] sm:$0xff] %vm1342_vm3, %v3631_v31  ;;  %v3629_v27 = vadd.f32 %v7151_v26, %v3377_v39  ;;  %v3603_v35 = vmul.f32 %v3566_v23, %v3267_v28  ;;  %v3013_v30 = vsel %vm3010_vm9, %v3012_v44, %v3008_v4 }
 0x501   :  { %v3074_v13 = vsub.f32 1.0, %v3013_v30 }
 0x502   :  { %3641 = vst.msk [vmem:[#allocation2] sm:$0xff] %vm1342_vm3, %v3629_v27  ;;  %v3639_v10 = vadd.f32 %v6984_v56, %v3603_v35 }
 0x503   :  { %v3266_v56 = vmul.f32 %v7231_v32, %v3074_v13  ;;  %v2322_v32 = vor.u32 1.1754944e-38, %v2321_v7 }
 0x504   :  { %v2400_v22 = vpop.permute.xlu1 %2399  ;;  %3651 = vst.msk [vmem:[#allocation4 + $0x30] sm:$0xff] %vm1342_vm3, %v3639_v10 }
 0x505   :  { %v2434_v26 = vmul.f32 %v2400_v22, %v2338_v52 }
 0x507   :  { %v3378_v49 = vmul.f32 %v7540_v55, %v2434_v26 }
 0x509   :  { %v3630_v2 = vadd.f32 %v7305_v37, %v3378_v49  ;;  %v2318_v37 = vsel %vm2317_vm12, %v4248_v8, %v2314_v6 }
 0x50a   :  { %v2323_v21 = vsel %vm2320_vm14, %v2322_v32, %v2318_v37 }
 0x50b   :  { %3642 = vst.msk [vmem:[#allocation2 + $0x8] sm:$0xff] %vm1342_vm3, %v3630_v2  ;;  %v2340_v29 = vsub.f32 1.0, %v2323_v21 }
 0x50c   :  { %v3561_v17 = vpop.permute.xlu1 %3560 }
 0x50d   :  { %v3602_v19 = vmul.f32 %v3561_v17, %v3266_v56 }
 0x50f   :  { %v3638_v54 = vadd.f32 %v7022_v33, %v3602_v19  ;;  %v3038_v33 = vsel %vm3037_vm4, %v4250_v11, %v3034_v1 }
 0x510   :  { %v3043_v14 = vsel %vm3040_vm0, %v3042_v58, %v3038_v33 }
 0x511   :  { %3650 = vst.msk [vmem:[#allocation4 + $0x28] sm:$0xff] %vm1342_vm3, %v3638_v54  ;;  %v3076_v5 = vsub.f32 1.0, %v3043_v14 }
 0x513   :  { %v3268_v3 = vmul.f32 %v7199_v46, %v3076_v5 }
 0x517   :  { %v2404_v62 = vpop.permute.xlu0 %2403 }
 0x518   :  { %v2436_v18 = vmul.f32 %v2404_v62, %v2340_v29 }
 0x51a   :  { %v3380_v41 = vmul.f32 %v7541_v12, %v2436_v18 }
 0x51c   :  { %v3632_v51 = vadd.f32 %v7252_v42, %v3380_v41 }
 0x51e   :  { %3644 = vst.msk [vmem:[#allocation2 + $0x18] sm:$0xff] %vm1342_vm3, %v3632_v51 }
 0x51f   :  { %v3571_v36 = vpop.permute.xlu0 %3570  ;;  %3665 = dma.vmem_to_hbm [thread:$0]  %s3658_s25, 512, %s3660_s23, [#allocation3], %s4312_s27, %s4312_s27, %s4305_s17  }
 0x520   :  { %v3604_v61 = vmul.f32 %v3571_v36, %v3268_v3 }
 0x522   :  { %v3640_v57 = vadd.f32 %v7112_v40, %v3604_v61 }
 0x524   :  { %3652 = vst.msk [vmem:[#allocation4 + $0x38] sm:$0xff] %vm1342_vm3, %v3640_v57 }
 0x525   :  { %3678 = dma.vmem_to_hbm [thread:$0]  %s3671_s6, 1024, %s3673_s14, [#allocation5], %s4312_s27, %s4312_s27, %s4305_s17  }
 0x526   :  { %4301 = dma.done.wait [#allocation3], 512  }
 0x527   :  { %4302 = vsyncadd [#allocation3], 4294966784 }
 0x528   :  { %4303 = dma.done.wait [#allocation5], 1024  }
 0x529   :  { %4304 = vsyncadd [#allocation5], 4294966272 }
 0x52a   :  { %3687 = vsyncpa [#allocation3], 1 }
 0x52b   :  { %3688 = vsyncpa [#allocation5], 1 }

</bundles_post_ra>
